<compile_context>
chip_gen: v5e
topology: v5e:2x2
jax: 0.10.0
libtpu: 0.0.40
codegen_flags: <defaults>
</compile_context>

<pallas_src>
import functools

import numpy as np

import jax
import jax.numpy as jnp
from jax.experimental import pallas as pl
from jax.experimental.pallas import tpu as pltpu

_BN_EPS = 1e-5


def _round_up(x, m):
    return ((x + m - 1) // m) * m


def _vmem_limit():
    # Generation-aware VMEM request: <= 3/4 of physical, capped at 48 MiB so
    # v7x (64 MiB/TC) keeps headroom for Mosaic scratch + double buffering.
    try:
        cap = int(pltpu.get_tpu_info().vmem_capacity_bytes)
        return min(48 * 1024 * 1024, (cap * 3) // 4)
    except Exception:
        return 32 * 1024 * 1024


_VMEM_LIMIT = _vmem_limit()


# ----------------------------- Pallas kernels ------------------------------

def _conv_mm_kernel(*refs, has_res):
    # out = (A @ B) + bias [+ residual], A/B in bf16, f32 accumulation.
    # Grid = (row_tiles, k_tiles); K is the innermost ("arbitrary") axis.
    if has_res:
        a_ref, b_ref, bias_ref, res_ref, o_ref, acc_ref = refs
    else:
        a_ref, b_ref, bias_ref, o_ref, acc_ref = refs
        res_ref = None
    k = pl.program_id(1)

    @pl.when(k == 0)
    def _init():
        acc_ref[...] = jnp.zeros_like(acc_ref)

    acc_ref[...] += jnp.dot(a_ref[...], b_ref[...],
                            preferred_element_type=jnp.float32)

    @pl.when(k == pl.num_programs(1) - 1)
    def _finalize():
        y = acc_ref[...] + bias_ref[...]
        if has_res:
            y = y + res_ref[...]
        o_ref[...] = y.astype(o_ref.dtype)


def _gate_kernel(a_ref, b_ref, o_ref):
    # a * sigmoid(1 - b)   (FF2 reverse-attention gate), emitted in bf16.
    o_ref[...] = (a_ref[...] * jax.nn.sigmoid(1.0 - b_ref[...])
                  ).astype(o_ref.dtype)


# ------------------------------ tiling helpers ------------------------------

def _row_tiles(m):
    """Pick (padded_rows, row_tile). >=2 grid programs whenever m >= 16."""
    mp = _round_up(m, 8)
    if mp >= 512:
        mp = _round_up(mp, 256)
        tm = 256
    elif mp >= 16:
        mp = _round_up(mp, 16)
        tm = mp // 2
    else:
        tm = mp
    return mp, tm


def _k_tiles(k):
    """Pick (padded_k, k_tile); tile the contraction when it gets big."""
    kp = _round_up(k, 128)
    if kp <= 1024:
        return kp, kp
    kp = _round_up(kp, 512)
    return kp, 512


# ------------------------------- conv wrapper --------------------------------

def conv3x3_bn(x, w, bias, *, residual=None, out_dtype=jnp.float32):
    """3x3 / stride 1 / pad 1 Conv2d(bias=False)+BN (scale pre-folded into w)
    as a K-tiled bf16 im2col matmul with the bias (+ optional residual add)
    fused into the Pallas epilogue."""
    n, h, wd, cin = x.shape
    cout = w.shape[-1]
    m, k = n * h * wd, 9 * cin

    # im2col in bf16 (halves the materialized bytes); fuses under the outer jit.
    xb = x.astype(jnp.bfloat16)
    xp = jnp.pad(xb, ((0, 0), (1, 1), (1, 1), (0, 0)))
    cols = [xp[:, dy:dy + h, dx:dx + wd, :]
            for dy in range(3) for dx in range(3)]
    a = jnp.concatenate(cols, axis=-1).reshape(m, k)
    b = w.reshape(k, cout).astype(jnp.bfloat16)

    mp, tm = _row_tiles(m)
    kp, tk = _k_tiles(k)
    np_ = _round_up(cout, 128)

    a = jnp.pad(a, ((0, mp - m), (0, kp - k)))
    b = jnp.pad(b, ((0, kp - k), (0, np_ - cout)))
    bias2 = jnp.pad(bias.astype(jnp.float32), (0, np_ - cout)).reshape(1, np_)

    in_specs = [
        pl.BlockSpec((tm, tk), lambda i, kk: (i, kk)),
        pl.BlockSpec((tk, np_), lambda i, kk: (kk, 0)),
        pl.BlockSpec((1, np_), lambda i, kk: (0, 0)),
    ]
    inputs = [a, b, bias2]
    has_res = residual is not None
    if has_res:
        r = residual.astype(jnp.float32).reshape(m, cout)
        r = jnp.pad(r, ((0, mp - m), (0, np_ - cout)))
        in_specs.append(pl.BlockSpec((tm, np_), lambda i, kk: (i, 0)))
        inputs.append(r)

    out = pl.pallas_call(
        functools.partial(_conv_mm_kernel, has_res=has_res),
        out_shape=jax.ShapeDtypeStruct((mp, np_), out_dtype),
        grid=(mp // tm, kp // tk),
        in_specs=in_specs,
        out_specs=pl.BlockSpec((tm, np_), lambda i, kk: (i, 0)),
        scratch_shapes=[pltpu.VMEM((tm, np_), jnp.float32)],
        compiler_params=pltpu.CompilerParams(
            dimension_semantics=("parallel", "arbitrary"),
            vmem_limit_bytes=_VMEM_LIMIT),
    )(*inputs)
    return out[:m, :cout].reshape(n, h, wd, cout)


def gate_mul_sigmoid_1m(a, b):
    """Elementwise  a * sigmoid(1 - b)  (same-shape operands), output bf16."""
    shape = a.shape
    c = shape[-1]
    m = a.size // c
    a2 = a.astype(jnp.float32).reshape(m, c)
    b2 = b.astype(jnp.float32).reshape(m, c)
    mp, tm = _row_tiles(m)
    cp = _round_up(c, 128)
    a2 = jnp.pad(a2, ((0, mp - m), (0, cp - c)))
    b2 = jnp.pad(b2, ((0, mp - m), (0, cp - c)))
    out = pl.pallas_call(
        _gate_kernel,
        out_shape=jax.ShapeDtypeStruct((mp, cp), jnp.bfloat16),
        grid=(mp // tm,),
        in_specs=[pl.BlockSpec((tm, cp), lambda i: (i, 0)),
                  pl.BlockSpec((tm, cp), lambda i: (i, 0))],
        out_specs=pl.BlockSpec((tm, cp), lambda i: (i, 0)),
        compiler_params=pltpu.CompilerParams(
            dimension_semantics=("parallel",),
            vmem_limit_bytes=_VMEM_LIMIT),
    )(a2, b2)
    return out[:m, :c].reshape(shape)


# ------------------------- bilinear upsample (x2) ----------------------------

def _interp_matrix(out_size, in_size):
    # PyTorch F.interpolate(mode='bilinear', align_corners=False) coordinates.
    src = (np.arange(out_size, dtype=np.float64) + 0.5) * (in_size / out_size) - 0.5
    src = np.clip(src, 0.0, in_size - 1)
    i0 = np.floor(src).astype(np.int64)
    i1 = np.minimum(i0 + 1, in_size - 1)
    w1 = src - i0
    mat = np.zeros((out_size, in_size), np.float32)
    mat[np.arange(out_size), i0] += (1.0 - w1)
    mat[np.arange(out_size), i1] += w1
    return jnp.asarray(mat)


def _bilinear_upsample_x2(x):
    # Matmul-form resize (two small dots) -> MXU-friendly and jit-fusable.
    n, h, w, c = x.shape
    wy = _interp_matrix(2 * h, h)
    wx = _interp_matrix(2 * w, w)
    x = jnp.einsum("oh,nhwc->nowc", wy, x)
    x = jnp.einsum("pw,nowc->nopc", wx, x)
    return x


# ------------------------------- parameters ---------------------------------

def make_basic_conv2d(key, cin, cout):
    # Conv2d(3x3, bias=False) + BatchNorm2d, inference mode with default
    # affine / running stats (gamma=1, beta=0, mean=0, var=1).  The BN scale
    # is folded into the weight; the BN shift becomes the fused bias.
    # TODO(synk): training-mode BatchNorm (batch statistics) is not implemented.
    w = jax.random.normal(key, (3, 3, cin, cout), jnp.float32) * 0.05
    gamma = jnp.ones((cout,), jnp.float32)
    beta = jnp.zeros((cout,), jnp.float32)
    mean = jnp.zeros((cout,), jnp.float32)
    var = jnp.ones((cout,), jnp.float32)
    scale = gamma / jnp.sqrt(var + _BN_EPS)
    return {"w": w * scale, "b": beta - mean * scale}


def make_ff2(key, channel, outchannel):
    k1, k2, k3 = jax.random.split(key, 3)
    return {
        "conv1": make_basic_conv2d(k1, outchannel, outchannel),
        "conv2": make_basic_conv2d(k2, 2 * outchannel, outchannel),
        "conv3": make_basic_conv2d(k3, channel, outchannel),
    }


# --------------------------------- forward ----------------------------------

def ff2_forward(params, cm_nchw, cm1_nchw):
    """FF2.forward.  cm: (N, outC, H, W), cm1: (N, C, H/2, W/2), NCHW f32.
    Returns (N, outC, H, W) NCHW f32."""
    cm = jnp.transpose(cm_nchw, (0, 2, 3, 1)).astype(jnp.float32)
    cm1 = jnp.transpose(cm1_nchw, (0, 2, 3, 1)).astype(jnp.float32)

    cm1_up = _bilinear_upsample_x2(cm1)
    cm1_c = conv3x3_bn(cm1_up, params["conv3"]["w"], params["conv3"]["b"])
    gate = gate_mul_sigmoid_1m(cm, cm1_c)                # cm * sigmoid(1 - cm1)
    ff = conv3x3_bn(gate, params["conv1"]["w"], params["conv1"]["b"],
                    out_dtype=jnp.bfloat16)
    cat = jnp.concatenate([ff, cm.astype(jnp.bfloat16)], axis=-1)
    out = conv3x3_bn(cat, params["conv2"]["w"], params["conv2"]["b"],
                     residual=cm1_c)                     # "+ cm1" fused in epilogue
    return jnp.transpose(out, (0, 3, 1, 2))


# ------------------------- pure-JAX reference (check) ------------------------

def _ff2_reference(params, cm_nchw, cm1_nchw):
    cm = jnp.transpose(cm_nchw, (0, 2, 3, 1)).astype(jnp.float32)
    cm1 = jnp.transpose(cm1_nchw, (0, 2, 3, 1)).astype(jnp.float32)

    def conv(p, x):
        y = jax.lax.conv_general_dilated(
            x, p["w"], window_strides=(1, 1), padding=((1, 1), (1, 1)),
            dimension_numbers=("NHWC", "HWIO", "NHWC"))
        return y + p["b"]

    cm1_c = conv(params["conv3"], _bilinear_upsample_x2(cm1))
    ff = conv(params["conv1"], cm * jax.nn.sigmoid(1.0 - cm1_c))
    out = conv(params["conv2"], jnp.concatenate([ff, cm], axis=-1)) + cm1_c
    return jnp.transpose(out, (0, 3, 1, 2))


# ----------------------------------- main ------------------------------------

if __name__ == "__main__":
    channel, outchannel = 128, 64
    N, H, W = 2, 16, 16

    key = jax.random.PRNGKey(0)
    kparam, kcm, kcm1 = jax.random.split(key, 3)
    params = make_ff2(kparam, channel, outchannel)
    cm = jax.random.normal(kcm, (N, outchannel, H, W), jnp.float32)
    cm1 = jax.random.normal(kcm1, (N, channel, H // 2, W // 2), jnp.float32)

    fwd = jax.jit(ff2_forward)           # one jit over the whole forward pass
    out = jax.block_until_ready(fwd(params, cm, cm1))
    assert out.shape == (N, outchannel, H, W), out.shape

    ref = _ff2_reference(params, cm, cm1)
    rel = jnp.linalg.norm(out - ref) / (jnp.linalg.norm(ref) + 1e-9)
    assert bool(jnp.isfinite(rel)) and float(rel) < 3e-2, float(rel)
    print("KERNEL_OK")
</pallas_src>

<mosaic_0001>
module attributes {stable_mosaic.version = 11 : i64} {
  func.func @_conv_mm_kernel(%arg0: i32, %arg1: i32, %arg2: memref<256x512xbf16, #tpu.memory_space<vmem>>, %arg3: memref<512x128xbf16, #tpu.memory_space<vmem>>, %arg4: memref<1x128xf32, #tpu.memory_space<vmem>>, %arg5: memref<256x128xf32, #tpu.memory_space<vmem>>, %arg6: memref<256x128xf32, #tpu.memory_space<vmem>>) attributes {dimension_semantics = [#tpu.dimension_semantics<parallel>, #tpu.dimension_semantics<arbitrary>], iteration_bounds = array<i64: 2, 3>, scalar_prefetch = 0 : i64, scratch_operands = 1 : i64, tpu.core_type = #tpu.core_type<tc>, window_params = [{transform_indices = @transform_0, window_bounds = array<i64: 256, 512>}, {transform_indices = @transform_1, window_bounds = array<i64: 512, 128>}, {pipeline_mode = #tpu.pipeline_mode<synchronous>, transform_indices = @transform_2, window_bounds = array<i64: 1, 128>}, {transform_indices = @transform_3, window_bounds = array<i64: 256, 128>}]} {
    %c0_i32 = arith.constant 0 : i32
    %0 = arith.cmpi eq, %arg1, %c0_i32 : i32
    %1 = arith.extui %0 : i1 to i32
    %c0_i32_0 = arith.constant 0 : i32
    %2 = arith.cmpi ne, %1, %c0_i32_0 : i32
    scf.if %2 {
      %cst_9 = arith.constant 0.000000e+00 : f32
      %12 = vector.broadcast %cst_9 : f32 to vector<256x128xf32>
      %c0_10 = arith.constant 0 : index
      %c0_11 = arith.constant 0 : index
      %13 = vector.load %arg6[%c0_10, %c0_11] : memref<256x128xf32, #tpu.memory_space<vmem>>, vector<256x128xf32>
      tpu.vector_store %arg6[%c0_10, %c0_11], %12 {strides = array<i32>} : memref<256x128xf32, #tpu.memory_space<vmem>>, vector<256x128xf32>,
    } else {
    }
    %c0 = arith.constant 0 : index
    %c0_1 = arith.constant 0 : index
    %3 = vector.load %arg6[%c0, %c0_1] : memref<256x128xf32, #tpu.memory_space<vmem>>, vector<256x128xf32>
    %c0_2 = arith.constant 0 : index
    %c0_3 = arith.constant 0 : index
    %4 = vector.load %arg2[%c0_2, %c0_3] : memref<256x512xbf16, #tpu.memory_space<vmem>>, vector<256x512xbf16>
    %c0_4 = arith.constant 0 : index
    %c0_5 = arith.constant 0 : index
    %5 = vector.load %arg3[%c0_4, %c0_5] : memref<512x128xbf16, #tpu.memory_space<vmem>>, vector<512x128xbf16>
    %cst = arith.constant dense<0.000000e+00> : vector<256x128xf32>
    %6 = tpu.matmul %4, %5, %cst {dimension_numbers = #tpu.dot_dimension_numbers<[1], [0], [0], [1], [0, 0, 1, 1], [], []>} : vector<256x512xbf16>, vector<512x128xbf16>, vector<256x128xf32> -> vector<256x128xf32>
    %7 = arith.addf %3, %6 : vector<256x128xf32>
    %c0_6 = arith.constant 0 : index
    %c0_7 = arith.constant 0 : index
    %8 = vector.load %arg6[%c0_6, %c0_7] : memref<256x128xf32, #tpu.memory_space<vmem>>, vector<256x128xf32>
    tpu.vector_store %arg6[%c0_6, %c0_7], %7 {strides = array<i32>} : memref<256x128xf32, #tpu.memory_space<vmem>>, vector<256x128xf32>,
    %c2_i32 = arith.constant 2 : i32
    %9 = arith.cmpi eq, %arg1, %c2_i32 : i32
    %10 = arith.extui %9 : i1 to i32
    %c0_i32_8 = arith.constant 0 : i32
    %11 = arith.cmpi ne, %10, %c0_i32_8 : i32
    scf.if %11 {
      %c0_9 = arith.constant 0 : index
      %c0_10 = arith.constant 0 : index
      %12 = vector.load %arg6[%c0_9, %c0_10] : memref<256x128xf32, #tpu.memory_space<vmem>>, vector<256x128xf32>
      %c0_11 = arith.constant 0 : index
      %c0_12 = arith.constant 0 : index
      %13 = vector.load %arg4[%c0_11, %c0_12] : memref<1x128xf32, #tpu.memory_space<vmem>>, vector<1x128xf32>
      %14 = vector.broadcast %13 : vector<1x128xf32> to vector<256x128xf32>
      %15 = arith.addf %12, %14 : vector<256x128xf32>
      %c0_13 = arith.constant 0 : index
      %c0_14 = arith.constant 0 : index
      %16 = vector.load %arg5[%c0_13, %c0_14] : memref<256x128xf32, #tpu.memory_space<vmem>>, vector<256x128xf32>
      tpu.vector_store %arg5[%c0_13, %c0_14], %15 {strides = array<i32>} : memref<256x128xf32, #tpu.memory_space<vmem>>, vector<256x128xf32>,
    } else {
    }
    return
  }
  func.func @transform_0(%arg0: i32, %arg1: i32) -> (i32, i32) {
    %c0_i32 = arith.constant 0 : i32
    return %arg0, %arg1 : i32, i32
  }
  func.func @transform_1(%arg0: i32, %arg1: i32) -> (i32, i32) {
    %c0_i32 = arith.constant 0 : i32
    %c0_i32_0 = arith.constant 0 : i32
    return %arg1, %c0_i32 : i32, i32
  }
  func.func @transform_2(%arg0: i32, %arg1: i32) -> (i32, i32) {
    %c0_i32 = arith.constant 0 : i32
    %c0_i32_0 = arith.constant 0 : i32
    %c0_i32_1 = arith.constant 0 : i32
    return %c0_i32, %c0_i32_0 : i32, i32
  }
  func.func @transform_3(%arg0: i32, %arg1: i32) -> (i32, i32) {
    %c0_i32 = arith.constant 0 : i32
    %c0_i32_0 = arith.constant 0 : i32
    return %arg0, %c0_i32 : i32, i32
  }
}

module attributes {stable_mosaic.version = 11 : i64} {
  func.func @_gate_kernel(%arg0: i32, %arg1: memref<256x128xf32, #tpu.memory_space<vmem>>, %arg2: memref<256x128xf32, #tpu.memory_space<vmem>>, %arg3: memref<256x128xbf16, #tpu.memory_space<vmem>>) attributes {dimension_semantics = [#tpu.dimension_semantics<parallel>], iteration_bounds = array<i64: 2>, scalar_prefetch = 0 : i64, scratch_operands = 0 : i64, tpu.core_type = #tpu.core_type<tc>, window_params = [{transform_indices = @transform_0, window_bounds = array<i64: 256, 128>}, {transform_indices = @transform_1, window_bounds = array<i64: 256, 128>}, {transform_indices = @transform_2, window_bounds = array<i64: 256, 128>}]} {
    %c0 = arith.constant 0 : index
    %c0_0 = arith.constant 0 : index
    %0 = vector.load %arg1[%c0, %c0_0] : memref<256x128xf32, #tpu.memory_space<vmem>>, vector<256x128xf32>
    %c0_1 = arith.constant 0 : index
    %c0_2 = arith.constant 0 : index
    %1 = vector.load %arg2[%c0_1, %c0_2] : memref<256x128xf32, #tpu.memory_space<vmem>>, vector<256x128xf32>
    %cst = arith.constant 1.000000e+00 : f32
    %2 = vector.broadcast %cst : f32 to vector<256x128xf32>
    %3 = arith.subf %2, %1 : vector<256x128xf32>
    %4 = arith.negf %3 : vector<256x128xf32>
    %5 = math.exp %4 : vector<256x128xf32>
    %cst_3 = arith.constant 1.000000e+00 : f32
    %6 = vector.broadcast %cst_3 : f32 to vector<256x128xf32>
    %7 = arith.addf %6, %5 : vector<256x128xf32>
    %8 = arith.divf %6, %7 : vector<256x128xf32>
    %9 = arith.mulf %0, %8 : vector<256x128xf32>
    %10 = arith.truncf %9 : vector<256x128xf32> to vector<256x128xbf16>
    %c0_4 = arith.constant 0 : index
    %c0_5 = arith.constant 0 : index
    %11 = vector.load %arg3[%c0_4, %c0_5] : memref<256x128xbf16, #tpu.memory_space<vmem>>, vector<256x128xbf16>
    tpu.vector_store %arg3[%c0_4, %c0_5], %10 {strides = array<i32>} : memref<256x128xbf16, #tpu.memory_space<vmem>>, vector<256x128xbf16>,
    return
  }
  func.func @transform_0(%arg0: i32) -> (i32, i32) {
    %c0_i32 = arith.constant 0 : i32
    %c0_i32_0 = arith.constant 0 : i32
    return %arg0, %c0_i32 : i32, i32
  }
  func.func @transform_1(%arg0: i32) -> (i32, i32) {
    %c0_i32 = arith.constant 0 : i32
    %c0_i32_0 = arith.constant 0 : i32
    return %arg0, %c0_i32 : i32, i32
  }
  func.func @transform_2(%arg0: i32) -> (i32, i32) {
    %c0_i32 = arith.constant 0 : i32
    %c0_i32_0 = arith.constant 0 : i32
    return %arg0, %c0_i32 : i32, i32
  }
}

module attributes {stable_mosaic.version = 11 : i64} {
  func.func @_conv_mm_kernel(%arg0: i32, %arg1: i32, %arg2: memref<256x640xbf16, #tpu.memory_space<vmem>>, %arg3: memref<640x128xbf16, #tpu.memory_space<vmem>>, %arg4: memref<1x128xf32, #tpu.memory_space<vmem>>, %arg5: memref<256x128xbf16, #tpu.memory_space<vmem>>, %arg6: memref<256x128xf32, #tpu.memory_space<vmem>>) attributes {dimension_semantics = [#tpu.dimension_semantics<parallel>, #tpu.dimension_semantics<arbitrary>], iteration_bounds = array<i64: 2, 1>, scalar_prefetch = 0 : i64, scratch_operands = 1 : i64, tpu.core_type = #tpu.core_type<tc>, window_params = [{transform_indices = @transform_0, window_bounds = array<i64: 256, 640>}, {transform_indices = @transform_1, window_bounds = array<i64: 640, 128>}, {pipeline_mode = #tpu.pipeline_mode<synchronous>, transform_indices = @transform_2, window_bounds = array<i64: 1, 128>}, {transform_indices = @transform_3, window_bounds = array<i64: 256, 128>}]} {
    %c0_i32 = arith.constant 0 : i32
    %0 = arith.cmpi eq, %arg1, %c0_i32 : i32
    %1 = arith.extui %0 : i1 to i32
    %c0_i32_0 = arith.constant 0 : i32
    %2 = arith.cmpi ne, %1, %c0_i32_0 : i32
    scf.if %2 {
      %cst_10 = arith.constant 0.000000e+00 : f32
      %12 = vector.broadcast %cst_10 : f32 to vector<256x128xf32>
      %c0_11 = arith.constant 0 : index
      %c0_12 = arith.constant 0 : index
      %13 = vector.load %arg6[%c0_11, %c0_12] : memref<256x128xf32, #tpu.memory_space<vmem>>, vector<256x128xf32>
      tpu.vector_store %arg6[%c0_11, %c0_12], %12 {strides = array<i32>} : memref<256x128xf32, #tpu.memory_space<vmem>>, vector<256x128xf32>,
    } else {
    }
    %c0 = arith.constant 0 : index
    %c0_1 = arith.constant 0 : index
    %3 = vector.load %arg6[%c0, %c0_1] : memref<256x128xf32, #tpu.memory_space<vmem>>, vector<256x128xf32>
    %c0_2 = arith.constant 0 : index
    %c0_3 = arith.constant 0 : index
    %4 = vector.load %arg2[%c0_2, %c0_3] : memref<256x640xbf16, #tpu.memory_space<vmem>>, vector<256x640xbf16>
    %c0_4 = arith.constant 0 : index
    %c0_5 = arith.constant 0 : index
    %5 = vector.load %arg3[%c0_4, %c0_5] : memref<640x128xbf16, #tpu.memory_space<vmem>>, vector<640x128xbf16>
    %cst = arith.constant dense<0.000000e+00> : vector<256x128xf32>
    %6 = tpu.matmul %4, %5, %cst {dimension_numbers = #tpu.dot_dimension_numbers<[1], [0], [0], [1], [0, 0, 1, 1], [], []>} : vector<256x640xbf16>, vector<640x128xbf16>, vector<256x128xf32> -> vector<256x128xf32>
    %7 = arith.addf %3, %6 : vector<256x128xf32>
    %c0_6 = arith.constant 0 : index
    %c0_7 = arith.constant 0 : index
    %8 = vector.load %arg6[%c0_6, %c0_7] : memref<256x128xf32, #tpu.memory_space<vmem>>, vector<256x128xf32>
    tpu.vector_store %arg6[%c0_6, %c0_7], %7 {strides = array<i32>} : memref<256x128xf32, #tpu.memory_space<vmem>>, vector<256x128xf32>,
    %c0_i32_8 = arith.constant 0 : i32
    %9 = arith.cmpi eq, %arg1, %c0_i32_8 : i32
    %10 = arith.extui %9 : i1 to i32
    %c0_i32_9 = arith.constant 0 : i32
    %11 = arith.cmpi ne, %10, %c0_i32_9 : i32
    scf.if %11 {
      %c0_10 = arith.constant 0 : index
      %c0_11 = arith.constant 0 : index
      %12 = vector.load %arg6[%c0_10, %c0_11] : memref<256x128xf32, #tpu.memory_space<vmem>>, vector<256x128xf32>
      %c0_12 = arith.constant 0 : index
      %c0_13 = arith.constant 0 : index
      %13 = vector.load %arg4[%c0_12, %c0_13] : memref<1x128xf32, #tpu.memory_space<vmem>>, vector<1x128xf32>
      %14 = vector.broadcast %13 : vector<1x128xf32> to vector<256x128xf32>
      %15 = arith.addf %12, %14 : vector<256x128xf32>
      %16 = arith.truncf %15 : vector<256x128xf32> to vector<256x128xbf16>
      %c0_14 = arith.constant 0 : index
      %c0_15 = arith.constant 0 : index
      %17 = vector.load %arg5[%c0_14, %c0_15] : memref<256x128xbf16, #tpu.memory_space<vmem>>, vector<256x128xbf16>
      tpu.vector_store %arg5[%c0_14, %c0_15], %16 {strides = array<i32>} : memref<256x128xbf16, #tpu.memory_space<vmem>>, vector<256x128xbf16>,
    } else {
    }
    return
  }
  func.func @transform_0(%arg0: i32, %arg1: i32) -> (i32, i32) {
    %c0_i32 = arith.constant 0 : i32
    return %arg0, %arg1 : i32, i32
  }
  func.func @transform_1(%arg0: i32, %arg1: i32) -> (i32, i32) {
    %c0_i32 = arith.constant 0 : i32
    %c0_i32_0 = arith.constant 0 : i32
    return %arg1, %c0_i32 : i32, i32
  }
  func.func @transform_2(%arg0: i32, %arg1: i32) -> (i32, i32) {
    %c0_i32 = arith.constant 0 : i32
    %c0_i32_0 = arith.constant 0 : i32
    %c0_i32_1 = arith.constant 0 : i32
    return %c0_i32, %c0_i32_0 : i32, i32
  }
  func.func @transform_3(%arg0: i32, %arg1: i32) -> (i32, i32) {
    %c0_i32 = arith.constant 0 : i32
    %c0_i32_0 = arith.constant 0 : i32
    return %arg0, %c0_i32 : i32, i32
  }
}

module attributes {stable_mosaic.version = 11 : i64} {
  func.func @_conv_mm_kernel(%arg0: i32, %arg1: i32, %arg2: memref<256x512xbf16, #tpu.memory_space<vmem>>, %arg3: memref<512x128xbf16, #tpu.memory_space<vmem>>, %arg4: memref<1x128xf32, #tpu.memory_space<vmem>>, %arg5: memref<256x128xf32, #tpu.memory_space<vmem>>, %arg6: memref<256x128xf32, #tpu.memory_space<vmem>>, %arg7: memref<256x128xf32, #tpu.memory_space<vmem>>) attributes {dimension_semantics = [#tpu.dimension_semantics<parallel>, #tpu.dimension_semantics<arbitrary>], iteration_bounds = array<i64: 2, 3>, scalar_prefetch = 0 : i64, scratch_operands = 1 : i64, tpu.core_type = #tpu.core_type<tc>, window_params = [{transform_indices = @transform_0, window_bounds = array<i64: 256, 512>}, {transform_indices = @transform_1, window_bounds = array<i64: 512, 128>}, {pipeline_mode = #tpu.pipeline_mode<synchronous>, transform_indices = @transform_2, window_bounds = array<i64: 1, 128>}, {transform_indices = @transform_3, window_bounds = array<i64: 256, 128>}, {transform_indices = @transform_4, window_bounds = array<i64: 256, 128>}]} {
    %c0_i32 = arith.constant 0 : i32
    %0 = arith.cmpi eq, %arg1, %c0_i32 : i32
    %1 = arith.extui %0 : i1 to i32
    %c0_i32_0 = arith.constant 0 : i32
    %2 = arith.cmpi ne, %1, %c0_i32_0 : i32
    scf.if %2 {
      %cst_9 = arith.constant 0.000000e+00 : f32
      %12 = vector.broadcast %cst_9 : f32 to vector<256x128xf32>
      %c0_10 = arith.constant 0 : index
      %c0_11 = arith.constant 0 : index
      %13 = vector.load %arg7[%c0_10, %c0_11] : memref<256x128xf32, #tpu.memory_space<vmem>>, vector<256x128xf32>
      tpu.vector_store %arg7[%c0_10, %c0_11], %12 {strides = array<i32>} : memref<256x128xf32, #tpu.memory_space<vmem>>, vector<256x128xf32>,
    } else {
    }
    %c0 = arith.constant 0 : index
    %c0_1 = arith.constant 0 : index
    %3 = vector.load %arg7[%c0, %c0_1] : memref<256x128xf32, #tpu.memory_space<vmem>>, vector<256x128xf32>
    %c0_2 = arith.constant 0 : index
    %c0_3 = arith.constant 0 : index
    %4 = vector.load %arg2[%c0_2, %c0_3] : memref<256x512xbf16, #tpu.memory_space<vmem>>, vector<256x512xbf16>
    %c0_4 = arith.constant 0 : index
    %c0_5 = arith.constant 0 : index
    %5 = vector.load %arg3[%c0_4, %c0_5] : memref<512x128xbf16, #tpu.memory_space<vmem>>, vector<512x128xbf16>
    %cst = arith.constant dense<0.000000e+00> : vector<256x128xf32>
    %6 = tpu.matmul %4, %5, %cst {dimension_numbers = #tpu.dot_dimension_numbers<[1], [0], [0], [1], [0, 0, 1, 1], [], []>} : vector<256x512xbf16>, vector<512x128xbf16>, vector<256x128xf32> -> vector<256x128xf32>
    %7 = arith.addf %3, %6 : vector<256x128xf32>
    %c0_6 = arith.constant 0 : index
    %c0_7 = arith.constant 0 : index
    %8 = vector.load %arg7[%c0_6, %c0_7] : memref<256x128xf32, #tpu.memory_space<vmem>>, vector<256x128xf32>
    tpu.vector_store %arg7[%c0_6, %c0_7], %7 {strides = array<i32>} : memref<256x128xf32, #tpu.memory_space<vmem>>, vector<256x128xf32>,
    %c2_i32 = arith.constant 2 : i32
    %9 = arith.cmpi eq, %arg1, %c2_i32 : i32
    %10 = arith.extui %9 : i1 to i32
    %c0_i32_8 = arith.constant 0 : i32
    %11 = arith.cmpi ne, %10, %c0_i32_8 : i32
    scf.if %11 {
      %c0_9 = arith.constant 0 : index
      %c0_10 = arith.constant 0 : index
      %12 = vector.load %arg7[%c0_9, %c0_10] : memref<256x128xf32, #tpu.memory_space<vmem>>, vector<256x128xf32>
      %c0_11 = arith.constant 0 : index
      %c0_12 = arith.constant 0 : index
      %13 = vector.load %arg4[%c0_11, %c0_12] : memref<1x128xf32, #tpu.memory_space<vmem>>, vector<1x128xf32>
      %14 = vector.broadcast %13 : vector<1x128xf32> to vector<256x128xf32>
      %15 = arith.addf %12, %14 : vector<256x128xf32>
      %c0_13 = arith.constant 0 : index
      %c0_14 = arith.constant 0 : index
      %16 = vector.load %arg5[%c0_13, %c0_14] : memref<256x128xf32, #tpu.memory_space<vmem>>, vector<256x128xf32>
      %17 = arith.addf %15, %16 : vector<256x128xf32>
      %c0_15 = arith.constant 0 : index
      %c0_16 = arith.constant 0 : index
      %18 = vector.load %arg6[%c0_15, %c0_16] : memref<256x128xf32, #tpu.memory_space<vmem>>, vector<256x128xf32>
      tpu.vector_store %arg6[%c0_15, %c0_16], %17 {strides = array<i32>} : memref<256x128xf32, #tpu.memory_space<vmem>>, vector<256x128xf32>,
    } else {
    }
    return
  }
  func.func @transform_0(%arg0: i32, %arg1: i32) -> (i32, i32) {
    %c0_i32 = arith.constant 0 : i32
    return %arg0, %arg1 : i32, i32
  }
  func.func @transform_1(%arg0: i32, %arg1: i32) -> (i32, i32) {
    %c0_i32 = arith.constant 0 : i32
    %c0_i32_0 = arith.constant 0 : i32
    return %arg1, %c0_i32 : i32, i32
  }
  func.func @transform_2(%arg0: i32, %arg1: i32) -> (i32, i32) {
    %c0_i32 = arith.constant 0 : i32
    %c0_i32_0 = arith.constant 0 : i32
    %c0_i32_1 = arith.constant 0 : i32
    return %c0_i32, %c0_i32_0 : i32, i32
  }
  func.func @transform_3(%arg0: i32, %arg1: i32) -> (i32, i32) {
    %c0_i32 = arith.constant 0 : i32
    %c0_i32_0 = arith.constant 0 : i32
    return %arg0, %c0_i32 : i32, i32
  }
  func.func @transform_4(%arg0: i32, %arg1: i32) -> (i32, i32) {
    %c0_i32 = arith.constant 0 : i32
    %c0_i32_0 = arith.constant 0 : i32
    return %arg0, %c0_i32 : i32, i32
  }
}

</mosaic_0001>

<bundles_post_ra>
// kernel: ff2_forward.5
= control target key start
LH: loop header
LB: loop body
LE: loop exit
PB: predicated region body
PF: predicated region fallthrough
CT: control target
= control target key end

     0   :  { %s1336_s9 = smov 0   ;;  %s2136_s0 = inlined_call_operand.vmem [shape: f32[512,128], index: 0, kind: input, shape index: {}]   ;;  %s2137_s1 = inlined_call_operand.vmem [shape: f32[512,128], index: 1, kind: input, shape index: {}]   ;;  %s2138_s2 = inlined_call_operand.vmem [shape: bf16[512,128], index: 2, kind: output, shape index: {}]  }
   0x1 LB: > { %s1037_s10 = sadd.s32 4294967295, %s1319_s9   ;;  %p1041_p0 = scmp.ge.s32.totalorder %s1319_s9, 1  ;;  %s1319_s9 = sphi %s1336_s9, %s12_s9  }
   0x2   : > { %p124_p1 = scmp.lt.s32.totalorder %s1319_s9, 3 }
   0x4   : > { %p125_p2 = pnand %p1041_p0, %p124_p1 }
   0x5   : > { %s1042_s11 = sshll.u32 (!%p125_p2), %s1037_s10, 5 }
   0x6   : > { %128 = sbr.rel (%p125_p2) target bundleno = 175 (0xaf), region = 28  ;;  %p152_p3 = scmp.lt.s32.totalorder (!%p125_p2), %s1042_s11, 63 }
   0xb   : > { %s2252_s11 = smov (!%p152_p3, %s1042_s11), 63 }
   0xc   : > { %s1043_s12 = sshll.u32 %s2252_s11, 3  ;;  %s1047_s19 = sshll.u32 %s2252_s11, 2 }
   0xd   : > { %s1352_s15 = scalar_lea.vmem %s2137_s1, %s1043_s12  ;;  %s1449_s18 = scalar_lea.vmem %s2136_s0, %s1043_s12 }
   0xe   : > { %v201_v0 = vld [vmem:[%s1352_s15] sm:$0xff]  ;;  %v202_v1 = vld [vmem:[%s1352_s15 + $0x8] sm:$0xff]  ;;  %v203_v4 = vld [vmem:[%s1352_s15 + $0x10] sm:$0xff]  ;;  %s1514_s22 = scalar_lea.vmem %s2138_s2, %s1047_s19 }
   0xf   : > { %v233_v2 = vsub.f32 1.0, %v201_v0  ;;  %v234_v3 = vsub.f32 1.0, %v202_v1  ;;  %v204_v5 = vld [vmem:[%s1352_s15 + $0x18] sm:$0xff]  ;;  %v205_v6 = vld [vmem:[%s1352_s15 + $0x20] sm:$0xff]  ;;  %v235_v8 = vsub.f32 1.0, %v203_v4  ;;  %v206_v11 = vld [vmem:[%s1352_s15 + $0x28] sm:$0xff] }
  0x10   : > { %v236_v9 = vsub.f32 1.0, %v204_v5  ;;  %v237_v12 = vsub.f32 1.0, %v205_v6  ;;  %v207_v13 = vld [vmem:[%s1352_s15 + $0x30] sm:$0xff]  ;;  %v208_v14 = vld [vmem:[%s1352_s15 + $0x38] sm:$0xff]  ;;  %v238_v17 = vsub.f32 1.0, %v206_v11  ;;  %v209_v21 = vld [vmem:[%s1352_s15 + $0x40] sm:$0xff] }
  0x11   : > { %v1048_v7 = vmul.f32 -1.442695, %v233_v2  ;;  %v1049_v10 = vmul.f32 -1.442695, %v234_v3  ;;  %v1050_v15 = vmul.f32 -1.442695, %v235_v8 }
  0x12   : > { %v1051_v16 = vmul.f32 -1.442695, %v236_v9  ;;  %v1052_v18 = vmul.f32 -1.442695, %v237_v12  ;;  %v239_v19 = vsub.f32 1.0, %v207_v13  ;;  %v240_v20 = vsub.f32 1.0, %v208_v14 }
  0x13   : > { %1185 = vpow2.f32 %v1048_v7  ;;  %v1053_v22 = vmul.f32 -1.442695, %v238_v17  ;;  %v210_v23 = vld [vmem:[%s1352_s15 + $0x48] sm:$0xff]  ;;  %v211_v25 = vld [vmem:[%s1352_s15 + $0x50] sm:$0xff]  ;;  %v241_v27 = vsub.f32 1.0, %v209_v21  ;;  %v1366_v30 = vld [vmem:[%s1352_s15 + $0x58] sm:$0xff] }
  0x14   : > { %1187 = vpow2.f32 %v1049_v10  ;;  %v1054_v24 = vmul.f32 -1.442695, %v239_v19  ;;  %v1055_v26 = vmul.f32 -1.442695, %v240_v20  ;;  %v242_v28 = vsub.f32 1.0, %v210_v23  ;;  %v1371_v34 = vld [vmem:[%s1352_s15 + $0x60] sm:$0xff] }
  0x15   : > { %1189 = vpow2.f32 %v1050_v15  ;;  %v243_v31 = vsub.f32 1.0, %v211_v25  ;;  %v1056_v37 = vmul.f32 -1.442695, %v241_v27  ;;  %v244_v41 = vsub.f32 1.0, %v1366_v30  ;;  %v1381_v42 = vld [vmem:[%s1352_s15 + $0x68] sm:$0xff] }
  0x16   : > { %1191 = vpow2.f32 %v1051_v16  ;;  %v1377_v40 = vmul.f32 -1.442695, %v242_v28  ;;  %v245_v46 = vsub.f32 1.0, %v1371_v34  ;;  %v246_v53 = vsub.f32 1.0, %v1381_v42 }
  0x17   : > { %1193 = vpow2.f32 %v1052_v18  ;;  %v1385_v45 = vmul.f32 -1.442695, %v243_v31  ;;  %v169_v31 = vld [vmem:[%s1449_s18] sm:$0xff] }
  0x18   : > { %1195 = vpow2.f32 %v1053_v22  ;;  %v1059_v22 = vmul.f32 -1.442695, %v244_v41 }
  0x19   : > { %v1186_v29 = vpop.eup %1185  ;;  %1197 = vpow2.f32 %v1054_v24 }
  0x1a   : > { %v1188_v32 = vpop.eup %1187  ;;  %v1368_v33 = vadd.f32 1.0, %v1186_v29  ;;  %1199 = vpow2.f32 %v1055_v26 }
  0x1b   : > { %v1190_v35 = vpop.eup %1189  ;;  %v1373_v36 = vadd.f32 1.0, %v1188_v32 }
  0x1c   : > { %v1192_v38 = vpop.eup %1191  ;;  %1201 = vrcp.f32 %v1368_v33  ;;  %v404_v39 = vand.u32 2147483648, %v1368_v33  ;;  %v402_v44 = vand.u32 2147483647, %v1368_v33  ;;  %v1390_v50 = vadd.f32 1.0, %v1190_v35 }
  0x1d   : > { %v1194_v43 = vpop.eup %1193  ;;  %1203 = vrcp.f32 %v1373_v36  ;;  %v417_v48 = vand.u32 2147483647, %v1373_v36  ;;  %v419_v49 = vand.u32 2147483648, %v1373_v36  ;;  %v1392_v51 = vadd.f32 1.0, %v1192_v38  ;;  %v170_v38 = vld [vmem:[%s1449_s18 + $0x8] sm:$0xff] }
  0x1e   : > { %v1196_v47 = vpop.eup %1195  ;;  %vm398_vm0 = vweird.f32 %v1368_v33  ;;  %v1395_v52 = vadd.f32 1.0, %v1194_v43  ;;  %1205 = vpow2.f32 %v1056_v37  ;;  %v1398_v55 = vor.u32 1.1754944e-38, %v404_v39 }
  0x1f   : > { %v1198_v54 = vpop.eup %1197  ;;  %vm413_vm1 = vweird.f32 %v1373_v36  ;;  %1207 = vrcp.f32 %v1390_v50  ;;  %v434_v56 = vand.u32 2147483648, %v1390_v50  ;;  %vm1405_vm2 = vcmp.eq.f32.partialorder %v402_v44, 8.507059e+37 }
  0x20   : > { %v1403_v57 = vpop.eup %1199  ;;  %v432_v59 = vand.u32 2147483647, %v1390_v50  ;;  %1209 = vrcp.f32 %v1392_v51  ;;  %v449_v60 = vand.u32 2147483648, %v1392_v51  ;;  %v1412_v61 = vadd.f32 1.0, %v1196_v47 }
  0x21   : > { %vm1414_vm3 = vcmp.eq.f32.partialorder %v417_v48, 8.507059e+37  ;;  %v420_v0 = vor.u32 1.1754944e-38, %v419_v49  ;;  %v447_v1 = vand.u32 2147483647, %v1392_v51  ;;  %1211 = vrcp.f32 %v1395_v52 }
  0x22   : > { %v1202_v62 = vpop.eup %1201  ;;  %vm428_vm4 = vweird.f32 %v1390_v50  ;;  %v1422_v4 = vor.u32 1.1754944e-38, %v434_v56  ;;  %vm443_vm5 = vweird.f32 %v1392_v51  ;;  %vm458_vm6 = vweird.f32 %v1395_v52 }
  0x23   : > { %v1204_v2 = vpop.eup %1203  ;;  %v394_v3 = vmul.f32 %v1202_v62, %v1368_v33  ;;  %v462_v6 = vand.u32 2147483647, %v1395_v52  ;;  %v464_v7 = vand.u32 2147483648, %v1395_v52  ;;  %vm399_vm7 = vweird.f32 %v1202_v62 }
  0x24   : > { %v409_v5 = vmul.f32 %v1204_v2, %v1373_v36  ;;  %v1429_v8 = vpop.eup %1205  ;;  %vm1431_vm8 = vcmp.eq.f32.partialorder %v432_v59, 8.507059e+37  ;;  %v1435_v11 = vor.u32 1.1754944e-38, %v449_v60  ;;  %1213 = vrcp.f32 %v1412_v61  ;;  %vm1459_vm13 = vmor %vm398_vm0, %vm399_vm7  ;;  %v171_v60 = vld [vmem:[%s1449_s18 + $0x10] sm:$0xff] }
  0x25   : > { %v395_v9 = vsub.f32 1.0, %v394_v3  ;;  %v1208_v12 = vpop.eup %1207  ;;  %vm414_vm9 = vweird.f32 %v1204_v2  ;;  %vm1438_vm10 = vcmp.eq.f32.partialorder %v447_v1, 8.507059e+37  ;;  %vm473_vm11 = vweird.f32 %v1412_v61  ;;  %v175_v1 = vld [vmem:[%s1449_s18 + $0x30] sm:$0xff] }
  0x26   : > { %v410_v13 = vsub.f32 1.0, %v409_v5  ;;  %v477_v15 = vand.u32 2147483647, %v1412_v61  ;;  %v1210_v16 = vpop.eup %1209  ;;  %v424_v18 = vmul.f32 %v1208_v12, %v1390_v50  ;;  %vm1452_vm12 = vcmp.eq.f32.partialorder %v462_v6, 8.507059e+37  ;;  %vm1468_vm15 = vmor %vm413_vm1, %vm414_vm9 }
  0x27   : > { %v396_v17 = vmul.f32 %v1202_v62, %v395_v9  ;;  %v465_v20 = vor.u32 1.1754944e-38, %v464_v7  ;;  %v1212_v21 = vpop.eup %1211  ;;  %vm429_vm14 = vweird.f32 %v1208_v12  ;;  %v439_v24 = vmul.f32 %v1210_v16, %v1392_v51  ;;  %v172_v51 = vld [vmem:[%s1449_s18 + $0x18] sm:$0xff] }
  0x28   : > { %v411_v23 = vmul.f32 %v1204_v2, %v410_v13  ;;  %v479_v25 = vand.u32 2147483648, %v1412_v61  ;;  %v425_v28 = vsub.f32 1.0, %v424_v18  ;;  %vm444_vm0 = vweird.f32 %v1210_v16  ;;  %vm1489_vm1 = vmor %vm428_vm4, %vm429_vm14  ;;  %v174_v18 = vld [vmem:[%s1449_s18 + $0x28] sm:$0xff] }
  0x29   : > { %v397_v26 = vadd.f32 %v1202_v62, %v396_v17  ;;  %v454_v29 = vmul.f32 %v1212_v21, %v1395_v52  ;;  %v440_v33 = vsub.f32 1.0, %v439_v24  ;;  %vm459_vm7 = vweird.f32 %v1212_v21  ;;  %v173_v17 = vld [vmem:[%s1449_s18 + $0x20] sm:$0xff] }
  0x2a   : > { %v412_v32 = vadd.f32 %v1204_v2, %v411_v23  ;;  %v1474_v35 = vadd.f32 1.0, %v1198_v54  ;;  %v1214_v37 = vpop.eup %1213  ;;  %v426_v39 = vmul.f32 %v1208_v12, %v425_v28  ;;  %1215 = vpow2.f32 %v1377_v40  ;;  %vm1507_vm4 = vmor %vm458_vm6, %vm459_vm7 }
  0x2b   : > { %v401_v36 = vsel %vm1459_vm13, %v1202_v62, %v397_v26  ;;  %v455_v43 = vsub.f32 1.0, %v454_v29  ;;  %v441_v49 = vmul.f32 %v1210_v16, %v440_v33  ;;  %v469_v54 = vmul.f32 %v1214_v37, %v1412_v61 }
  0x2c   : > { %v406_v44 = vsel %vm1405_vm2, %v1398_v55, %v401_v36  ;;  %v416_v47 = vsel %vm1468_vm15, %v1204_v2, %v412_v32  ;;  %v427_v58 = vadd.f32 %v1208_v12, %v426_v39  ;;  %vm1499_vm2 = vmor %vm443_vm5, %vm444_vm0  ;;  %v1520_v52 = vadd.f32 1.0, %v1403_v57 }
  0x2d   : > { %v421_v40 = vsel %vm1414_vm3, %v420_v0, %v416_v47  ;;  %v873_v56 = vmul.f32 %v406_v44, %v169_v31  ;;  %v456_v50 = vmul.f32 %v1212_v21, %v455_v43  ;;  %v442_v62 = vadd.f32 %v1210_v16, %v441_v49  ;;  %v215_v31 = vld [vmem:[%s1352_s15 + $0x70] sm:$0xff]  ;;  %v216_v47 = vld [vmem:[%s1352_s15 + $0x78] sm:$0xff] }
  0x2e   : > { %v874_v59 = vmul.f32 %v421_v40, %v170_v38  ;;  %v470_v63 = vsub.f32 1.0, %v469_v54  ;;  %vm474_vm3 = vweird.f32 %v1214_v37  ;;  %v431_v0 = vsel %vm1489_vm1, %v1208_v12, %v427_v58 }
  0x2f   : > { %v457_v2 = vadd.f32 %v1212_v21, %v456_v50  ;;  %1217 = vrcp.f32 %v1474_v35  ;;  %v436_v5 = vsel %vm1431_vm8, %v1422_v4, %v431_v0  ;;  %v446_v6 = vsel %vm1499_vm2, %v1210_v16, %v442_v62  ;;  %vm1537_vm5 = vmor %vm473_vm11, %vm474_vm3 }
  0x30   : > { %v1085_v3 = vpack.c.bf16 %v874_v59, %v873_v56  ;;  %v471_v7 = vmul.f32 %v1214_v37, %v470_v63  ;;  %v1216_v9 = vpop.eup %1215  ;;  %v451_v12 = vsel %vm1438_vm10, %v1435_v11, %v446_v6  ;;  %v875_v13 = vmul.f32 %v436_v5, %v171_v60 }
  0x31   : > { %v461_v57 = vsel %vm1507_vm4, %v1212_v21, %v457_v2  ;;  %v480_v4 = vor.u32 1.1754944e-38, %v479_v25  ;;  %v876_v16 = vmul.f32 %v451_v12, %v172_v51  ;;  %vm478_vm6 = vcmp.eq.f32.partialorder %v477_v15, 8.507059e+37 }
  0x32   : > { %1086 = vst [vmem:[%s1514_s22] sm:$0xff] %v1085_v3   ;;  %v466_v14 = vsel %vm1452_vm12, %v465_v20, %v461_v57  ;;  %v472_v11 = vadd.f32 %v1214_v37, %v471_v7  ;;  %v492_v21 = vand.u32 2147483647, %v1474_v35  ;;  %1219 = vrcp.f32 %v1520_v52 }
  0x33   : > { %v1060_v23 = vmul.f32 -1.442695, %v245_v46  ;;  %v1090_v24 = vpack.c.bf16 %v876_v16, %v875_v13  ;;  %v877_v20 = vmul.f32 %v466_v14, %v173_v17  ;;  %v1061_v25 = vmul.f32 -1.442695, %v246_v53  ;;  %v176_v13 = vld [vmem:[%s1449_s18 + $0x38] sm:$0xff] }
  0x34   : > { %v476_v19 = vsel %vm1537_vm5, %v1214_v37, %v472_v11  ;;  %v494_v26 = vand.u32 2147483648, %v1474_v35  ;;  %v1559_v27 = vadd.f32 1.0, %v1429_v8  ;;  %v1561_v30 = vadd.f32 1.0, %v1216_v9 }
  0x35   : > { %v1218_v61 = vpop.eup %1217  ;;  %v481_v15 = vsel %vm478_vm6, %v480_v4, %v476_v19  ;;  %1162 = vst [vmem:[%s1514_s22 + $0x8] sm:$0xff] %v1090_v24   ;;  %v507_v46 = vand.u32 2147483647, %v1520_v52  ;;  %v509_v42 = vand.u32 2147483648, %v1520_v52  ;;  %vm488_vm8 = vweird.f32 %v1474_v35  ;;  %v218_v4 = vld [vmem:[%s1352_s15 + $0x88] sm:$0xff] }
  0x36   : > { %v878_v34 = vmul.f32 %v481_v15, %v174_v18  ;;  %v484_v41 = vmul.f32 %v1218_v61, %v1474_v35  ;;  %vm489_vm9 = vweird.f32 %v1218_v61  ;;  %vm1568_vm10 = vcmp.eq.f32.partialorder %v492_v21, 8.507059e+37  ;;  %v217_v35 = vld [vmem:[%s1352_s15 + $0x80] sm:$0xff] }
  0x37   : > { %1221 = vrcp.f32 %v1559_v27  ;;  %v522_v29 = vand.u32 2147483647, %v1559_v27  ;;  %v495_v33 = vor.u32 1.1754944e-38, %v494_v26  ;;  %vm503_vm11 = vweird.f32 %v1520_v52  ;;  %vm1589_vm13 = vmor %vm488_vm8, %vm489_vm9  ;;  %v177_v26 = vld [vmem:[%s1449_s18 + $0x40] sm:$0xff] }
  0x38   : > { %v1095_v8 = vpack.c.bf16 %v878_v34, %v877_v20  ;;  %v485_v28 = vsub.f32 1.0, %v484_v41  ;;  %1223 = vrcp.f32 %v1561_v30  ;;  %v1220_v32 = vpop.eup %1219  ;;  %v524_v37 = vand.u32 2147483648, %v1559_v27 }
  0x39   : > { %v539_v38 = vand.u32 2147483648, %v1561_v30  ;;  %v499_v39 = vmul.f32 %v1220_v32, %v1520_v52  ;;  %vm1581_vm12 = vcmp.eq.f32.partialorder %v507_v46, 8.507059e+37  ;;  %v510_v44 = vor.u32 1.1754944e-38, %v509_v42  ;;  %v178_v46 = vld [vmem:[%s1449_s18 + $0x48] sm:$0xff] }
  0x3a   : > { %1163 = vst [vmem:[%s1514_s22 + $0x10] sm:$0xff] %v1095_v8   ;;  %v486_v36 = vmul.f32 %v1218_v61, %v485_v28  ;;  %vm518_vm14 = vweird.f32 %v1559_v27  ;;  %vm533_vm15 = vweird.f32 %v1561_v30  ;;  %1225 = vpow2.f32 %v1385_v45 }
  0x3b   : > { %v247_v49 = vsub.f32 1.0, %v215_v31  ;;  %v500_v40 = vsub.f32 1.0, %v499_v39  ;;  %vm504_vm0 = vweird.f32 %v1220_v32  ;;  %vm1596_vm7 = vcmp.eq.f32.partialorder %v522_v29, 8.507059e+37 }
  0x3c   : > { %v487_v54 = vadd.f32 %v1218_v61, %v486_v36  ;;  %1227 = vpow2.f32 %v1059_v22  ;;  %v525_v55 = vor.u32 1.1754944e-38, %v524_v37  ;;  %v537_v50 = vand.u32 2147483647, %v1561_v30  ;;  %vm1611_vm1 = vmor %vm503_vm11, %vm504_vm0 }
  0x3d   : > { %v1222_v58 = vpop.eup %1221  ;;  %v540_v59 = vor.u32 1.1754944e-38, %v539_v38  ;;  %v248_v60 = vsub.f32 1.0, %v216_v47  ;;  %v501_v63 = vmul.f32 %v1220_v32, %v500_v40  ;;  %v1062_v0 = vmul.f32 -1.442695, %v247_v49 }
  0x3e   : > { %v1224_v62 = vpop.eup %1223  ;;  %v491_v45 = vsel %vm1589_vm13, %v1218_v61, %v487_v54  ;;  %v514_v51 = vmul.f32 %v1222_v58, %v1559_v27  ;;  %1229 = vpow2.f32 %v1060_v23  ;;  %v249_v6 = vsub.f32 1.0, %v217_v35  ;;  %v1642_v61 = vld [vmem:[%s1352_s15 + $0x90] sm:$0xff] }
  0x3f   : > { %v496_v2 = vsel %vm1568_vm10, %v495_v33, %v491_v45  ;;  %v529_v5 = vmul.f32 %v1224_v62, %v1561_v30  ;;  %v502_v7 = vadd.f32 %v1220_v32, %v501_v63  ;;  %vm519_vm2 = vweird.f32 %v1222_v58 }
  0x40   : > { %v515_v9 = vsub.f32 1.0, %v514_v51  ;;  %1231 = vpow2.f32 %v1061_v25  ;;  %v1226_v12 = vpop.eup %1225  ;;  %v879_v17 = vmul.f32 %v496_v2, %v175_v1  ;;  %vm534_vm4 = vweird.f32 %v1224_v62  ;;  %vm1627_vm3 = vmor %vm518_vm14, %vm519_vm2  ;;  %v1684_v1 = vld [vmem:[%s1352_s15 + $0x98] sm:$0xff] }
  0x41   : > { %v530_v57 = vsub.f32 1.0, %v529_v5  ;;  %v1063_v10 = vmul.f32 -1.442695, %v248_v60  ;;  %v506_v16 = vsel %vm1611_vm1, %v1220_v32, %v502_v7  ;;  %v1620_v14 = vadd.f32 1.0, %v1226_v12  ;;  %vm1636_vm5 = vmor %vm533_vm15, %vm534_vm4 }
  0x42   : > { %v1228_v52 = vpop.eup %1227  ;;  %v516_v18 = vmul.f32 %v1222_v58, %v515_v9  ;;  %1233 = vpow2.f32 %v1062_v0  ;;  %v511_v11 = vsel %vm1581_vm12, %v510_v44, %v506_v16  ;;  %v250_v25 = vsub.f32 1.0, %v218_v4 }
  0x43   : > { %v531_v22 = vmul.f32 %v1224_v62, %v530_v57  ;;  %v1631_v23 = vadd.f32 1.0, %v1228_v52  ;;  %1235 = vpow2.f32 %v1063_v10  ;;  %v880_v24 = vmul.f32 %v511_v11, %v176_v13  ;;  %v179_v52 = vld [vmem:[%s1449_s18 + $0x50] sm:$0xff] }
  0x44   : > { %v517_v19 = vadd.f32 %v1222_v58, %v516_v18  ;;  %1237 = vrcp.f32 %v1620_v14  ;;  %v1230_v15 = vpop.eup %1229  ;;  %vm538_vm6 = vcmp.eq.f32.partialorder %v537_v50, 8.507059e+37  ;;  %v552_v34 = vand.u32 2147483647, %v1620_v14 }
  0x45   : > { %v532_v27 = vadd.f32 %v1224_v62, %v531_v22  ;;  %1239 = vrcp.f32 %v1631_v23  ;;  %v1100_v30 = vpack.c.bf16 %v880_v24, %v879_v17  ;;  %v554_v53 = vand.u32 2147483648, %v1620_v14  ;;  %v180_v22 = vld [vmem:[%s1449_s18 + $0x58] sm:$0xff] }
  0x46   : > { %v1232_v41 = vpop.eup %1231  ;;  %v521_v42 = vsel %vm1627_vm3, %v1222_v58, %v517_v19  ;;  %v567_v8 = vand.u32 2147483647, %v1631_v23  ;;  %v1064_v31 = vmul.f32 -1.442695, %v249_v6  ;;  %v251_v32 = vsub.f32 1.0, %v1642_v61 }
  0x47   : > { %v526_v28 = vsel %vm1596_vm7, %v525_v55, %v521_v42  ;;  %v536_v29 = vsel %vm1636_vm5, %v1224_v62, %v532_v27  ;;  %1164 = vst [vmem:[%s1514_s22 + $0x18] sm:$0xff] %v1100_v30   ;;  %vm548_vm8 = vweird.f32 %v1620_v14  ;;  %v1659_v36 = vmul.f32 -1.442695, %v250_v25 }
  0x48   : > { %v1234_v33 = vpop.eup %1233  ;;  %v541_v37 = vsel %vm538_vm6, %v540_v59, %v536_v29  ;;  %v881_v38 = vmul.f32 %v526_v28, %v177_v26  ;;  %vm563_vm9 = vweird.f32 %v1631_v23  ;;  %v1662_v44 = vadd.f32 1.0, %v1230_v15 }
  0x49   : > { %v1236_v39 = vpop.eup %1235  ;;  %v882_v43 = vmul.f32 %v541_v37, %v178_v46  ;;  %v1664_v47 = vadd.f32 1.0, %v1232_v41  ;;  %vm1666_vm10 = vcmp.eq.f32.partialorder %v552_v34, 8.507059e+37  ;;  %v555_v54 = vor.u32 1.1754944e-38, %v554_v53 }
  0x4a   : > { %v1238_v48 = vpop.eup %1237  ;;  %vm1670_vm11 = vcmp.eq.f32.partialorder %v567_v8, 8.507059e+37  ;;  %v569_v56 = vand.u32 2147483648, %v1631_v23  ;;  %1241 = vrcp.f32 %v1662_v44  ;;  %v1677_v50 = vadd.f32 1.0, %v1234_v33 }
  0x4b   : > { %v1240_v35 = vpop.eup %1239  ;;  %v1105_v58 = vpack.c.bf16 %v882_v43, %v881_v38  ;;  %v544_v55 = vmul.f32 %v1238_v48, %v1620_v14  ;;  %v582_v60 = vand.u32 2147483647, %v1662_v44  ;;  %v1681_v62 = vadd.f32 1.0, %v1236_v39  ;;  %v181_v43 = vld [vmem:[%s1449_s18 + $0x60] sm:$0xff]  ;;  %v184_v14 = vld [vmem:[%s1449_s18 + $0x78] sm:$0xff] }
  0x4c   : > { %v559_v59 = vmul.f32 %v1240_v35, %v1631_v23  ;;  %1243 = vpow2.f32 %v1064_v31  ;;  %vm549_vm12 = vweird.f32 %v1238_v48  ;;  %v584_v63 = vand.u32 2147483648, %v1662_v44 }
  0x4d   : > { %1165 = vst [vmem:[%s1514_s22 + $0x20] sm:$0xff] %v1105_v58   ;;  %v545_v45 = vsub.f32 1.0, %v544_v55  ;;  %1245 = vrcp.f32 %v1664_v47  ;;  %vm564_vm13 = vweird.f32 %v1240_v35  ;;  %v597_v0 = vand.u32 2147483647, %v1664_v47  ;;  %vm1695_vm14 = vmor %vm548_vm8, %vm549_vm12  ;;  %v185_v55 = vld [vmem:[%s1449_s18 + $0x80] sm:$0xff] }
  0x4e   : > { %v560_v51 = vsub.f32 1.0, %v559_v59  ;;  %v599_v2 = vand.u32 2147483648, %v1664_v47  ;;  %v570_v5 = vor.u32 1.1754944e-38, %v569_v56  ;;  %1247 = vrcp.f32 %v1677_v50  ;;  %vm1707_vm1 = vmor %vm563_vm9, %vm564_vm13 }
  0x4f   : > { %v546_v3 = vmul.f32 %v1238_v48, %v545_v45  ;;  %v252_v6 = vsub.f32 1.0, %v1684_v1  ;;  %vm578_vm15 = vweird.f32 %v1662_v44  ;;  %vm1700_vm0 = vcmp.eq.f32.partialorder %v582_v60, 8.507059e+37 }
  0x50   : > { %v561_v9 = vmul.f32 %v1240_v35, %v560_v51  ;;  %vm593_vm7 = vweird.f32 %v1664_v47  ;;  %v1242_v13 = vpop.eup %1241  ;;  %v585_v10 = vor.u32 1.1754944e-38, %v584_v63  ;;  %vm608_vm2 = vweird.f32 %v1677_v50 }
  0x51   : > { %v547_v17 = vadd.f32 %v1238_v48, %v546_v3  ;;  %1249 = vrcp.f32 %v1681_v62  ;;  %v574_v18 = vmul.f32 %v1242_v13, %v1662_v44  ;;  %vm1715_vm4 = vcmp.eq.f32.partialorder %v597_v0, 8.507059e+37 }
  0x52   : > { %v1244_v4 = vpop.eup %1243  ;;  %v562_v16 = vadd.f32 %v1240_v35, %v561_v9  ;;  %v600_v11 = vor.u32 1.1754944e-38, %v599_v2  ;;  %vm579_vm3 = vweird.f32 %v1242_v13  ;;  %v612_v24 = vand.u32 2147483647, %v1677_v50  ;;  %v222_v2 = vld [vmem:[%s1352_s15 + $0xa8] sm:$0xff] }
  0x53   : > { %v1246_v21 = vpop.eup %1245  ;;  %v551_v23 = vsel %vm1695_vm14, %v1238_v48, %v547_v17  ;;  %v614_v19 = vand.u32 2147483648, %v1677_v50  ;;  %v575_v15 = vsub.f32 1.0, %v574_v18  ;;  %vm623_vm6 = vweird.f32 %v1681_v62  ;;  %vm1736_vm8 = vmor %vm578_vm15, %vm579_vm3 }
  0x54   : > { %v556_v20 = vsel %vm1666_vm10, %v555_v54, %v551_v23  ;;  %v566_v25 = vsel %vm1707_vm1, %v1240_v35, %v562_v16  ;;  %v589_v26 = vmul.f32 %v1246_v21, %v1664_v47  ;;  %v1248_v27 = vpop.eup %1247  ;;  %vm594_vm5 = vweird.f32 %v1246_v21  ;;  %v182_v35 = vld [vmem:[%s1449_s18 + $0x68] sm:$0xff]  ;;  %v223_v23 = vld [vmem:[%s1352_s15 + $0xb0] sm:$0xff] }
  0x55   : > { %v571_v34 = vsel %vm1670_vm11, %v570_v5, %v566_v25  ;;  %v883_v41 = vmul.f32 %v556_v20, %v179_v52  ;;  %v576_v46 = vmul.f32 %v1242_v13, %v575_v15  ;;  %v604_v53 = vmul.f32 %v1248_v27, %v1677_v50  ;;  %vm1748_vm10 = vmor %vm593_vm7, %vm594_vm5  ;;  %v221_v50 = vld [vmem:[%s1352_s15 + $0xa0] sm:$0xff]  ;;  %v224_v20 = vld [vmem:[%s1352_s15 + $0xb8] sm:$0xff] }
  0x56   : > { %v884_v30 = vmul.f32 %v571_v34, %v180_v22  ;;  %v590_v42 = vsub.f32 1.0, %v589_v26  ;;  %vm609_vm9 = vweird.f32 %v1248_v27  ;;  %v627_v29 = vand.u32 2147483647, %v1681_v62 }
  0x57   : > { %v1250_v8 = vpop.eup %1249  ;;  %1251 = vpow2.f32 %v1659_v36  ;;  %v1742_v31 = vadd.f32 1.0, %v1244_v4  ;;  %v577_v37 = vadd.f32 %v1242_v13, %v576_v46  ;;  %v605_v39 = vsub.f32 1.0, %v604_v53  ;;  %vm1768_vm12 = vmor %vm608_vm2, %vm609_vm9 }
  0x58   : > { %v1110_v33 = vpack.c.bf16 %v884_v30, %v883_v41  ;;  %v591_v38 = vmul.f32 %v1246_v21, %v590_v42  ;;  %vm1752_vm11 = vcmp.eq.f32.partialorder %v612_v24, 8.507059e+37  ;;  %v619_v36 = vmul.f32 %v1250_v8, %v1681_v62 }
  0x59   : > { %v629_v49 = vand.u32 2147483648, %v1681_v62  ;;  %1253 = vrcp.f32 %v1742_v31  ;;  %v581_v47 = vsel %vm1736_vm8, %v1242_v13, %v577_v37  ;;  %v606_v40 = vmul.f32 %v1248_v27, %v605_v39 }
  0x5a   : > { %1166 = vst [vmem:[%s1514_s22 + $0x28] sm:$0xff] %v1110_v33   ;;  %v592_v54 = vadd.f32 %v1246_v21, %v591_v38  ;;  %v615_v56 = vor.u32 1.1754944e-38, %v614_v19  ;;  %v586_v58 = vsel %vm1700_vm0, %v585_v10, %v581_v47  ;;  %v620_v59 = vsub.f32 1.0, %v619_v36  ;;  %v225_v38 = vld [vmem:[%s1352_s15 + $0xc0] sm:$0xff] }
  0x5b   : > { %vm624_vm13 = vweird.f32 %v1250_v8  ;;  %v1066_v60 = vmul.f32 -1.442695, %v251_v32  ;;  %v885_v63 = vmul.f32 %v586_v58, %v181_v43  ;;  %v607_v51 = vadd.f32 %v1248_v27, %v606_v40  ;;  %v183_v32 = vld [vmem:[%s1449_s18 + $0x70] sm:$0xff]  ;;  %v226_v40 = vld [vmem:[%s1352_s15 + $0xc8] sm:$0xff] }
  0x5c   : > { %v596_v45 = vsel %vm1748_vm10, %v1246_v21, %v592_v54  ;;  %vm1776_vm14 = vcmp.eq.f32.partialorder %v627_v29, 8.507059e+37  ;;  %v621_v7 = vmul.f32 %v1250_v8, %v620_v59  ;;  %v630_v9 = vor.u32 1.1754944e-38, %v629_v49  ;;  %vm1790_vm15 = vmor %vm623_vm6, %vm624_vm13 }
  0x5d   : > { %v1252_v3 = vpop.eup %1251  ;;  %v601_v5 = vsel %vm1715_vm4, %v600_v11, %v596_v45  ;;  %1255 = vpow2.f32 %v1066_v60  ;;  %v611_v12 = vsel %vm1768_vm12, %v1248_v27, %v607_v51  ;;  %v1067_v57 = vmul.f32 -1.442695, %v252_v6 }
  0x5e   : > { %v886_v61 = vmul.f32 %v601_v5, %v182_v35  ;;  %v1794_v17 = vadd.f32 1.0, %v1252_v3  ;;  %v616_v4 = vsel %vm1752_vm11, %v615_v56, %v611_v12  ;;  %v622_v52 = vadd.f32 %v1250_v8, %v621_v7 }
  0x5f   : > { %v1254_v10 = vpop.eup %1253  ;;  %v253_v16 = vsub.f32 1.0, %v221_v50  ;;  %v254_v18 = vsub.f32 1.0, %v222_v2  ;;  %vm638_vm0 = vweird.f32 %v1742_v31  ;;  %v642_v21 = vand.u32 2147483647, %v1742_v31 }
  0x60   : > { %v1115_v62 = vpack.c.bf16 %v886_v61, %v885_v63  ;;  %v634_v11 = vmul.f32 %v1254_v10, %v1742_v31  ;;  %v626_v1 = vsel %vm1790_vm15, %v1250_v8, %v622_v52  ;;  %v887_v6 = vmul.f32 %v616_v4, %v183_v32  ;;  %v186_v52 = vld [vmem:[%s1449_s18 + $0x88] sm:$0xff] }
  0x61   : > { %v644_v22 = vand.u32 2147483648, %v1742_v31  ;;  %1257 = vrcp.f32 %v1794_v17  ;;  %v631_v24 = vsel %vm1776_vm14, %v630_v9, %v626_v1  ;;  %vm639_vm7 = vweird.f32 %v1254_v10  ;;  %v189_v9 = vld [vmem:[%s1449_s18 + $0xa0] sm:$0xff] }
  0x62   : > { %1167 = vst [vmem:[%s1514_s22 + $0x30] sm:$0xff] %v1115_v62   ;;  %v635_v19 = vsub.f32 1.0, %v634_v11  ;;  %1259 = vpow2.f32 %v1067_v57  ;;  %v888_v15 = vmul.f32 %v631_v24, %v184_v14  ;;  %v657_v26 = vand.u32 2147483647, %v1794_v17  ;;  %vm1819_vm1 = vmor %vm638_vm0, %vm639_vm7 }
  0x63   : > { %v1256_v25 = vpop.eup %1255  ;;  %v1068_v27 = vmul.f32 -1.442695, %v253_v16  ;;  %v1069_v34 = vmul.f32 -1.442695, %v254_v18  ;;  %v659_v30 = vand.u32 2147483648, %v1794_v17  ;;  %v255_v42 = vsub.f32 1.0, %v223_v23 }
  0x64   : > { %v636_v41 = vmul.f32 %v1254_v10, %v635_v19  ;;  %v1815_v46 = vadd.f32 1.0, %v1256_v25  ;;  %v1120_v53 = vpack.c.bf16 %v888_v15, %v887_v6  ;;  %vm1823_vm2 = vcmp.eq.f32.partialorder %v642_v21, 8.507059e+37 }
  0x65   : > { %1261 = vpow2.f32 %v1068_v27  ;;  %v256_v29 = vsub.f32 1.0, %v224_v20  ;;  %v645_v37 = vor.u32 1.1754944e-38, %v644_v22  ;;  %vm653_vm4 = vweird.f32 %v1794_v17 }
  0x66   : > { %v637_v33 = vadd.f32 %v1254_v10, %v636_v41  ;;  %1263 = vrcp.f32 %v1815_v46  ;;  %1168 = vst [vmem:[%s1514_s22 + $0x38] sm:$0xff] %v1120_v53   ;;  %vm1831_vm3 = vcmp.eq.f32.partialorder %v657_v26, 8.507059e+37  ;;  %v1070_v43 = vmul.f32 -1.442695, %v255_v42 }
  0x67   : > { %v1258_v39 = vpop.eup %1257  ;;  %1265 = vpow2.f32 %v1069_v34  ;;  %v1071_v44 = vmul.f32 -1.442695, %v256_v29  ;;  %v660_v47 = vor.u32 1.1754944e-38, %v659_v30  ;;  %v672_v54 = vand.u32 2147483647, %v1815_v46  ;;  %v1894_v34 = vld [vmem:[%s1352_s15 + $0xd0] sm:$0xff] }
  0x68   : > { %v1260_v48 = vpop.eup %1259  ;;  %v641_v36 = vsel %vm1819_vm1, %v1254_v10, %v637_v33  ;;  %v649_v49 = vmul.f32 %v1258_v39, %v1794_v17  ;;  %v674_v35 = vand.u32 2147483648, %v1815_v46  ;;  %1267 = vpow2.f32 %v1070_v43  ;;  %v187_v43 = vld [vmem:[%s1449_s18 + $0x90] sm:$0xff] }
  0x69   : > { %v1840_v56 = vadd.f32 1.0, %v1260_v48  ;;  %v257_v58 = vsub.f32 1.0, %v225_v38  ;;  %v646_v59 = vsel %vm1823_vm2, %v645_v37, %v641_v36  ;;  %vm654_vm5 = vweird.f32 %v1258_v39 }
  0x6a   : > { %v650_v60 = vsub.f32 1.0, %v649_v49  ;;  %1269 = vpow2.f32 %v1071_v44  ;;  %vm668_vm6 = vweird.f32 %v1815_v46  ;;  %v258_v51 = vsub.f32 1.0, %v226_v40  ;;  %vm1858_vm9 = vmor %vm653_vm4, %vm654_vm5 }
  0x6b   : > { %v1262_v45 = vpop.eup %1261  ;;  %1271 = vrcp.f32 %v1840_v56  ;;  %v689_v63 = vand.u32 2147483648, %v1840_v56  ;;  %vm1849_vm8 = vcmp.eq.f32.partialorder %v672_v54, 8.507059e+37  ;;  %v687_v3 = vand.u32 2147483647, %v1840_v56 }
  0x6c   : > { %v1264_v0 = vpop.eup %1263  ;;  %v651_v50 = vmul.f32 %v1258_v39, %v650_v60  ;;  %v1854_v5 = vadd.f32 1.0, %v1262_v45  ;;  %v889_v61 = vmul.f32 %v646_v59, %v185_v55  ;;  %v675_v12 = vor.u32 1.1754944e-38, %v674_v35  ;;  %v188_v35 = vld [vmem:[%s1449_s18 + $0x98] sm:$0xff] }
  0x6d   : > { %v1266_v7 = vpop.eup %1265  ;;  %v664_v32 = vmul.f32 %v1264_v0, %v1815_v46  ;;  %v1072_v13 = vmul.f32 -1.442695, %v257_v58  ;;  %vm683_vm10 = vweird.f32 %v1840_v56  ;;  %vm669_vm11 = vweird.f32 %v1264_v0 }
  0x6e   : > { %v652_v57 = vadd.f32 %v1258_v39, %v651_v50  ;;  %v1864_v10 = vadd.f32 1.0, %v1266_v7  ;;  %1273 = vrcp.f32 %v1854_v5  ;;  %v1268_v4 = vpop.eup %1267  ;;  %v690_v17 = vor.u32 1.1754944e-38, %v689_v63  ;;  %vm1883_vm14 = vmor %vm668_vm6, %vm669_vm11 }
  0x6f   : > { %v665_v16 = vsub.f32 1.0, %v664_v32  ;;  %v1073_v18 = vmul.f32 -1.442695, %v258_v51  ;;  %vm1870_vm12 = vcmp.eq.f32.partialorder %v687_v3, 8.507059e+37  ;;  %vm698_vm13 = vweird.f32 %v1854_v5 }
  0x70   : > { %v1270_v62 = vpop.eup %1269  ;;  %v656_v14 = vsel %vm1858_vm9, %v1258_v39, %v652_v57  ;;  %v702_v21 = vand.u32 2147483647, %v1854_v5  ;;  %1275 = vrcp.f32 %v1864_v10  ;;  %v704_v23 = vand.u32 2147483648, %v1854_v5 }
  0x71   : > { %v1272_v1 = vpop.eup %1271  ;;  %v661_v6 = vsel %vm1831_vm3, %v660_v47, %v656_v14  ;;  %v666_v22 = vmul.f32 %v1264_v0, %v665_v16  ;;  %1277 = vpow2.f32 %v1072_v13  ;;  %vm713_vm15 = vweird.f32 %v1864_v10 }
  0x72   : > { %v890_v24 = vmul.f32 %v661_v6, %v186_v52  ;;  %v679_v20 = vmul.f32 %v1272_v1, %v1840_v56  ;;  %v717_v25 = vand.u32 2147483647, %v1864_v10  ;;  %vm684_vm0 = vweird.f32 %v1272_v1 }
  0x73   : > { %v667_v15 = vadd.f32 %v1264_v0, %v666_v22  ;;  %v719_v26 = vand.u32 2147483648, %v1864_v10  ;;  %v1891_v27 = vadd.f32 1.0, %v1268_v4  ;;  %v1896_v42 = vadd.f32 1.0, %v1270_v62  ;;  %vm1918_vm2 = vmor %vm683_vm10, %vm684_vm0 }
  0x74   : > { %v1274_v41 = vpop.eup %1273  ;;  %v1125_v30 = vpack.c.bf16 %v890_v24, %v889_v61  ;;  %v680_v46 = vsub.f32 1.0, %v679_v20  ;;  %1279 = vpow2.f32 %v1073_v18  ;;  %vm1901_vm7 = vcmp.eq.f32.partialorder %v702_v21, 8.507059e+37  ;;  %v228_v20 = vld [vmem:[%s1352_s15 + $0xd8] sm:$0xff] }
  0x75   : > { %v671_v53 = vsel %vm1883_vm14, %v1264_v0, %v667_v15  ;;  %v694_v8 = vmul.f32 %v1274_v41, %v1854_v5  ;;  %v705_v29 = vor.u32 1.1754944e-38, %v704_v23  ;;  %vm1906_vm1 = vcmp.eq.f32.partialorder %v717_v25, 8.507059e+37 }
  0x76   : > { %v1276_v33 = vpop.eup %1275  ;;  %1169 = vst [vmem:[%s1514_s22 + $0x40] sm:$0xff] %v1125_v30   ;;  %v681_v37 = vmul.f32 %v1272_v1, %v680_v46  ;;  %1281 = vrcp.f32 %v1891_v27  ;;  %v259_v39 = vsub.f32 1.0, %v1894_v34  ;;  %v676_v44 = vsel %vm1849_vm8, %v675_v12, %v671_v53  ;;  %v229_v30 = vld [vmem:[%s1352_s15 + $0xe0] sm:$0xff]  ;;  %v191_v53 = vld [vmem:[%s1449_s18 + $0xb0] sm:$0xff] }
  0x77   : > { %v1278_v31 = vpop.eup %1277  ;;  %v695_v36 = vsub.f32 1.0, %v694_v8  ;;  %vm699_vm4 = vweird.f32 %v1274_v41  ;;  %v709_v49 = vmul.f32 %v1276_v33, %v1864_v10  ;;  %v720_v54 = vor.u32 1.1754944e-38, %v719_v26 }
  0x78   : > { %v682_v47 = vadd.f32 %v1272_v1, %v681_v37  ;;  %v732_v40 = vand.u32 2147483647, %v1891_v27  ;;  %1283 = vrcp.f32 %v1896_v42  ;;  %vm714_vm3 = vweird.f32 %v1276_v33  ;;  %vm1931_vm6 = vmor %vm698_vm13, %vm699_vm4 }
  0x79   : > { %v696_v58 = vmul.f32 %v1274_v41, %v695_v36  ;;  %v710_v55 = vsub.f32 1.0, %v709_v49  ;;  %vm728_vm5 = vweird.f32 %v1891_v27  ;;  %v891_v60 = vmul.f32 %v676_v44, %v187_v43  ;;  %vm1944_vm9 = vmor %vm713_vm15, %vm714_vm3  ;;  %v230_v43 = vld [vmem:[%s1352_s15 + $0xe8] sm:$0xff]  ;;  %v192_v49 = vld [vmem:[%s1449_s18 + $0xb8] sm:$0xff] }
  0x7a   : > { %v1280_v56 = vpop.eup %1279  ;;  %v686_v59 = vsel %vm1918_vm2, %v1272_v1, %v682_v47  ;;  %v734_v63 = vand.u32 2147483648, %v1891_v27  ;;  %vm743_vm8 = vweird.f32 %v1896_v42  ;;  %v747_v2 = vand.u32 2147483647, %v1896_v42 }
  0x7b   : > { %v691_v51 = vsel %vm1870_vm12, %v690_v17, %v686_v59  ;;  %v697_v0 = vadd.f32 %v1274_v41, %v696_v58  ;;  %v711_v50 = vmul.f32 %v1276_v33, %v710_v55  ;;  %vm1948_vm10 = vcmp.eq.f32.partialorder %v732_v40, 8.507059e+37  ;;  %v190_v17 = vld [vmem:[%s1449_s18 + $0xa8] sm:$0xff]  ;;  %v231_v55 = vld [vmem:[%s1352_s15 + $0xf0] sm:$0xff] }
  0x7c   : > { %v1282_v3 = vpop.eup %1281  ;;  %v892_v7 = vmul.f32 %v691_v51, %v188_v35  ;;  %v749_v32 = vand.u32 2147483648, %v1896_v42  ;;  %v1953_v12 = vadd.f32 1.0, %v1278_v31  ;;  %v1958_v10 = vadd.f32 1.0, %v1280_v56  ;;  %v232_v56 = vld [vmem:[%s1352_s15 + $0xf8] sm:$0xff] }
  0x7d   : > { %v701_v13 = vsel %vm1931_vm6, %v1274_v41, %v697_v0  ;;  %v712_v57 = vadd.f32 %v1276_v33, %v711_v50  ;;  %v724_v4 = vmul.f32 %v1282_v3, %v1891_v27  ;;  %vm729_vm11 = vweird.f32 %v1282_v3 }
  0x7e   : > { %v1284_v52 = vpop.eup %1283  ;;  %v1130_v16 = vpack.c.bf16 %v892_v7, %v891_v60  ;;  %v706_v18 = vsel %vm1901_vm7, %v705_v29, %v701_v13  ;;  %1285 = vrcp.f32 %v1953_v12  ;;  %v735_v6 = vor.u32 1.1754944e-38, %v734_v63  ;;  %vm1976_vm13 = vmor %vm728_vm5, %vm729_vm11 }
  0x7f   : > { %v716_v62 = vsel %vm1944_vm9, %v1276_v33, %v712_v57  ;;  %v893_v14 = vmul.f32 %v706_v18, %v189_v9  ;;  %v725_v11 = vsub.f32 1.0, %v724_v4  ;;  %v739_v21 = vmul.f32 %v1284_v52, %v1896_v42 }
  0x80   : > { %1170 = vst [vmem:[%s1514_s22 + $0x48] sm:$0xff] %v1130_v16   ;;  %v721_v1 = vsel %vm1906_vm1, %v720_v54, %v716_v62  ;;  %vm744_vm12 = vweird.f32 %v1284_v52  ;;  %v764_v22 = vand.u32 2147483648, %v1953_v12  ;;  %1287 = vrcp.f32 %v1958_v10 }
  0x81   : > { %v894_v23 = vmul.f32 %v721_v1, %v190_v17  ;;  %v726_v24 = vmul.f32 %v1282_v3, %v725_v11  ;;  %v740_v19 = vsub.f32 1.0, %v739_v21  ;;  %vm1980_vm14 = vcmp.eq.f32.partialorder %v747_v2, 8.507059e+37  ;;  %vm1991_vm0 = vmor %vm743_vm8, %vm744_vm12  ;;  %v194_v21 = vld [vmem:[%s1449_s18 + $0xc8] sm:$0xff] }
  0x82   : > { %v750_v26 = vor.u32 1.1754944e-38, %v749_v32  ;;  %vm758_vm15 = vweird.f32 %v1953_v12  ;;  %v762_v41 = vand.u32 2147483647, %v1953_v12  ;;  %v765_v28 = vor.u32 1.1754944e-38, %v764_v22 }
  0x83   : > { %v1135_v46 = vpack.c.bf16 %v894_v23, %v893_v14  ;;  %v727_v27 = vadd.f32 %v1282_v3, %v726_v24  ;;  %v741_v8 = vmul.f32 %v1284_v52, %v740_v19  ;;  %vm773_vm7 = vweird.f32 %v1958_v10 }
  0x84   : > { %v1286_v29 = vpop.eup %1285  ;;  %v777_v37 = vand.u32 2147483647, %v1958_v10  ;;  %v260_v38 = vsub.f32 1.0, %v228_v20  ;;  %v1074_v31 = vmul.f32 -1.442695, %v259_v39  ;;  %v261_v36 = vsub.f32 1.0, %v229_v30 }
  0x85   : > { %1171 = vst [vmem:[%s1514_s22 + $0x50] sm:$0xff] %v1135_v46   ;;  %v731_v44 = vsel %vm1976_vm13, %v1282_v3, %v727_v27  ;;  %v742_v42 = vadd.f32 %v1284_v52, %v741_v8  ;;  %v754_v48 = vmul.f32 %v1286_v29, %v1953_v12  ;;  %vm759_vm1 = vweird.f32 %v1286_v29  ;;  %v193_v12 = vld [vmem:[%s1449_s18 + $0xc0] sm:$0xff] }
  0x86   : > { %v736_v47 = vsel %vm1948_vm10, %v735_v6, %v731_v44  ;;  %1289 = vpow2.f32 %v1074_v31  ;;  %v1075_v54 = vmul.f32 -1.442695, %v260_v38  ;;  %v1288_v34 = vpop.eup %1287  ;;  %v262_v58 = vsub.f32 1.0, %v230_v43  ;;  %vm2018_vm2 = vmor %vm758_vm15, %vm759_vm1 }
  0x87   : > { %v746_v39 = vsel %vm1991_vm0, %v1284_v52, %v742_v42  ;;  %v895_v40 = vmul.f32 %v736_v47, %v191_v53  ;;  %v755_v35 = vsub.f32 1.0, %v754_v48  ;;  %v769_v60 = vmul.f32 %v1288_v34, %v1958_v10 }
  0x88   : > { %v751_v59 = vsel %vm1980_vm14, %v750_v26, %v746_v39  ;;  %v779_v45 = vand.u32 2147483648, %v1958_v10  ;;  %1291 = vpow2.f32 %v1075_v54  ;;  %v1076_v0 = vmul.f32 -1.442695, %v261_v36 }
  0x89   : > { %v896_v63 = vmul.f32 %v751_v59, %v192_v49  ;;  %v756_v51 = vmul.f32 %v1286_v29, %v755_v35  ;;  %v1077_v50 = vmul.f32 -1.442695, %v262_v58  ;;  %v770_v3 = vsub.f32 1.0, %v769_v60 }
  0x8a   : > { %vm774_vm4 = vweird.f32 %v1288_v34  ;;  %v263_v7 = vsub.f32 1.0, %v231_v55  ;;  %v264_v9 = vsub.f32 1.0, %v232_v56  ;;  %vm763_vm3 = vcmp.eq.f32.partialorder %v762_v41, 8.507059e+37 }
  0x8b   : > { %v1140_v5 = vpack.c.bf16 %v896_v63, %v895_v40  ;;  %v757_v61 = vadd.f32 %v1286_v29, %v756_v51  ;;  %1293 = vpow2.f32 %v1076_v0  ;;  %v771_v13 = vmul.f32 %v1288_v34, %v770_v3  ;;  %vm2029_vm5 = vmor %vm773_vm7, %vm774_vm4  ;;  %v195_v63 = vld [vmem:[%s1449_s18 + $0xd0] sm:$0xff] }
  0x8c   : > { %v1290_v32 = vpop.eup %1289  ;;  %1295 = vpow2.f32 %v1077_v50  ;;  %v1078_v57 = vmul.f32 -1.442695, %v263_v7  ;;  %v1079_v4 = vmul.f32 -1.442695, %v264_v9  ;;  %v780_v17 = vor.u32 1.1754944e-38, %v779_v45 }
  0x8d   : > { %1172 = vst [vmem:[%s1514_s22 + $0x58] sm:$0xff] %v1140_v5   ;;  %v761_v52 = vsel %vm2018_vm2, %v1286_v29, %v757_v61  ;;  %v387_v18 = vadd.f32 1.0, %v1290_v32  ;;  %v772_v11 = vadd.f32 %v1288_v34, %v771_v13  ;;  %vm778_vm6 = vcmp.eq.f32.partialorder %v777_v37, 8.507059e+37  ;;  %v196_v5 = vld [vmem:[%s1449_s18 + $0xd8] sm:$0xff] }
  0x8e   : > { %v1292_v62 = vpop.eup %1291  ;;  %v766_v14 = vsel %vm763_vm3, %v765_v28, %v761_v52  ;;  %1297 = vpow2.f32 %v1078_v57 }
  0x8f   : > { %v388_v1 = vadd.f32 1.0, %v1292_v62  ;;  %1299 = vrcp.f32 %v387_v18  ;;  %v776_v6 = vsel %vm2029_vm5, %v1288_v34, %v772_v11  ;;  %v897_v22 = vmul.f32 %v766_v14, %v193_v12 }
  0x90   : > { %1301 = vpow2.f32 %v1079_v4  ;;  %v781_v23 = vsel %vm778_vm6, %v780_v17, %v776_v6  ;;  %v792_v20 = vand.u32 2147483647, %v387_v18  ;;  %v794_v25 = vand.u32 2147483648, %v387_v18 }
  0x91   : > { %v1294_v10 = vpop.eup %1293  ;;  %1303 = vrcp.f32 %v388_v1  ;;  %v898_v19 = vmul.f32 %v781_v23, %v194_v21  ;;  %v807_v15 = vand.u32 2147483647, %v388_v1  ;;  %vm788_vm8 = vweird.f32 %v387_v18  ;;  %v197_v23 = vld [vmem:[%s1449_s18 + $0xe0] sm:$0xff] }
  0x92   : > { %v1296_v24 = vpop.eup %1295  ;;  %v2036_v26 = vadd.f32 1.0, %v1294_v10  ;;  %v809_v27 = vand.u32 2147483648, %v388_v1  ;;  %vm2042_vm9 = vcmp.eq.f32.partialorder %v792_v20, 8.507059e+37  ;;  %vm803_vm10 = vweird.f32 %v388_v1 }
  0x93   : > { %v2038_v41 = vadd.f32 1.0, %v1296_v24  ;;  %v1145_v46 = vpack.c.bf16 %v898_v19, %v897_v22  ;;  %v795_v37 = vor.u32 1.1754944e-38, %v794_v25  ;;  %vm2047_vm11 = vcmp.eq.f32.partialorder %v807_v15, 8.507059e+37  ;;  %v198_v15 = vld [vmem:[%s1449_s18 + $0xe8] sm:$0xff] }
  0x94   : > { %v1298_v30 = vpop.eup %1297  ;;  %1305 = vrcp.f32 %v2036_v26  ;;  %v822_v31 = vand.u32 2147483647, %v2036_v26  ;;  %v824_v43 = vand.u32 2147483648, %v2036_v26  ;;  %v810_v36 = vor.u32 1.1754944e-38, %v809_v27 }
  0x95   : > { %v1300_v53 = vpop.eup %1299  ;;  %1173 = vst [vmem:[%s1514_s22 + $0x60] sm:$0xff] %v1145_v46   ;;  %1307 = vrcp.f32 %v2038_v41  ;;  %v2053_v48 = vadd.f32 1.0, %v1298_v30  ;;  %v837_v49 = vand.u32 2147483647, %v2038_v41  ;;  %v839_v47 = vand.u32 2147483648, %v2038_v41 }
  0x96   : > { %v1302_v8 = vpop.eup %1301  ;;  %v784_v28 = vmul.f32 %v1300_v53, %v387_v18  ;;  %vm789_vm12 = vweird.f32 %v1300_v53  ;;  %vm818_vm15 = vweird.f32 %v2036_v26  ;;  %vm2066_vm0 = vcmp.eq.f32.partialorder %v822_v31, 8.507059e+37  ;;  %v199_v31 = vld [vmem:[%s1449_s18 + $0xf0] sm:$0xff] }
  0x97   : > { %v1304_v33 = vpop.eup %1303  ;;  %v2057_v54 = vadd.f32 1.0, %v1302_v8  ;;  %1309 = vrcp.f32 %v2053_v48  ;;  %vm2061_vm14 = vmor %vm788_vm8, %vm789_vm12  ;;  %vm833_vm7 = vweird.f32 %v2038_v41  ;;  %v825_v45 = vor.u32 1.1754944e-38, %v824_v43 }
  0x98   : > { %v785_v44 = vsub.f32 1.0, %v784_v28  ;;  %v799_v42 = vmul.f32 %v1304_v33, %v388_v1  ;;  %vm804_vm13 = vweird.f32 %v1304_v33  ;;  %vm2080_vm2 = vcmp.eq.f32.partialorder %v837_v49, 8.507059e+37 }
  0x99   : > { %1311 = vrcp.f32 %v2057_v54  ;;  %vm2075_vm1 = vmor %vm803_vm10, %vm804_vm13  ;;  %v840_v2 = vor.u32 1.1754944e-38, %v839_v47  ;;  %vm848_vm4 = vweird.f32 %v2053_v48  ;;  %v852_v13 = vand.u32 2147483647, %v2053_v48 }
  0x9a   : > { %v786_v34 = vmul.f32 %v1300_v53, %v785_v44  ;;  %v800_v39 = vsub.f32 1.0, %v799_v42  ;;  %v1306_v40 = vpop.eup %1305  ;;  %v854_v16 = vand.u32 2147483648, %v2053_v48  ;;  %vm863_vm8 = vweird.f32 %v2057_v54  ;;  %v200_v42 = vld [vmem:[%s1449_s18 + $0xf8] sm:$0xff] }
  0x9b   : > { %v1308_v55 = vpop.eup %1307  ;;  %v814_v60 = vmul.f32 %v1306_v40, %v2036_v26  ;;  %vm819_vm3 = vweird.f32 %v1306_v40  ;;  %v867_v10 = vand.u32 2147483647, %v2057_v54  ;;  %v869_v20 = vand.u32 2147483648, %v2057_v54 }
  0x9c   : > { %v787_v56 = vadd.f32 %v1300_v53, %v786_v34  ;;  %v801_v59 = vmul.f32 %v1304_v33, %v800_v39  ;;  %v829_v0 = vmul.f32 %v1308_v55, %v2038_v41  ;;  %vm834_vm5 = vweird.f32 %v1308_v55  ;;  %vm2098_vm6 = vmor %vm818_vm15, %vm819_vm3 }
  0x9d   : > { %v815_v9 = vsub.f32 1.0, %v814_v60  ;;  %v1310_v57 = vpop.eup %1309  ;;  %v855_v28 = vor.u32 1.1754944e-38, %v854_v16  ;;  %vm853_vm13 = vcmp.eq.f32.partialorder %v852_v13, 8.507059e+37  ;;  %v870_v38 = vor.u32 1.1754944e-38, %v869_v20 }
  0x9e   : > { %v791_v3 = vsel %vm2061_vm14, %v1300_v53, %v787_v56  ;;  %v802_v7 = vadd.f32 %v1304_v33, %v801_v59  ;;  %v830_v32 = vsub.f32 1.0, %v829_v0  ;;  %v844_v11 = vmul.f32 %v1310_v57, %v2053_v48 }
  0x9f   : > { %v796_v61 = vsel %vm2042_vm9, %v795_v37, %v791_v3  ;;  %v816_v52 = vmul.f32 %v1306_v40, %v815_v9  ;;  %v1312_v17 = vpop.eup %1311  ;;  %vm2107_vm9 = vmor %vm833_vm7, %vm834_vm5  ;;  %vm849_vm10 = vweird.f32 %v1310_v57  ;;  %vm868_vm15 = vcmp.eq.f32.partialorder %v867_v10, 8.507059e+37 }
  0xa0   : > { %v806_v4 = vsel %vm2075_vm1, %v1304_v33, %v802_v7  ;;  %v899_v12 = vmul.f32 %v796_v61, %v195_v63  ;;  %v831_v14 = vmul.f32 %v1308_v55, %v830_v32  ;;  %v859_v22 = vmul.f32 %v1312_v17, %v2057_v54  ;;  %vm850_vm12 = vmor %vm848_vm4, %vm849_vm10 }
  0xa1   : > { %v811_v18 = vsel %vm2047_vm11, %v810_v36, %v806_v4  ;;  %v817_v1 = vadd.f32 %v1306_v40, %v816_v52  ;;  %v845_v19 = vsub.f32 1.0, %v844_v11  ;;  %vm864_vm11 = vweird.f32 %v1312_v17 }
  0xa2   : > { %v900_v21 = vmul.f32 %v811_v18, %v196_v5  ;;  %v832_v24 = vadd.f32 %v1308_v55, %v831_v14  ;;  %v860_v41 = vsub.f32 1.0, %v859_v22  ;;  %vm865_vm14 = vmor %vm863_vm8, %vm864_vm11 }
  0xa3   : > { %v821_v26 = vsel %vm2098_vm6, %v1306_v40, %v817_v1  ;;  %v846_v53 = vmul.f32 %v1310_v57, %v845_v19 }
  0xa4   : > { %v1150_v25 = vpack.c.bf16 %v900_v21, %v899_v12  ;;  %v826_v30 = vsel %vm2066_vm0, %v825_v45, %v821_v26  ;;  %v836_v46 = vsel %vm2107_vm9, %v1308_v55, %v832_v24  ;;  %v861_v29 = vmul.f32 %v1312_v17, %v860_v41 }
  0xa5   : > { %v841_v27 = vsel %vm2080_vm2, %v840_v2, %v836_v46  ;;  %v901_v8 = vmul.f32 %v826_v30, %v197_v23  ;;  %v847_v37 = vadd.f32 %v1310_v57, %v846_v53 }
  0xa6   : > { %1174 = vst [vmem:[%s1514_s22 + $0x68] sm:$0xff] %v1150_v25   ;;  %v902_v33 = vmul.f32 %v841_v27, %v198_v15  ;;  %v862_v43 = vadd.f32 %v1312_v17, %v861_v29 }
  0xa7   : > { %v851_v36 = vsel %vm850_vm12, %v1310_v57, %v847_v37 }
  0xa8   : > { %v1155_v44 = vpack.c.bf16 %v902_v33, %v901_v8  ;;  %v856_v49 = vsel %vm853_vm13, %v855_v28, %v851_v36  ;;  %v866_v48 = vsel %vm865_vm14, %v1312_v17, %v862_v43 }
  0xa9   : > { %v871_v47 = vsel %vm868_vm15, %v870_v38, %v866_v48  ;;  %v903_v34 = vmul.f32 %v856_v49, %v199_v31 }
  0xaa   : > { %1175 = vst [vmem:[%s1514_s22 + $0x70] sm:$0xff] %v1155_v44   ;;  %v904_v39 = vmul.f32 %v871_v47, %v200_v42 }
  0xac   : > { %v1160_v40 = vpack.c.bf16 %v904_v39, %v903_v34 }
  0xae   : > { %1176 = vst [vmem:[%s1514_s22 + $0x78] sm:$0xff] %v1160_v40  }
  0xaf PF: > { %s12_s9 = sadd.s32 1, %s1319_s9  }
  0xb0   : > { %p9_p4 = scmp.ge.s32.totalorder %s12_s9, 4  }
  0xb2   :  { %11 = sbr.rel (!%p9_p4) target bundleno = 1 (0x1), region = 61 }

// kernel: ff2_forward.4
= control target key start
LH: loop header
LB: loop body
LE: loop exit
PB: predicated region body
PF: predicated region fallthrough
CT: control target
= control target key end

     0   :  { %s2315_s12 = smov 0   ;;  %s2317_s13 = smov 0   ;;  %s2776_s0 = inlined_call_operand.vmem [shape: bf16[512,1536], index: 0, kind: input, shape index: {}]   ;;  %s2777_s1 = inlined_call_operand.vmem [shape: bf16[1536,128], index: 1, kind: input, shape index: {}]   ;;  %s2778_s2 = inlined_call_operand.vmem [shape: f32[1,128], index: 2, kind: input, shape index: {}]   ;;  %s2779_s3 = inlined_call_operand.vmem [shape: f32[512,128], index: 3, kind: output, shape index: {}]  }
   0x1   :  { %s2319_s14 = smov 0   ;;  %s2321_s15 = smov 0  }
   0x2   :  { %s2323_s16 = smov 0   ;;  %s2325_s17 = smov 0  }
   0x3   :  { %s2327_s18 = smov 0  }
   0x4 LB: > { %s22_s19 = sadd.s32 1, %s2284_s16  ;;  %s25_s20 = sadd.s32 1, %s2288_s17  ;;  %s2292_s18 = sphi %s2327_s18, %s13_s18   ;;  %s2288_s17 = sphi %s2325_s17, %s2785_s17   ;;  %s2284_s16 = sphi %s2323_s16, %s2784_s16   ;;  %s2280_s15 = sphi %s2321_s15, %s2783_s15   ;;  %s2276_s14 = sphi %s2319_s14, %s2782_s14   ;;  %s2272_s13 = sphi %s2317_s13, %s2781_s13   ;;  %s2268_s12 = sphi %s2315_s12, %s2780_s12  }
   0x5   : > { %p23_p0 = scmp.ge.s32.totalorder %s22_s19, 3  ;;  %p41_p1 = scmp.ne.s32.totalorder %s2272_s13, %s2268_s12 }
   0x6   : > { %p42_p2 = scmp.eq.s32.totalorder %s2292_s18, 0  ;;  %s34_s24 = sadd.s32 1, %s2272_s13 }
   0x7   : > { %s2787_s19 = smov (%p23_p0, %s22_s19), 0  ;;  %s2789_s20 = smov (!%p23_p0, %s25_s20), %s2288_s17 }
   0x8   : > { %p43_p3 = por %p42_p2, %p41_p1  ;;  %p27_p4 = scmp.ge.s32.totalorder %s2789_s20, 2 }
   0x9   : > { %s30_s21 = ssub.s32 %s2284_s16, %s2787_s19  ;;  %p1683_p6 = scmp.ge.s32.totalorder %s2292_s18, 6 }
   0xa   : > { %s2791_s20 = smov (%p27_p4, %s2789_s20), 0 }
   0xb   : > { %s29_s22 = ssub.s32 %s2288_s17, %s2791_s20  ;;  %143 = sbr.rel (%p1683_p6) target bundleno = 88 (0x58), region = 20 }
   0xc   : > { %s31_s23 = sor.u32 %s30_s21, %s29_s22 }
   0xd   : > { %p32_p5 = scmp.eq.s32.totalorder %s31_s23, 0 }
   0xf   : > { %s2366_s25 = scalar_select %p32_p5, %s2272_s13, %s34_s24  }
  0x10   : > { %146 = sbr.rel (!%p43_p3) target bundleno = 88 (0x58), region = 24  ;;  %s148_s26 = sand.u32 (%p43_p3), 1, %s2272_s13  }
  0x11   : > { %s1686_s27 = sshll.u32 (%p43_p3), %s2284_s16, 2  ;;  %s1684_s28 = sshll.u32 (%p43_p3), %s148_s26, 9 }
  0x12   : > { %s2179_s29 = smul.u32 (%p43_p3), 384, %s2288_s17  ;;  %s2380_s8 = scalar_lea.vmem (%p43_p3), [#allocation3], %s1684_s28 }
  0x14   : > { %s154_s30 = sadd.s32 (%p43_p3), %s2179_s29, %s1686_s27 }
  0x15   : > { %s1688_s4 = sshll.u32 %s154_s30, 2 }
  0x16   : > { %s2375_s7 = scalar_lea.vmem %s2776_s0, %s1688_s4 }
  0x17   : > { %v169_v0 = vld [vmem:[%s2375_s7] sm:$0xff]  ;;  %v171_v1 = vld [vmem:[%s2375_s7 + $0x8] sm:$0xff]  ;;  %v173_v2 = vld [vmem:[%s2375_s7 + $0x30] sm:$0xff] }
  0x18   : > { %170 = vst [vmem:[%s2380_s8] sm:$0xff] %v169_v0  ;;  %v175_v3 = vld [vmem:[%s2375_s7 + $0x38] sm:$0xff]  ;;  %v177_v4 = vld [vmem:[%s2375_s7 + $0x60] sm:$0xff]  ;;  %v179_v5 = vld [vmem:[%s2375_s7 + $0x68] sm:$0xff] }
  0x19   : > { %172 = vst [vmem:[%s2380_s8 + $0x8] sm:$0xff] %v171_v1  ;;  %v181_v6 = vld [vmem:[%s2375_s7 + $0x90] sm:$0xff]  ;;  %v183_v7 = vld [vmem:[%s2375_s7 + $0x98] sm:$0xff]  ;;  %v185_v8 = vld [vmem:[%s2375_s7 + $0xc0] sm:$0xff] }
  0x1a   : > { %174 = vst [vmem:[%s2380_s8 + $0x10] sm:$0xff] %v173_v2  ;;  %v187_v9 = vld [vmem:[%s2375_s7 + $0xc8] sm:$0xff]  ;;  %v189_v10 = vld [vmem:[%s2375_s7 + $0xf0] sm:$0xff]  ;;  %v191_v11 = vld [vmem:[%s2375_s7 + $0xf8] sm:$0xff] }
  0x1b   : > { %176 = vst [vmem:[%s2380_s8 + $0x18] sm:$0xff] %v175_v3  ;;  %v193_v12 = vld [vmem:[%s2375_s7 + $0x120] sm:$0xff]  ;;  %v195_v13 = vld [vmem:[%s2375_s7 + $0x128] sm:$0xff]  ;;  %v197_v14 = vld [vmem:[%s2375_s7 + $0x150] sm:$0xff] }
  0x1c   : > { %178 = vst [vmem:[%s2380_s8 + $0x20] sm:$0xff] %v177_v4  ;;  %v199_v15 = vld [vmem:[%s2375_s7 + $0x158] sm:$0xff]  ;;  %v201_v16 = vld [vmem:[%s2375_s7 + $0x180] sm:$0xff]  ;;  %v203_v17 = vld [vmem:[%s2375_s7 + $0x188] sm:$0xff] }
  0x1d   : > { %180 = vst [vmem:[%s2380_s8 + $0x28] sm:$0xff] %v179_v5  ;;  %v205_v18 = vld [vmem:[%s2375_s7 + $0x1b0] sm:$0xff]  ;;  %v207_v19 = vld [vmem:[%s2375_s7 + $0x1b8] sm:$0xff]  ;;  %v209_v20 = vld [vmem:[%s2375_s7 + $0x1e0] sm:$0xff] }
  0x1e   : > { %182 = vst [vmem:[%s2380_s8 + $0x30] sm:$0xff] %v181_v6  ;;  %v211_v21 = vld [vmem:[%s2375_s7 + $0x1e8] sm:$0xff]  ;;  %v213_v22 = vld [vmem:[%s2375_s7 + $0x210] sm:$0xff]  ;;  %v215_v23 = vld [vmem:[%s2375_s7 + $0x218] sm:$0xff] }
  0x1f   : > { %184 = vst [vmem:[%s2380_s8 + $0x38] sm:$0xff] %v183_v7  ;;  %v217_v24 = vld [vmem:[%s2375_s7 + $0x240] sm:$0xff]  ;;  %v219_v25 = vld [vmem:[%s2375_s7 + $0x248] sm:$0xff]  ;;  %v221_v26 = vld [vmem:[%s2375_s7 + $0x270] sm:$0xff] }
  0x20   : > { %186 = vst [vmem:[%s2380_s8 + $0x40] sm:$0xff] %v185_v8  ;;  %v223_v27 = vld [vmem:[%s2375_s7 + $0x278] sm:$0xff]  ;;  %v225_v28 = vld [vmem:[%s2375_s7 + $0x2a0] sm:$0xff]  ;;  %v227_v29 = vld [vmem:[%s2375_s7 + $0x2a8] sm:$0xff] }
  0x21   : > { %188 = vst [vmem:[%s2380_s8 + $0x48] sm:$0xff] %v187_v9  ;;  %v229_v30 = vld [vmem:[%s2375_s7 + $0x2d0] sm:$0xff]  ;;  %v231_v31 = vld [vmem:[%s2375_s7 + $0x2d8] sm:$0xff]  ;;  %v233_v32 = vld [vmem:[%s2375_s7 + $0x300] sm:$0xff] }
  0x22   : > { %190 = vst [vmem:[%s2380_s8 + $0x50] sm:$0xff] %v189_v10  ;;  %v235_v33 = vld [vmem:[%s2375_s7 + $0x308] sm:$0xff]  ;;  %v237_v34 = vld [vmem:[%s2375_s7 + $0x330] sm:$0xff]  ;;  %v239_v35 = vld [vmem:[%s2375_s7 + $0x338] sm:$0xff] }
  0x23   : > { %192 = vst [vmem:[%s2380_s8 + $0x58] sm:$0xff] %v191_v11  ;;  %v241_v36 = vld [vmem:[%s2375_s7 + $0x360] sm:$0xff]  ;;  %v243_v37 = vld [vmem:[%s2375_s7 + $0x368] sm:$0xff]  ;;  %v245_v38 = vld [vmem:[%s2375_s7 + $0x390] sm:$0xff] }
  0x24   : > { %194 = vst [vmem:[%s2380_s8 + $0x60] sm:$0xff] %v193_v12  ;;  %v247_v39 = vld [vmem:[%s2375_s7 + $0x398] sm:$0xff]  ;;  %v249_v40 = vld [vmem:[%s2375_s7 + $0x3c0] sm:$0xff]  ;;  %v251_v41 = vld [vmem:[%s2375_s7 + $0x3c8] sm:$0xff] }
  0x25   : > { %196 = vst [vmem:[%s2380_s8 + $0x68] sm:$0xff] %v195_v13  ;;  %v253_v42 = vld [vmem:[%s2375_s7 + $0x3f0] sm:$0xff]  ;;  %v255_v43 = vld [vmem:[%s2375_s7 + $0x3f8] sm:$0xff]  ;;  %v257_v44 = vld [vmem:[%s2375_s7 + $0x420] sm:$0xff] }
  0x26   : > { %198 = vst [vmem:[%s2380_s8 + $0x70] sm:$0xff] %v197_v14  ;;  %v259_v45 = vld [vmem:[%s2375_s7 + $0x428] sm:$0xff]  ;;  %v261_v46 = vld [vmem:[%s2375_s7 + $0x450] sm:$0xff]  ;;  %v263_v47 = vld [vmem:[%s2375_s7 + $0x458] sm:$0xff] }
  0x27   : > { %200 = vst [vmem:[%s2380_s8 + $0x78] sm:$0xff] %v199_v15  ;;  %v265_v48 = vld [vmem:[%s2375_s7 + $0x480] sm:$0xff]  ;;  %v267_v49 = vld [vmem:[%s2375_s7 + $0x488] sm:$0xff]  ;;  %v269_v50 = vld [vmem:[%s2375_s7 + $0x4b0] sm:$0xff] }
  0x28   : > { %202 = vst [vmem:[%s2380_s8 + $0x80] sm:$0xff] %v201_v16  ;;  %v271_v51 = vld [vmem:[%s2375_s7 + $0x4b8] sm:$0xff]  ;;  %v273_v52 = vld [vmem:[%s2375_s7 + $0x4e0] sm:$0xff]  ;;  %v275_v53 = vld [vmem:[%s2375_s7 + $0x4e8] sm:$0xff] }
  0x29   : > { %204 = vst [vmem:[%s2380_s8 + $0x88] sm:$0xff] %v203_v17  ;;  %v277_v54 = vld [vmem:[%s2375_s7 + $0x510] sm:$0xff]  ;;  %v279_v55 = vld [vmem:[%s2375_s7 + $0x518] sm:$0xff]  ;;  %v281_v56 = vld [vmem:[%s2375_s7 + $0x540] sm:$0xff] }
  0x2a   : > { %206 = vst [vmem:[%s2380_s8 + $0x90] sm:$0xff] %v205_v18  ;;  %v283_v57 = vld [vmem:[%s2375_s7 + $0x548] sm:$0xff]  ;;  %v285_v58 = vld [vmem:[%s2375_s7 + $0x570] sm:$0xff]  ;;  %v287_v59 = vld [vmem:[%s2375_s7 + $0x578] sm:$0xff] }
  0x2b   : > { %208 = vst [vmem:[%s2380_s8 + $0x98] sm:$0xff] %v207_v19  ;;  %v289_v60 = vld [vmem:[%s2375_s7 + $0x5a0] sm:$0xff]  ;;  %v291_v61 = vld [vmem:[%s2375_s7 + $0x5a8] sm:$0xff]  ;;  %v293_v62 = vld [vmem:[%s2375_s7 + $0x5d0] sm:$0xff] }
  0x2c   : > { %210 = vst [vmem:[%s2380_s8 + $0xa0] sm:$0xff] %v209_v20  ;;  %v295_v63 = vld [vmem:[%s2375_s7 + $0x5d8] sm:$0xff] }
  0x2d   : > { %212 = vst [vmem:[%s2380_s8 + $0xa8] sm:$0xff] %v211_v21 }
  0x2e   : > { %214 = vst [vmem:[%s2380_s8 + $0xb0] sm:$0xff] %v213_v22 }
  0x2f   : > { %216 = vst [vmem:[%s2380_s8 + $0xb8] sm:$0xff] %v215_v23 }
  0x30   : > { %218 = vst [vmem:[%s2380_s8 + $0xc0] sm:$0xff] %v217_v24 }
  0x31   : > { %220 = vst [vmem:[%s2380_s8 + $0xc8] sm:$0xff] %v219_v25 }
  0x32   : > { %222 = vst [vmem:[%s2380_s8 + $0xd0] sm:$0xff] %v221_v26 }
  0x33   : > { %224 = vst [vmem:[%s2380_s8 + $0xd8] sm:$0xff] %v223_v27 }
  0x34   : > { %226 = vst [vmem:[%s2380_s8 + $0xe0] sm:$0xff] %v225_v28 }
  0x35   : > { %228 = vst [vmem:[%s2380_s8 + $0xe8] sm:$0xff] %v227_v29 }
  0x36   : > { %230 = vst [vmem:[%s2380_s8 + $0xf0] sm:$0xff] %v229_v30 }
  0x37   : > { %232 = vst [vmem:[%s2380_s8 + $0xf8] sm:$0xff] %v231_v31 }
  0x38   : > { %234 = vst [vmem:[%s2380_s8 + $0x100] sm:$0xff] %v233_v32 }
  0x39   : > { %236 = vst [vmem:[%s2380_s8 + $0x108] sm:$0xff] %v235_v33 }
  0x3a   : > { %238 = vst [vmem:[%s2380_s8 + $0x110] sm:$0xff] %v237_v34 }
  0x3b   : > { %240 = vst [vmem:[%s2380_s8 + $0x118] sm:$0xff] %v239_v35 }
  0x3c   : > { %242 = vst [vmem:[%s2380_s8 + $0x120] sm:$0xff] %v241_v36 }
  0x3d   : > { %244 = vst [vmem:[%s2380_s8 + $0x128] sm:$0xff] %v243_v37 }
  0x3e   : > { %246 = vst [vmem:[%s2380_s8 + $0x130] sm:$0xff] %v245_v38 }
  0x3f   : > { %248 = vst [vmem:[%s2380_s8 + $0x138] sm:$0xff] %v247_v39 }
  0x40   : > { %250 = vst [vmem:[%s2380_s8 + $0x140] sm:$0xff] %v249_v40 }
  0x41   : > { %252 = vst [vmem:[%s2380_s8 + $0x148] sm:$0xff] %v251_v41 }
  0x42   : > { %254 = vst [vmem:[%s2380_s8 + $0x150] sm:$0xff] %v253_v42 }
  0x43   : > { %256 = vst [vmem:[%s2380_s8 + $0x158] sm:$0xff] %v255_v43 }
  0x44   : > { %258 = vst [vmem:[%s2380_s8 + $0x160] sm:$0xff] %v257_v44 }
  0x45   : > { %260 = vst [vmem:[%s2380_s8 + $0x168] sm:$0xff] %v259_v45 }
  0x46   : > { %262 = vst [vmem:[%s2380_s8 + $0x170] sm:$0xff] %v261_v46 }
  0x47   : > { %264 = vst [vmem:[%s2380_s8 + $0x178] sm:$0xff] %v263_v47 }
  0x48   : > { %266 = vst [vmem:[%s2380_s8 + $0x180] sm:$0xff] %v265_v48 }
  0x49   : > { %268 = vst [vmem:[%s2380_s8 + $0x188] sm:$0xff] %v267_v49 }
  0x4a   : > { %270 = vst [vmem:[%s2380_s8 + $0x190] sm:$0xff] %v269_v50 }
  0x4b   : > { %272 = vst [vmem:[%s2380_s8 + $0x198] sm:$0xff] %v271_v51 }
  0x4c   : > { %274 = vst [vmem:[%s2380_s8 + $0x1a0] sm:$0xff] %v273_v52 }
  0x4d   : > { %276 = vst [vmem:[%s2380_s8 + $0x1a8] sm:$0xff] %v275_v53 }
  0x4e   : > { %278 = vst [vmem:[%s2380_s8 + $0x1b0] sm:$0xff] %v277_v54 }
  0x4f   : > { %280 = vst [vmem:[%s2380_s8 + $0x1b8] sm:$0xff] %v279_v55 }
  0x50   : > { %282 = vst [vmem:[%s2380_s8 + $0x1c0] sm:$0xff] %v281_v56 }
  0x51   : > { %284 = vst [vmem:[%s2380_s8 + $0x1c8] sm:$0xff] %v283_v57 }
  0x52   : > { %286 = vst [vmem:[%s2380_s8 + $0x1d0] sm:$0xff] %v285_v58 }
  0x53   : > { %288 = vst [vmem:[%s2380_s8 + $0x1d8] sm:$0xff] %v287_v59 }
  0x54   : > { %290 = vst [vmem:[%s2380_s8 + $0x1e0] sm:$0xff] %v289_v60 }
  0x55   : > { %292 = vst [vmem:[%s2380_s8 + $0x1e8] sm:$0xff] %v291_v61 }
  0x56   : > { %294 = vst [vmem:[%s2380_s8 + $0x1f0] sm:$0xff] %v293_v62 }
  0x57   : > { %296 = vst [vmem:[%s2380_s8 + $0x1f8] sm:$0xff] %v295_v63 }
  0x58 PF: > { %p1689_p7 = scmp.ge.s32.totalorder %s2292_s18, 1  ;;  %p310_p8 = scmp.lt.s32.totalorder %s2292_s18, 7 }
  0x5a   : > { %p311_p9 = pnand %p1689_p7, %p310_p8 }
  0x5b   : > { %s317_s9 = sand.u32 (!%p311_p9), 1, %s2268_s12   ;;  %s1691_s10 = sshll.u32 (!%p311_p9), %s2276_s14, 6 }
  0x5c   : > { %314 = sbr.rel (%p311_p9) target bundleno = 594 (0x252), region = 51  ;;  %s1690_s11 = sshll.u32 (!%p311_p9), %s317_s9, 9 }
  0x5d   : > { %p348_p10 = scmp.lt.s32.totalorder (!%p311_p9), %s1691_s10, 191  ;;  %s1693_s21 = sshll.u32 (!%p311_p9), %s2280_s15, 5 }
  0x5e   : > { %p354_p11 = scmp.lt.s32.totalorder (!%p311_p9), %s1693_s21, 63  ;;  %s2522_s12 = scalar_lea.vmem (!%p311_p9), [#allocation3], %s1690_s11 }
  0x5f   : > { %p1695_p12 = scmp.ne.s32.totalorder (!%p311_p9), %s2276_s14, 0 }
  0x61   : > { %s2793_s10 = smov (!%p348_p10, %s1691_s10), 191  ;;  %s2795_s21 = smov (!%p354_p11, %s1693_s21), 63 }
  0x62   : > { %s1692_s22 = sshll.u32 %s2793_s10, 2  ;;  %s1694_s27 = sshll.u32 %s2795_s21, 3 }
  0x63   : > { %s2515_s26 = scalar_lea.vmem %s2777_s1, %s1692_s22  ;;  %s2520_s30 = scalar_lea.vmem %s2779_s3, %s1694_s27 }
  0x64   : > { %362 = sbr.rel (%p1695_p12) target bundleno = 138 (0x8a), region = 59 }
  0x69   : > { %v2294_v0 = vmov 0.0  }
  0x6a   : > { %363 = vst [vmem:[#allocation2 + $0xb0] sm:$0xff] %v2294_v0 }
  0x6b   : > { %364 = vst [vmem:[#allocation2] sm:$0xff] %v2294_v0 }
  0x6c   : > { %365 = vst [vmem:[#allocation2 + $0xd8] sm:$0xff] %v2294_v0 }
  0x6d   : > { %366 = vst [vmem:[#allocation2 + $0x18] sm:$0xff] %v2294_v0 }
  0x6e   : > { %367 = vst [vmem:[#allocation2 + $0x50] sm:$0xff] %v2294_v0 }
  0x6f   : > { %368 = vst [vmem:[#allocation2 + $0x68] sm:$0xff] %v2294_v0 }
  0x70   : > { %369 = vst [vmem:[#allocation2 + $0x30] sm:$0xff] %v2294_v0 }
  0x71   : > { %370 = vst [vmem:[#allocation2 + $0x48] sm:$0xff] %v2294_v0 }
  0x72   : > { %371 = vst [vmem:[#allocation2 + $0x80] sm:$0xff] %v2294_v0 }
  0x73   : > { %372 = vst [vmem:[#allocation2 + $0x88] sm:$0xff] %v2294_v0 }
  0x74   : > { %373 = vst [vmem:[#allocation2 + $0xe8] sm:$0xff] %v2294_v0 }
  0x75   : > { %374 = vst [vmem:[#allocation2 + $0xb8] sm:$0xff] %v2294_v0 }
  0x76   : > { %375 = vst [vmem:[#allocation2 + $0x60] sm:$0xff] %v2294_v0 }
  0x77   : > { %376 = vst [vmem:[#allocation2 + $0xf0] sm:$0xff] %v2294_v0 }
  0x78   : > { %377 = vst [vmem:[#allocation2 + $0x8] sm:$0xff] %v2294_v0 }
  0x79   : > { %378 = vst [vmem:[#allocation2 + $0x78] sm:$0xff] %v2294_v0 }
  0x7a   : > { %379 = vst [vmem:[#allocation2 + $0x38] sm:$0xff] %v2294_v0 }
  0x7b   : > { %380 = vst [vmem:[#allocation2 + $0x58] sm:$0xff] %v2294_v0 }
  0x7c   : > { %381 = vst [vmem:[#allocation2 + $0x40] sm:$0xff] %v2294_v0 }
  0x7d   : > { %382 = vst [vmem:[#allocation2 + $0xc8] sm:$0xff] %v2294_v0 }
  0x7e   : > { %383 = vst [vmem:[#allocation2 + $0xe0] sm:$0xff] %v2294_v0 }
  0x7f   : > { %384 = vst [vmem:[#allocation2 + $0x90] sm:$0xff] %v2294_v0 }
  0x80   : > { %385 = vst [vmem:[#allocation2 + $0x70] sm:$0xff] %v2294_v0 }
  0x81   : > { %386 = vst [vmem:[#allocation2 + $0xc0] sm:$0xff] %v2294_v0 }
  0x82   : > { %387 = vst [vmem:[#allocation2 + $0xa8] sm:$0xff] %v2294_v0 }
  0x83   : > { %388 = vst [vmem:[#allocation2 + $0xd0] sm:$0xff] %v2294_v0 }
  0x84   : > { %389 = vst [vmem:[#allocation2 + $0x10] sm:$0xff] %v2294_v0 }
  0x85   : > { %390 = vst [vmem:[#allocation2 + $0x28] sm:$0xff] %v2294_v0 }
  0x86   : > { %391 = vst [vmem:[#allocation2 + $0xa0] sm:$0xff] %v2294_v0 }
  0x87   : > { %392 = vst [vmem:[#allocation2 + $0xf8] sm:$0xff] %v2294_v0 }
  0x88   : > { %393 = vst [vmem:[#allocation2 + $0x20] sm:$0xff] %v2294_v0 }
  0x89   : > { %394 = vst [vmem:[#allocation2 + $0x98] sm:$0xff] %v2294_v0 }
  0x8a PF: > { %v2154_v1 = vld [vmem:[%s2515_s26 + $0x38] sm:$0xff]  ;;  %v2153_v5 = vld [vmem:[%s2515_s26 + $0x30] sm:$0xff]  ;;  %v2152_v9 = vld [vmem:[%s2515_s26 + $0x28] sm:$0xff]  ;;  %p2080_p13 = scmp.ne.s32.totalorder %s2276_s14, 2 }
  0x8b   : > { %v2162_v2 = vld [vmem:[%s2515_s26 + $0x78] sm:$0xff]  ;;  %1067 = vmatpush.bf16.msra.mxu0 %v2154_v1  ;;  %v2161_v6 = vld [vmem:[%s2515_s26 + $0x70] sm:$0xff]  ;;  %v2160_v10 = vld [vmem:[%s2515_s26 + $0x68] sm:$0xff] }
  0x8c   : > { %v2170_v3 = vld [vmem:[%s2515_s26 + $0xb8] sm:$0xff]  ;;  %1156 = vmatpush.bf16.msra.mxu1 %v2162_v2  ;;  %v2169_v7 = vld [vmem:[%s2515_s26 + $0xb0] sm:$0xff]  ;;  %v2168_v11 = vld [vmem:[%s2515_s26 + $0xa8] sm:$0xff] }
  0x8d   : > { %v2178_v4 = vld [vmem:[%s2515_s26 + $0xf8] sm:$0xff]  ;;  %1245 = vmatpush.bf16.msra.mxu2 %v2170_v3  ;;  %v2177_v8 = vld [vmem:[%s2515_s26 + $0xf0] sm:$0xff]  ;;  %v2176_v12 = vld [vmem:[%s2515_s26 + $0xe8] sm:$0xff] }
  0x8e   : > { %1334 = vmatpush.bf16.msra.mxu3 %v2178_v4  ;;  %v2151_v13 = vld [vmem:[%s2515_s26 + $0x20] sm:$0xff]  ;;  %v2150_v17 = vld [vmem:[%s2515_s26 + $0x18] sm:$0xff]  ;;  %v2149_v21 = vld [vmem:[%s2515_s26 + $0x10] sm:$0xff] }
  0x8f   : > { %1068 = vmatpush.bf16.msra.mxu0 %v2153_v5  ;;  %v2159_v14 = vld [vmem:[%s2515_s26 + $0x60] sm:$0xff]  ;;  %v2158_v18 = vld [vmem:[%s2515_s26 + $0x58] sm:$0xff]  ;;  %v2157_v22 = vld [vmem:[%s2515_s26 + $0x50] sm:$0xff] }
  0x90   : > { %1157 = vmatpush.bf16.msra.mxu1 %v2161_v6  ;;  %v2167_v15 = vld [vmem:[%s2515_s26 + $0xa0] sm:$0xff]  ;;  %v2166_v19 = vld [vmem:[%s2515_s26 + $0x98] sm:$0xff]  ;;  %v2165_v23 = vld [vmem:[%s2515_s26 + $0x90] sm:$0xff] }
  0x91   : > { %1246 = vmatpush.bf16.msra.mxu2 %v2169_v7  ;;  %v2175_v16 = vld [vmem:[%s2515_s26 + $0xe0] sm:$0xff]  ;;  %v2174_v20 = vld [vmem:[%s2515_s26 + $0xd8] sm:$0xff]  ;;  %v2173_v24 = vld [vmem:[%s2515_s26 + $0xd0] sm:$0xff] }
  0x92   : > { %1335 = vmatpush.bf16.msra.mxu3 %v2177_v8  ;;  %v2148_v25 = vld [vmem:[%s2515_s26 + $0x8] sm:$0xff]  ;;  %v2147_v29 = vld [vmem:[%s2515_s26] sm:$0xff]  ;;  %v2085_v34 = vld [vmem:[%s2522_s12 + $0xc] sm:$0xf0] }
  0x93   : > { %1069 = vmatpush.bf16.msra.mxu0 %v2152_v9  ;;  %v2156_v26 = vld [vmem:[%s2515_s26 + $0x48] sm:$0xff]  ;;  %v2155_v30 = vld [vmem:[%s2515_s26 + $0x40] sm:$0xff]  ;;  %v1700_v36 = vld [vmem:[%s2522_s12 + $0x10] sm:$0xf0] }
  0x94   : > { %1158 = vmatpush.bf16.msra.mxu1 %v2160_v10  ;;  %v2164_v27 = vld [vmem:[%s2515_s26 + $0x88] sm:$0xff]  ;;  %v2163_v31 = vld [vmem:[%s2515_s26 + $0x80] sm:$0xff]  ;;  %v2086_v38 = vld [vmem:[%s2522_s12 + $0x14] sm:$0xf0] }
  0x95   : > { %1247 = vmatpush.bf16.msra.mxu2 %v2168_v11  ;;  %v2172_v28 = vld [vmem:[%s2515_s26 + $0xc8] sm:$0xff]  ;;  %v2171_v32 = vld [vmem:[%s2515_s26 + $0xc0] sm:$0xff]  ;;  %v1708_v40 = vld [vmem:[%s2522_s12 + $0x18] sm:$0xf0] }
  0x96   : > { %1336 = vmatpush.bf16.msra.mxu3 %v2176_v12  ;;  %v1698_v33 = vld [vmem:[%s2522_s12] sm:$0xf]  ;;  %v2083_v35 = vld [vmem:[%s2522_s12 + $0x4] sm:$0xf]  ;;  %v1706_v37 = vld [vmem:[%s2522_s12 + $0x8] sm:$0xf] }
  0x97   : > { %1070 = vmatpush.bf16.msra.mxu0 %v2151_v13  ;;  %v2084_v39 = vld [vmem:[%s2522_s12 + $0xc] sm:$0xf]  ;;  %v1699_v41 = vor.u32 %v2085_v34, %v1698_v33  ;;  %v1703_v42 = vor.u32 %v2083_v35, %v1700_v36  ;;  %v1707_v43 = vor.u32 %v2086_v38, %v1706_v37  ;;  %v1714_v45 = vld [vmem:[%s2522_s12 + $0x20] sm:$0xf]  ;;  %v2089_v46 = vld [vmem:[%s2522_s12 + $0x2c] sm:$0xf0] }
  0x98   : > { %1159 = vmatpush.bf16.msra.mxu1 %v2159_v14  ;;  %v1711_v44 = vor.u32 %v2084_v39, %v1708_v40  ;;  %v2087_v47 = vld [vmem:[%s2522_s12 + $0x24] sm:$0xf]  ;;  %v1716_v48 = vld [vmem:[%s2522_s12 + $0x30] sm:$0xf0]  ;;  %v1722_v49 = vld [vmem:[%s2522_s12 + $0x28] sm:$0xf]  ;;  %v1715_v53 = vor.u32 %v2089_v46, %v1714_v45 }
  0x99   : > { %1248 = vmatpush.bf16.msra.mxu2 %v2167_v15  ;;  %v2090_v50 = vld [vmem:[%s2522_s12 + $0x34] sm:$0xf0]  ;;  %v2088_v51 = vld [vmem:[%s2522_s12 + $0x2c] sm:$0xf]  ;;  %v1724_v52 = vld [vmem:[%s2522_s12 + $0x38] sm:$0xf0]  ;;  %v1719_v54 = vor.u32 %v2087_v47, %v1716_v48 }
  0x9a   : > { %1337 = vmatpush.bf16.msra.mxu3 %v2175_v16  ;;  %v1723_v55 = vor.u32 %v2090_v50, %v1722_v49  ;;  %v1727_v56 = vor.u32 %v2088_v51, %v1724_v52  ;;  %v1730_v57 = vld [vmem:[%s2522_s12 + $0x40] sm:$0xf]  ;;  %v2093_v58 = vld [vmem:[%s2522_s12 + $0x4c] sm:$0xf0]  ;;  %v2091_v59 = vld [vmem:[%s2522_s12 + $0x44] sm:$0xf] }
  0x9b   : > { %1071 = vmatpush.bf16.msra.mxu0 %v2150_v17  ;;  %v1732_v60 = vld [vmem:[%s2522_s12 + $0x50] sm:$0xf0]  ;;  %v1738_v61 = vld [vmem:[%s2522_s12 + $0x48] sm:$0xf]  ;;  %v2094_v62 = vld [vmem:[%s2522_s12 + $0x54] sm:$0xf0]  ;;  %v1731_v1 = vor.u32 %v2093_v58, %v1730_v57 }
  0x9c   : > { %1160 = vmatpush.bf16.msra.mxu1 %v2158_v18  ;;  %v2092_v63 = vld [vmem:[%s2522_s12 + $0x4c] sm:$0xf]  ;;  %v1740_v0 = vld [vmem:[%s2522_s12 + $0x58] sm:$0xf0]  ;;  %v1735_v2 = vor.u32 %v2091_v59, %v1732_v60  ;;  %v1739_v3 = vor.u32 %v2094_v62, %v1738_v61  ;;  %v1746_v5 = vld [vmem:[%s2522_s12 + $0x60] sm:$0xf] }
  0x9d   : > { %1249 = vmatpush.bf16.msra.mxu2 %v2166_v19  ;;  %v1743_v4 = vor.u32 %v2092_v63, %v1740_v0  ;;  %v2097_v6 = vld [vmem:[%s2522_s12 + $0x6c] sm:$0xf0]  ;;  %v2095_v7 = vld [vmem:[%s2522_s12 + $0x64] sm:$0xf]  ;;  %v1748_v8 = vld [vmem:[%s2522_s12 + $0x70] sm:$0xf0] }
  0x9e   : > { %1338 = vmatpush.bf16.msra.mxu3 %v2174_v20  ;;  %v1754_v9 = vld [vmem:[%s2522_s12 + $0x68] sm:$0xf]  ;;  %v2098_v10 = vld [vmem:[%s2522_s12 + $0x74] sm:$0xf0]  ;;  %v2096_v11 = vld [vmem:[%s2522_s12 + $0x6c] sm:$0xf]  ;;  %v1747_v13 = vor.u32 %v2097_v6, %v1746_v5  ;;  %v1751_v14 = vor.u32 %v2095_v7, %v1748_v8 }
  0x9f   : > { %1072 = vmatpush.bf16.msra.mxu0 %v2149_v21  ;;  %v1756_v12 = vld [vmem:[%s2522_s12 + $0x78] sm:$0xf0]  ;;  %v1755_v15 = vor.u32 %v2098_v10, %v1754_v9  ;;  %v1762_v17 = vld [vmem:[%s2522_s12 + $0x80] sm:$0xf]  ;;  %v2101_v18 = vld [vmem:[%s2522_s12 + $0x8c] sm:$0xf0] }
  0xa0   : > { %1161 = vmatpush.bf16.msra.mxu1 %v2157_v22  ;;  %v1759_v16 = vor.u32 %v2096_v11, %v1756_v12  ;;  %v2099_v19 = vld [vmem:[%s2522_s12 + $0x84] sm:$0xf]  ;;  %v1764_v20 = vld [vmem:[%s2522_s12 + $0x90] sm:$0xf0]  ;;  %v1770_v21 = vld [vmem:[%s2522_s12 + $0x88] sm:$0xf] }
  0xa1   : > { %1250 = vmatpush.bf16.msra.mxu2 %v2165_v23  ;;  %v2102_v22 = vld [vmem:[%s2522_s12 + $0x94] sm:$0xf0]  ;;  %v2100_v23 = vld [vmem:[%s2522_s12 + $0x8c] sm:$0xf]  ;;  %v1786_v33 = vld [vmem:[%s2522_s12 + $0xa8] sm:$0xf] }
  0xa2   : > { %1339 = vmatpush.bf16.msra.mxu3 %v2173_v24  ;;  %v1772_v24 = vld [vmem:[%s2522_s12 + $0x98] sm:$0xf0]  ;;  %v2106_v34 = vld [vmem:[%s2522_s12 + $0xb4] sm:$0xf0]  ;;  %v2104_v35 = vld [vmem:[%s2522_s12 + $0xac] sm:$0xf] }
  0xa3   : > { %1073 = vmatpush.bf16.msra.mxu0 %v2148_v25  ;;  %v1763_v25 = vor.u32 %v2101_v18, %v1762_v17  ;;  %v1788_v36 = vld [vmem:[%s2522_s12 + $0xb8] sm:$0xf0]  ;;  %v1787_v39 = vor.u32 %v2106_v34, %v1786_v33  ;;  %v1802_v45 = vld [vmem:[%s2522_s12 + $0xc8] sm:$0xf]  ;;  %v2110_v46 = vld [vmem:[%s2522_s12 + $0xd4] sm:$0xf0] }
  0xa4   : > { %1162 = vmatpush.bf16.msra.mxu1 %v2156_v26  ;;  %v1767_v26 = vor.u32 %v2099_v19, %v1764_v20  ;;  %v1791_v40 = vor.u32 %v2104_v35, %v1788_v36  ;;  %v2108_v47 = vld [vmem:[%s2522_s12 + $0xcc] sm:$0xf]  ;;  %v1804_v48 = vld [vmem:[%s2522_s12 + $0xd8] sm:$0xf0]  ;;  %v1803_v51 = vor.u32 %v2110_v46, %v1802_v45  ;;  %v1818_v57 = vld [vmem:[%s2522_s12 + $0xe8] sm:$0xf] }
  0xa5   : > { %1251 = vmatpush.bf16.msra.mxu2 %v2164_v27  ;;  %v1771_v27 = vor.u32 %v2102_v22, %v1770_v21  ;;  %v1807_v52 = vor.u32 %v2108_v47, %v1804_v48  ;;  %v2114_v58 = vld [vmem:[%s2522_s12 + $0xf4] sm:$0xf0]  ;;  %v2112_v59 = vld [vmem:[%s2522_s12 + $0xec] sm:$0xf]  ;;  %v1820_v60 = vld [vmem:[%s2522_s12 + $0xf8] sm:$0xf0] }
  0xa6   : > { %1340 = vmatpush.bf16.msra.mxu3 %v2172_v28  ;;  %v1775_v28 = vor.u32 %v2100_v23, %v1772_v24  ;;  %v1819_v63 = vor.u32 %v2114_v58, %v1818_v57  ;;  %v1823_v0 = vor.u32 %v2112_v59, %v1820_v60  ;;  %v1834_v5 = vld [vmem:[%s2522_s12 + $0x108] sm:$0xf]  ;;  %v2118_v6 = vld [vmem:[%s2522_s12 + $0x114] sm:$0xf0]  ;;  %v2116_v7 = vld [vmem:[%s2522_s12 + $0x10c] sm:$0xf] }
  0xa7   : > { %1074 = vmatpush.bf16.msra.mxu0 %v2147_v29  ;;  %v1778_v29 = vld [vmem:[%s2522_s12 + $0xa0] sm:$0xf]  ;;  %v1836_v8 = vld [vmem:[%s2522_s12 + $0x118] sm:$0xf0]  ;;  %v395_v21 = vld [vmem:[#allocation2 + $0xb0] sm:$0xff] }
  0xa8   : > { %1163 = vmatpush.bf16.msra.mxu1 %v2155_v30  ;;  %v2105_v30 = vld [vmem:[%s2522_s12 + $0xac] sm:$0xf0]  ;;  %v1842_v23 = vld [vmem:[%s2522_s12 + $0x120] sm:$0xf]  ;;  %v1860_v57 = vld [vmem:[%s2522_s12 + $0x150] sm:$0xf0] }
  0xa9   : > { %1252 = vmatpush.bf16.msra.mxu2 %v2163_v31  ;;  %v2103_v31 = vld [vmem:[%s2522_s12 + $0xa4] sm:$0xf]  ;;  %v1779_v37 = vor.u32 %v2105_v30, %v1778_v29  ;;  %v2121_v24 = vld [vmem:[%s2522_s12 + $0x12c] sm:$0xf0]  ;;  %v2122_v29 = vld [vmem:[%s2522_s12 + $0x134] sm:$0xf0] }
  0xaa   : > { %1341 = vmatpush.bf16.msra.mxu3 %v2171_v32  ;;  %1075 = vmatmul.bf16.vlgmr.msra.gmra.mxu0 %v1699_v41  ;;  %v1780_v32 = vld [vmem:[%s2522_s12 + $0xb0] sm:$0xf0]  ;;  %v1794_v41 = vld [vmem:[%s2522_s12 + $0xc0] sm:$0xf]  ;;  %v2120_v30 = vld [vmem:[%s2522_s12 + $0x12c] sm:$0xf]  ;;  %v1843_v35 = vor.u32 %v2121_v24, %v1842_v23 }
  0xab   : > { %1164 = vmatmul.bf16.vlgmr.msra.gmra.mxu1 %v1703_v42  ;;  %v1783_v38 = vor.u32 %v2103_v31, %v1780_v32  ;;  %v2109_v42 = vld [vmem:[%s2522_s12 + $0xcc] sm:$0xf0]  ;;  %v1852_v31 = vld [vmem:[%s2522_s12 + $0x138] sm:$0xf0]  ;;  %v1866_v58 = vld [vmem:[%s2522_s12 + $0x148] sm:$0xf] }
  0xac   : > { %1253 = vmatmul.bf16.vlgmr.msra.gmra.mxu2 %v1707_v43  ;;  %v2107_v43 = vld [vmem:[%s2522_s12 + $0xc4] sm:$0xf]  ;;  %v1795_v49 = vor.u32 %v2109_v42, %v1794_v41  ;;  %v1855_v41 = vor.u32 %v2120_v30, %v1852_v31  ;;  %v2126_v59 = vld [vmem:[%s2522_s12 + $0x154] sm:$0xf0]  ;;  %v2124_v60 = vld [vmem:[%s2522_s12 + $0x14c] sm:$0xf] }
  0xad   : > { %1342 = vmatmul.bf16.vlgmr.msra.gmra.mxu3 %v1711_v44  ;;  %v1796_v44 = vld [vmem:[%s2522_s12 + $0xd0] sm:$0xf0]  ;;  %v396_v42 = vld [vmem:[#allocation2] sm:$0xff]  ;;  %v1882_v24 = vld [vmem:[%s2522_s12 + $0x168] sm:$0xf] }
  0xae   : > { %v1799_v50 = vor.u32 %v2107_v43, %v1796_v44  ;;  %v1876_v23 = vld [vmem:[%s2522_s12 + $0x170] sm:$0xf0] }
  0xba   : > { %1080 = vmatmul.bf16.gmra.mxu0 %v1715_v53  ;;  %v1810_v53 = vld [vmem:[%s2522_s12 + $0xe0] sm:$0xf] }
  0xbb   : > { %1169 = vmatmul.bf16.gmra.mxu1 %v1719_v54  ;;  %v2113_v54 = vld [vmem:[%s2522_s12 + $0xec] sm:$0xf0] }
  0xbc   : > { %1258 = vmatmul.bf16.gmra.mxu2 %v1723_v55  ;;  %v2111_v55 = vld [vmem:[%s2522_s12 + $0xe4] sm:$0xf]  ;;  %v1811_v61 = vor.u32 %v2113_v54, %v1810_v53  ;;  %v1858_v53 = vld [vmem:[%s2522_s12 + $0x140] sm:$0xf]  ;;  %v2125_v54 = vld [vmem:[%s2522_s12 + $0x14c] sm:$0xf0] }
  0xbd   : > { %1347 = vmatmul.bf16.gmra.mxu3 %v1727_v56  ;;  %v1812_v56 = vld [vmem:[%s2522_s12 + $0xf0] sm:$0xf0] }
  0xbe   : > { %v1815_v62 = vor.u32 %v2111_v55, %v1812_v56  ;;  %v2123_v56 = vld [vmem:[%s2522_s12 + $0x144] sm:$0xf] }
  0xca   : > { %1085 = vmatmul.bf16.gmra.mxu0 %v1731_v1  ;;  %v1826_v1 = vld [vmem:[%s2522_s12 + $0x100] sm:$0xf] }
  0xcb   : > { %1174 = vmatmul.bf16.gmra.mxu1 %v1735_v2  ;;  %v2117_v2 = vld [vmem:[%s2522_s12 + $0x10c] sm:$0xf0] }
  0xcc   : > { %1263 = vmatmul.bf16.gmra.mxu2 %v1739_v3  ;;  %v2115_v3 = vld [vmem:[%s2522_s12 + $0x104] sm:$0xf]  ;;  %v1827_v9 = vor.u32 %v2117_v2, %v1826_v1  ;;  %v1859_v1 = vor.u32 %v2125_v54, %v1858_v53  ;;  %v1863_v2 = vor.u32 %v2123_v56, %v1860_v57  ;;  %v1892_v53 = vld [vmem:[%s2522_s12 + $0x190] sm:$0xf0]  ;;  %v1898_v54 = vld [vmem:[%s2522_s12 + $0x188] sm:$0xf] }
  0xcd   : > { %1352 = vmatmul.bf16.gmra.mxu3 %v1743_v4  ;;  %v1828_v4 = vld [vmem:[%s2522_s12 + $0x110] sm:$0xf0]  ;;  %v2132_v56 = vld [vmem:[%s2522_s12 + $0x18c] sm:$0xf]  ;;  %v1900_v57 = vld [vmem:[%s2522_s12 + $0x198] sm:$0xf0] }
  0xce   : > { %v1831_v10 = vor.u32 %v2115_v3, %v1828_v4 }
  0xda   : > { %1090 = vmatmul.bf16.gmra.mxu0 %v1747_v13  ;;  %v1835_v13 = vor.u32 %v2118_v6, %v1834_v5  ;;  %v1867_v6 = vor.u32 %v2126_v59, %v1866_v58 }
  0xdb   : > { %1179 = vmatmul.bf16.gmra.mxu1 %v1751_v14  ;;  %v1839_v14 = vor.u32 %v2116_v7, %v1836_v8  ;;  %v398_v8 = vld [vmem:[#allocation2 + $0x18] sm:$0xff] }
  0xdc   : > { %1268 = vmatmul.bf16.gmra.mxu2 %v1755_v15 }
  0xdd   : > { %1357 = vmatmul.bf16.gmra.mxu3 %v1759_v16 }
  0xea   : > { %1095 = vmatmul.bf16.gmra.mxu0 %v1763_v25 }
  0xeb   : > { %1184 = vmatmul.bf16.gmra.mxu1 %v1767_v26  ;;  %v2119_v26 = vld [vmem:[%s2522_s12 + $0x124] sm:$0xf] }
  0xec   : > { %1273 = vmatmul.bf16.gmra.mxu2 %v1771_v27  ;;  %v1844_v27 = vld [vmem:[%s2522_s12 + $0x130] sm:$0xf0] }
  0xed   : > { %1362 = vmatmul.bf16.gmra.mxu3 %v1775_v28  ;;  %v1850_v28 = vld [vmem:[%s2522_s12 + $0x128] sm:$0xf]  ;;  %v1847_v36 = vor.u32 %v2119_v26, %v1844_v27  ;;  %v2128_v26 = vld [vmem:[%s2522_s12 + $0x16c] sm:$0xf]  ;;  %v1884_v27 = vld [vmem:[%s2522_s12 + $0x178] sm:$0xf0] }
  0xfa   : > { %1100 = vmatmul.bf16.gmra.mxu0 %v1779_v37 }
  0xfb   : > { %1189 = vmatmul.bf16.gmra.mxu1 %v1783_v38 }
  0xfc   : > { %1278 = vmatmul.bf16.gmra.mxu2 %v1787_v39 }
  0xfd   : > { %1367 = vmatmul.bf16.gmra.mxu3 %v1791_v40  ;;  %v1851_v40 = vor.u32 %v2122_v29, %v1850_v28 }
 0x10a   : > { %1105 = vmatmul.bf16.gmra.mxu0 %v1795_v49 }
 0x10b   : > { %1194 = vmatmul.bf16.gmra.mxu1 %v1799_v50 }
 0x10c   : > { %1283 = vmatmul.bf16.gmra.mxu2 %v1803_v51  ;;  %v397_v51 = vld [vmem:[#allocation2 + $0xd8] sm:$0xff] }
 0x10d   : > { %1372 = vmatmul.bf16.gmra.mxu3 %v1807_v52 }
 0x11a   : > { %1110 = vmatmul.bf16.gmra.mxu0 %v1811_v61  ;;  %v1868_v61 = vld [vmem:[%s2522_s12 + $0x158] sm:$0xf0] }
 0x11b   : > { %1199 = vmatmul.bf16.gmra.mxu1 %v1815_v62  ;;  %v1871_v7 = vor.u32 %v2124_v60, %v1868_v61 }
 0x11c   : > { %1288 = vmatmul.bf16.gmra.mxu2 %v1819_v63 }
 0x11d   : > { %1377 = vmatmul.bf16.gmra.mxu3 %v1823_v0 }
 0x127   : > { %v1076_v11 = vpop.f32.mrf.mxu0 }
 0x128   : > { %v1165_v12 = vpop.f32.mrf.mxu1 }
 0x129   : > { %v1166_v15 = vadd.f32 %v1165_v12, %v1076_v11 }
 0x12a   : > { %1115 = vmatmul.bf16.gmra.mxu0 %v1827_v9 }
 0x12b   : > { %1204 = vmatmul.bf16.gmra.mxu1 %v1831_v10 }
 0x12c   : > { %1293 = vmatmul.bf16.gmra.mxu2 %v1835_v13 }
 0x12d   : > { %1382 = vmatmul.bf16.gmra.mxu3 %v1839_v14 }
 0x12f   : > { %v1254_v16 = vpop.f32.mrf.mxu2  ;;  %v1078_v19 = vpop.f32.mrf.mxu0 }
 0x130   : > { %v1343_v17 = vpop.f32.mrf.mxu3  ;;  %v1255_v18 = vadd.f32 %v1254_v16, %v1166_v15  ;;  %v1167_v20 = vpop.f32.mrf.mxu1 }
 0x131   : > { %v1168_v32 = vadd.f32 %v1167_v20, %v1078_v19  ;;  %v1874_v19 = vld [vmem:[%s2522_s12 + $0x160] sm:$0xf]  ;;  %v2129_v20 = vld [vmem:[%s2522_s12 + $0x16c] sm:$0xf0] }
 0x132   : > { %v1344_v22 = vadd.f32 %v1343_v17, %v1255_v18  ;;  %v399_v17 = vld [vmem:[#allocation2 + $0x50] sm:$0xff]  ;;  %v1875_v31 = vor.u32 %v2129_v20, %v1874_v19  ;;  %v1914_v20 = vld [vmem:[%s2522_s12 + $0x1a8] sm:$0xf] }
 0x133   : > { %v1908_v19 = vld [vmem:[%s2522_s12 + $0x1b0] sm:$0xf0] }
 0x134   : > { %v1423_v25 = vadd.f32 %v1344_v22, %v395_v21  ;;  %v2127_v22 = vld [vmem:[%s2522_s12 + $0x164] sm:$0xf] }
 0x136   : > { %1455 = vst [vmem:[#allocation2 + $0xb0] sm:$0xff] %v1423_v25  ;;  %v2130_v25 = vld [vmem:[%s2522_s12 + $0x174] sm:$0xf0] }
 0x137   : > { %v1256_v33 = vpop.f32.mrf.mxu2  ;;  %v1081_v38 = vpop.f32.mrf.mxu0 }
 0x138   : > { %v1345_v34 = vpop.f32.mrf.mxu3  ;;  %v1257_v37 = vadd.f32 %v1256_v33, %v1168_v32  ;;  %v1170_v39 = vpop.f32.mrf.mxu1  ;;  %v1879_v32 = vor.u32 %v2127_v22, %v1876_v23  ;;  %v2136_v22 = vld [vmem:[%s2522_s12 + $0x1ac] sm:$0xf]  ;;  %v1916_v23 = vld [vmem:[%s2522_s12 + $0x1b8] sm:$0xf0] }
 0x139   : > { %v1171_v45 = vadd.f32 %v1170_v39, %v1081_v38  ;;  %v400_v38 = vld [vmem:[#allocation2 + $0x68] sm:$0xff] }
 0x13a   : > { %v1346_v43 = vadd.f32 %v1345_v34, %v1257_v37  ;;  %1120 = vmatmul.bf16.gmra.mxu0 %v1843_v35  ;;  %v1887_v37 = vor.u32 %v2128_v26, %v1884_v27 }
 0x13b   : > { %1209 = vmatmul.bf16.gmra.mxu1 %v1847_v36  ;;  %v1883_v36 = vor.u32 %v2130_v25, %v1882_v24 }
 0x13c   : > { %v1424_v44 = vadd.f32 %v1346_v43, %v396_v42  ;;  %1298 = vmatmul.bf16.gmra.mxu2 %v1851_v40 }
 0x13d   : > { %1387 = vmatmul.bf16.gmra.mxu3 %v1855_v41 }
 0x13e   : > { %1456 = vst [vmem:[#allocation2] sm:$0xff] %v1424_v44 }
 0x13f   : > { %v1259_v46 = vpop.f32.mrf.mxu2  ;;  %v1083_v49 = vpop.f32.mrf.mxu0 }
 0x140   : > { %v1348_v47 = vpop.f32.mrf.mxu3  ;;  %v1260_v48 = vadd.f32 %v1259_v46, %v1171_v45  ;;  %v1172_v50 = vpop.f32.mrf.mxu1 }
 0x141   : > { %v1173_v62 = vadd.f32 %v1172_v50, %v1083_v49  ;;  %v1890_v49 = vld [vmem:[%s2522_s12 + $0x180] sm:$0xf]  ;;  %v2133_v50 = vld [vmem:[%s2522_s12 + $0x18c] sm:$0xf0] }
 0x142   : > { %v1349_v52 = vadd.f32 %v1348_v47, %v1260_v48  ;;  %v401_v47 = vld [vmem:[#allocation2 + $0x30] sm:$0xff]  ;;  %v1891_v61 = vor.u32 %v2133_v50, %v1890_v49  ;;  %v1930_v50 = vld [vmem:[%s2522_s12 + $0x1c8] sm:$0xf] }
 0x143   : > { %v1924_v49 = vld [vmem:[%s2522_s12 + $0x1d0] sm:$0xf0] }
 0x144   : > { %v1425_v55 = vadd.f32 %v1349_v52, %v397_v51  ;;  %v2131_v52 = vld [vmem:[%s2522_s12 + $0x184] sm:$0xf] }
 0x146   : > { %1457 = vst [vmem:[#allocation2 + $0xd8] sm:$0xff] %v1425_v55  ;;  %v2134_v55 = vld [vmem:[%s2522_s12 + $0x194] sm:$0xf0] }
 0x147   : > { %v1261_v63 = vpop.f32.mrf.mxu2  ;;  %v1086_v4 = vpop.f32.mrf.mxu0 }
 0x148   : > { %v1350_v0 = vpop.f32.mrf.mxu3  ;;  %v1262_v3 = vadd.f32 %v1261_v63, %v1173_v62  ;;  %v1175_v5 = vpop.f32.mrf.mxu1  ;;  %v1895_v62 = vor.u32 %v2131_v52, %v1892_v53  ;;  %v2140_v52 = vld [vmem:[%s2522_s12 + $0x1cc] sm:$0xf]  ;;  %v1932_v53 = vld [vmem:[%s2522_s12 + $0x1d8] sm:$0xf0] }
 0x149   : > { %v1176_v11 = vadd.f32 %v1175_v5, %v1086_v4  ;;  %v402_v4 = vld [vmem:[#allocation2 + $0x48] sm:$0xff] }
 0x14a   : > { %v1351_v9 = vadd.f32 %v1350_v0, %v1262_v3  ;;  %1125 = vmatmul.bf16.gmra.mxu0 %v1859_v1  ;;  %v1903_v3 = vor.u32 %v2132_v56, %v1900_v57 }
 0x14b   : > { %1214 = vmatmul.bf16.gmra.mxu1 %v1863_v2  ;;  %v1899_v2 = vor.u32 %v2134_v55, %v1898_v54 }
 0x14c   : > { %v1426_v10 = vadd.f32 %v1351_v9, %v398_v8  ;;  %1303 = vmatmul.bf16.gmra.mxu2 %v1867_v6 }
 0x14d   : > { %1392 = vmatmul.bf16.gmra.mxu3 %v1871_v7 }
 0x14e   : > { %1458 = vst [vmem:[#allocation2 + $0x18] sm:$0xff] %v1426_v10 }
 0x14f   : > { %v1264_v12 = vpop.f32.mrf.mxu2  ;;  %v1088_v15 = vpop.f32.mrf.mxu0 }
 0x150   : > { %v1353_v13 = vpop.f32.mrf.mxu3  ;;  %v1265_v14 = vadd.f32 %v1264_v12, %v1176_v11  ;;  %v1177_v16 = vpop.f32.mrf.mxu1 }
 0x151   : > { %v1178_v28 = vadd.f32 %v1177_v16, %v1088_v15  ;;  %v1906_v15 = vld [vmem:[%s2522_s12 + $0x1a0] sm:$0xf]  ;;  %v2137_v16 = vld [vmem:[%s2522_s12 + $0x1ac] sm:$0xf0] }
 0x152   : > { %v1354_v18 = vadd.f32 %v1353_v13, %v1265_v14  ;;  %v403_v13 = vld [vmem:[#allocation2 + $0x80] sm:$0xff]  ;;  %v1907_v27 = vor.u32 %v2137_v16, %v1906_v15  ;;  %v1940_v15 = vld [vmem:[%s2522_s12 + $0x1f0] sm:$0xf0]  ;;  %v1946_v16 = vld [vmem:[%s2522_s12 + $0x1e8] sm:$0xf] }
 0x154   : > { %v1427_v21 = vadd.f32 %v1354_v18, %v399_v17  ;;  %v2135_v18 = vld [vmem:[%s2522_s12 + $0x1a4] sm:$0xf] }
 0x156   : > { %1459 = vst [vmem:[#allocation2 + $0x50] sm:$0xff] %v1427_v21  ;;  %v2138_v21 = vld [vmem:[%s2522_s12 + $0x1b4] sm:$0xf0] }
 0x157   : > { %v1266_v29 = vpop.f32.mrf.mxu2  ;;  %v1091_v34 = vpop.f32.mrf.mxu0 }
 0x158   : > { %v1355_v30 = vpop.f32.mrf.mxu3  ;;  %v1267_v33 = vadd.f32 %v1266_v29, %v1178_v28  ;;  %v1180_v35 = vpop.f32.mrf.mxu1  ;;  %v1911_v28 = vor.u32 %v2135_v18, %v1908_v19  ;;  %v2144_v18 = vld [vmem:[%s2522_s12 + $0x1ec] sm:$0xf]  ;;  %v1948_v19 = vld [vmem:[%s2522_s12 + $0x1f8] sm:$0xf0] }
 0x159   : > { %v1181_v41 = vadd.f32 %v1180_v35, %v1091_v34  ;;  %v404_v34 = vld [vmem:[#allocation2 + $0x88] sm:$0xff] }
 0x15a   : > { %v1356_v39 = vadd.f32 %v1355_v30, %v1267_v33  ;;  %1130 = vmatmul.bf16.gmra.mxu0 %v1875_v31  ;;  %v1919_v33 = vor.u32 %v2136_v22, %v1916_v23 }
 0x15b   : > { %1219 = vmatmul.bf16.gmra.mxu1 %v1879_v32  ;;  %v1915_v32 = vor.u32 %v2138_v21, %v1914_v20 }
 0x15c   : > { %v1428_v40 = vadd.f32 %v1356_v39, %v400_v38  ;;  %1308 = vmatmul.bf16.gmra.mxu2 %v1883_v36 }
 0x15d   : > { %1397 = vmatmul.bf16.gmra.mxu3 %v1887_v37 }
 0x15e   : > { %1460 = vst [vmem:[#allocation2 + $0x68] sm:$0xff] %v1428_v40 }
 0x15f   : > { %v1269_v42 = vpop.f32.mrf.mxu2  ;;  %v1093_v45 = vpop.f32.mrf.mxu0 }
 0x160   : > { %v1358_v43 = vpop.f32.mrf.mxu3  ;;  %v1270_v44 = vadd.f32 %v1269_v42, %v1181_v41  ;;  %v1182_v46 = vpop.f32.mrf.mxu1 }
 0x161   : > { %v1183_v58 = vadd.f32 %v1182_v46, %v1093_v45  ;;  %v1922_v45 = vld [vmem:[%s2522_s12 + $0x1c0] sm:$0xf]  ;;  %v2141_v46 = vld [vmem:[%s2522_s12 + $0x1cc] sm:$0xf0] }
 0x162   : > { %v1359_v48 = vadd.f32 %v1358_v43, %v1270_v44  ;;  %v405_v43 = vld [vmem:[#allocation2 + $0xe8] sm:$0xff]  ;;  %v1923_v57 = vor.u32 %v2141_v46, %v1922_v45 }
 0x164   : > { %v1429_v51 = vadd.f32 %v1359_v48, %v401_v47  ;;  %v2139_v48 = vld [vmem:[%s2522_s12 + $0x1c4] sm:$0xf] }
 0x166   : > { %1461 = vst [vmem:[#allocation2 + $0x30] sm:$0xff] %v1429_v51  ;;  %v2142_v51 = vld [vmem:[%s2522_s12 + $0x1d4] sm:$0xf0] }
 0x167   : > { %v1271_v59 = vpop.f32.mrf.mxu2  ;;  %v1096_v0 = vpop.f32.mrf.mxu0 }
 0x168   : > { %v1360_v60 = vpop.f32.mrf.mxu3  ;;  %v1272_v63 = vadd.f32 %v1271_v59, %v1183_v58  ;;  %v1185_v1 = vpop.f32.mrf.mxu1  ;;  %v1927_v58 = vor.u32 %v2139_v48, %v1924_v49  ;;  %v410_v48 = vld [vmem:[#allocation2 + $0x78] sm:$0xff] }
 0x169   : > { %v1186_v7 = vadd.f32 %v1185_v1, %v1096_v0  ;;  %v406_v0 = vld [vmem:[#allocation2 + $0xb8] sm:$0xff] }
 0x16a   : > { %v1361_v5 = vadd.f32 %v1360_v60, %v1272_v63  ;;  %1135 = vmatmul.bf16.gmra.mxu0 %v1891_v61  ;;  %v1935_v63 = vor.u32 %v2140_v52, %v1932_v53 }
 0x16b   : > { %1224 = vmatmul.bf16.gmra.mxu1 %v1895_v62  ;;  %v1931_v62 = vor.u32 %v2142_v51, %v1930_v50 }
 0x16c   : > { %v1430_v6 = vadd.f32 %v1361_v5, %v402_v4  ;;  %1313 = vmatmul.bf16.gmra.mxu2 %v1899_v2 }
 0x16d   : > { %1402 = vmatmul.bf16.gmra.mxu3 %v1903_v3 }
 0x16e   : > { %1462 = vst [vmem:[#allocation2 + $0x48] sm:$0xff] %v1430_v6 }
 0x16f   : > { %v1274_v8 = vpop.f32.mrf.mxu2  ;;  %v1098_v11 = vpop.f32.mrf.mxu0 }
 0x170   : > { %v1363_v9 = vpop.f32.mrf.mxu3  ;;  %v1275_v10 = vadd.f32 %v1274_v8, %v1186_v7  ;;  %v1187_v12 = vpop.f32.mrf.mxu1 }
 0x171   : > { %v1188_v24 = vadd.f32 %v1187_v12, %v1098_v11  ;;  %v1938_v11 = vld [vmem:[%s2522_s12 + $0x1e0] sm:$0xf]  ;;  %v2145_v12 = vld [vmem:[%s2522_s12 + $0x1ec] sm:$0xf0] }
 0x172   : > { %v1364_v14 = vadd.f32 %v1363_v9, %v1275_v10  ;;  %v407_v9 = vld [vmem:[#allocation2 + $0x60] sm:$0xff]  ;;  %v1939_v23 = vor.u32 %v2145_v12, %v1938_v11 }
 0x173   : > { %v413_v11 = vld [vmem:[#allocation2 + $0x40] sm:$0xff] }
 0x174   : > { %v1431_v17 = vadd.f32 %v1364_v14, %v403_v13  ;;  %v2143_v14 = vld [vmem:[%s2522_s12 + $0x1e4] sm:$0xf] }
 0x176   : > { %1463 = vst [vmem:[#allocation2 + $0x80] sm:$0xff] %v1431_v17  ;;  %v2146_v17 = vld [vmem:[%s2522_s12 + $0x1f4] sm:$0xf0] }
 0x177   : > { %v1276_v25 = vpop.f32.mrf.mxu2  ;;  %v1101_v30 = vpop.f32.mrf.mxu0 }
 0x178   : > { %v1365_v26 = vpop.f32.mrf.mxu3  ;;  %v1277_v29 = vadd.f32 %v1276_v25, %v1188_v24  ;;  %v1190_v31 = vpop.f32.mrf.mxu1  ;;  %v1943_v24 = vor.u32 %v2143_v14, %v1940_v15 }
 0x179   : > { %v1191_v37 = vadd.f32 %v1190_v31, %v1101_v30  ;;  %v408_v30 = vld [vmem:[#allocation2 + $0xf0] sm:$0xff] }
 0x17a   : > { %v1366_v35 = vadd.f32 %v1365_v26, %v1277_v29  ;;  %1140 = vmatmul.bf16.gmra.mxu0 %v1907_v27  ;;  %v1951_v29 = vor.u32 %v2144_v18, %v1948_v19 }
 0x17b   : > { %1229 = vmatmul.bf16.gmra.mxu1 %v1911_v28  ;;  %v1947_v28 = vor.u32 %v2146_v17, %v1946_v16 }
 0x17c   : > { %v1432_v36 = vadd.f32 %v1366_v35, %v404_v34  ;;  %1318 = vmatmul.bf16.gmra.mxu2 %v1915_v32 }
 0x17d   : > { %1407 = vmatmul.bf16.gmra.mxu3 %v1919_v33 }
 0x17e   : > { %1464 = vst [vmem:[#allocation2 + $0x88] sm:$0xff] %v1432_v36 }
 0x17f   : > { %v1279_v38 = vpop.f32.mrf.mxu2  ;;  %v1103_v41 = vpop.f32.mrf.mxu0 }
 0x180   : > { %v1368_v39 = vpop.f32.mrf.mxu3  ;;  %v1280_v40 = vadd.f32 %v1279_v38, %v1191_v37  ;;  %v1192_v42 = vpop.f32.mrf.mxu1 }
 0x181   : > { %v1193_v54 = vadd.f32 %v1192_v42, %v1103_v41 }
 0x182   : > { %v1369_v44 = vadd.f32 %v1368_v39, %v1280_v40  ;;  %v409_v39 = vld [vmem:[#allocation2 + $0x8] sm:$0xff] }
 0x184   : > { %v1433_v47 = vadd.f32 %v1369_v44, %v405_v43 }
 0x186   : > { %1465 = vst [vmem:[#allocation2 + $0xe8] sm:$0xff] %v1433_v47 }
 0x187   : > { %v1281_v55 = vpop.f32.mrf.mxu2  ;;  %v1106_v60 = vpop.f32.mrf.mxu0 }
 0x188   : > { %v1370_v56 = vpop.f32.mrf.mxu3  ;;  %v1282_v59 = vadd.f32 %v1281_v55, %v1193_v54  ;;  %v1195_v61 = vpop.f32.mrf.mxu1 }
 0x189   : > { %v1196_v3 = vadd.f32 %v1195_v61, %v1106_v60 }
 0x18a   : > { %v1371_v1 = vadd.f32 %v1370_v56, %v1282_v59  ;;  %1145 = vmatmul.bf16.gmra.mxu0 %v1923_v57  ;;  %v411_v57 = vld [vmem:[#allocation2 + $0x38] sm:$0xff] }
 0x18b   : > { %1234 = vmatmul.bf16.gmra.mxu1 %v1927_v58 }
 0x18c   : > { %v1434_v2 = vadd.f32 %v1371_v1, %v406_v0  ;;  %1323 = vmatmul.bf16.gmra.mxu2 %v1931_v62 }
 0x18d   : > { %1412 = vmatmul.bf16.gmra.mxu3 %v1935_v63 }
 0x18e   : > { %1466 = vst [vmem:[#allocation2 + $0xb8] sm:$0xff] %v1434_v2  ;;  %v412_v2 = vld [vmem:[#allocation2 + $0x58] sm:$0xff] }
 0x18f   : > { %v1284_v4 = vpop.f32.mrf.mxu2  ;;  %v1108_v7 = vpop.f32.mrf.mxu0 }
 0x190   : > { %v1373_v5 = vpop.f32.mrf.mxu3  ;;  %v1285_v6 = vadd.f32 %v1284_v4, %v1196_v3  ;;  %v1197_v8 = vpop.f32.mrf.mxu1 }
 0x191   : > { %v1198_v20 = vadd.f32 %v1197_v8, %v1108_v7 }
 0x192   : > { %v1374_v10 = vadd.f32 %v1373_v5, %v1285_v6 }
 0x194   : > { %v1435_v13 = vadd.f32 %v1374_v10, %v407_v9 }
 0x196   : > { %1467 = vst [vmem:[#allocation2 + $0x60] sm:$0xff] %v1435_v13 }
 0x197   : > { %v1286_v21 = vpop.f32.mrf.mxu2  ;;  %v1111_v26 = vpop.f32.mrf.mxu0 }
 0x198   : > { %v1375_v22 = vpop.f32.mrf.mxu3  ;;  %v1287_v25 = vadd.f32 %v1286_v21, %v1198_v20  ;;  %v1200_v27 = vpop.f32.mrf.mxu1  ;;  %v414_v20 = vld [vmem:[#allocation2 + $0xc8] sm:$0xff] }
 0x199   : > { %v1201_v33 = vadd.f32 %v1200_v27, %v1111_v26 }
 0x19a   : > { %v1376_v31 = vadd.f32 %v1375_v22, %v1287_v25  ;;  %1150 = vmatmul.bf16.gmra.mxu0 %v1939_v23 }
 0x19b   : > { %1239 = vmatmul.bf16.gmra.mxu1 %v1943_v24 }
 0x19c   : > { %v1436_v32 = vadd.f32 %v1376_v31, %v408_v30  ;;  %1328 = vmatmul.bf16.gmra.mxu2 %v1947_v28 }
 0x19d   : > { %1417 = vmatmul.bf16.gmra.mxu3 %v1951_v29  ;;  %v415_v29 = vld [vmem:[#allocation2 + $0xe0] sm:$0xff] }
 0x19e   : > { %1468 = vst [vmem:[#allocation2 + $0xf0] sm:$0xff] %v1436_v32 }
 0x19f   : > { %v1289_v34 = vpop.f32.mrf.mxu2  ;;  %v1113_v37 = vpop.f32.mrf.mxu0 }
 0x1a0   : > { %v1378_v35 = vpop.f32.mrf.mxu3  ;;  %v1290_v36 = vadd.f32 %v1289_v34, %v1201_v33  ;;  %v1202_v38 = vpop.f32.mrf.mxu1 }
 0x1a1   : > { %v1203_v42 = vadd.f32 %v1202_v38, %v1113_v37  ;;  %v416_v38 = vld [vmem:[#allocation2 + $0x90] sm:$0xff] }
 0x1a2   : > { %v1379_v40 = vadd.f32 %v1378_v35, %v1290_v36 }
 0x1a4   : > { %v1437_v41 = vadd.f32 %v1379_v40, %v409_v39 }
 0x1a6   : > { %1469 = vst [vmem:[#allocation2 + $0x8] sm:$0xff] %v1437_v41 }
 0x1a7   : > { %v1291_v43 = vpop.f32.mrf.mxu2  ;;  %v1116_v46 = vpop.f32.mrf.mxu0 }
 0x1a8   : > { %v1380_v44 = vpop.f32.mrf.mxu3  ;;  %v1292_v45 = vadd.f32 %v1291_v43, %v1203_v42  ;;  %v1205_v47 = vpop.f32.mrf.mxu1 }
 0x1a9   : > { %v1206_v51 = vadd.f32 %v1205_v47, %v1116_v46  ;;  %v417_v47 = vld [vmem:[#allocation2 + $0x70] sm:$0xff] }
 0x1aa   : > { %v1381_v49 = vadd.f32 %v1380_v44, %v1292_v45 }
 0x1ac   : > { %v1438_v50 = vadd.f32 %v1381_v49, %v410_v48 }
 0x1ae   : > { %1470 = vst [vmem:[#allocation2 + $0x78] sm:$0xff] %v1438_v50 }
 0x1af   : > { %v1294_v52 = vpop.f32.mrf.mxu2  ;;  %v1118_v55 = vpop.f32.mrf.mxu0 }
 0x1b0   : > { %v1383_v53 = vpop.f32.mrf.mxu3  ;;  %v1295_v54 = vadd.f32 %v1294_v52, %v1206_v51  ;;  %v1207_v56 = vpop.f32.mrf.mxu1 }
 0x1b1   : > { %v1208_v60 = vadd.f32 %v1207_v56, %v1118_v55  ;;  %v418_v56 = vld [vmem:[#allocation2 + $0xc0] sm:$0xff] }
 0x1b2   : > { %v1384_v58 = vadd.f32 %v1383_v53, %v1295_v54 }
 0x1b4   : > { %v1439_v59 = vadd.f32 %v1384_v58, %v411_v57 }
 0x1b6   : > { %1471 = vst [vmem:[#allocation2 + $0x38] sm:$0xff] %v1439_v59 }
 0x1b7   : > { %v1296_v61 = vpop.f32.mrf.mxu2  ;;  %v1121_v0 = vpop.f32.mrf.mxu0 }
 0x1b8   : > { %v1385_v62 = vpop.f32.mrf.mxu3  ;;  %v1297_v63 = vadd.f32 %v1296_v61, %v1208_v60  ;;  %v1210_v1 = vpop.f32.mrf.mxu1 }
 0x1b9   : > { %v1211_v5 = vadd.f32 %v1210_v1, %v1121_v0  ;;  %v419_v1 = vld [vmem:[#allocation2 + $0xa8] sm:$0xff] }
 0x1ba   : > { %v1386_v3 = vadd.f32 %v1385_v62, %v1297_v63 }
 0x1bc   : > { %v1440_v4 = vadd.f32 %v1386_v3, %v412_v2 }
 0x1be   : > { %1472 = vst [vmem:[#allocation2 + $0x58] sm:$0xff] %v1440_v4 }
 0x1bf   : > { %v1299_v6 = vpop.f32.mrf.mxu2  ;;  %v1123_v9 = vpop.f32.mrf.mxu0 }
 0x1c0   : > { %v1388_v7 = vpop.f32.mrf.mxu3  ;;  %v1300_v8 = vadd.f32 %v1299_v6, %v1211_v5  ;;  %v1212_v10 = vpop.f32.mrf.mxu1 }
 0x1c1   : > { %v1213_v14 = vadd.f32 %v1212_v10, %v1123_v9  ;;  %v420_v10 = vld [vmem:[#allocation2 + $0xd0] sm:$0xff] }
 0x1c2   : > { %v1389_v12 = vadd.f32 %v1388_v7, %v1300_v8 }
 0x1c4   : > { %v1441_v13 = vadd.f32 %v1389_v12, %v413_v11 }
 0x1c6   : > { %1473 = vst [vmem:[#allocation2 + $0x40] sm:$0xff] %v1441_v13 }
 0x1c7   : > { %v1301_v15 = vpop.f32.mrf.mxu2  ;;  %v1126_v18 = vpop.f32.mrf.mxu0 }
 0x1c8   : > { %v1390_v16 = vpop.f32.mrf.mxu3  ;;  %v1302_v17 = vadd.f32 %v1301_v15, %v1213_v14  ;;  %v1215_v19 = vpop.f32.mrf.mxu1 }
 0x1c9   : > { %v1216_v23 = vadd.f32 %v1215_v19, %v1126_v18  ;;  %v421_v19 = vld [vmem:[#allocation2 + $0x10] sm:$0xff] }
 0x1ca   : > { %v1391_v21 = vadd.f32 %v1390_v16, %v1302_v17 }
 0x1cc   : > { %v1442_v22 = vadd.f32 %v1391_v21, %v414_v20 }
 0x1ce   : > { %1474 = vst [vmem:[#allocation2 + $0xc8] sm:$0xff] %v1442_v22 }
 0x1cf   : > { %v1304_v24 = vpop.f32.mrf.mxu2  ;;  %v1128_v27 = vpop.f32.mrf.mxu0 }
 0x1d0   : > { %v1393_v25 = vpop.f32.mrf.mxu3  ;;  %v1305_v26 = vadd.f32 %v1304_v24, %v1216_v23  ;;  %v1217_v28 = vpop.f32.mrf.mxu1 }
 0x1d1   : > { %v1218_v32 = vadd.f32 %v1217_v28, %v1128_v27  ;;  %v422_v28 = vld [vmem:[#allocation2 + $0x28] sm:$0xff] }
 0x1d2   : > { %v1394_v30 = vadd.f32 %v1393_v25, %v1305_v26 }
 0x1d4   : > { %v1443_v31 = vadd.f32 %v1394_v30, %v415_v29 }
 0x1d6   : > { %1475 = vst [vmem:[#allocation2 + $0xe0] sm:$0xff] %v1443_v31 }
 0x1d7   : > { %v1306_v33 = vpop.f32.mrf.mxu2  ;;  %v1131_v36 = vpop.f32.mrf.mxu0 }
 0x1d8   : > { %v1395_v34 = vpop.f32.mrf.mxu3  ;;  %v1307_v35 = vadd.f32 %v1306_v33, %v1218_v32  ;;  %v1220_v37 = vpop.f32.mrf.mxu1 }
 0x1d9   : > { %v1221_v41 = vadd.f32 %v1220_v37, %v1131_v36  ;;  %v423_v37 = vld [vmem:[#allocation2 + $0xa0] sm:$0xff] }
 0x1da   : > { %v1396_v39 = vadd.f32 %v1395_v34, %v1307_v35 }
 0x1dc   : > { %v1444_v40 = vadd.f32 %v1396_v39, %v416_v38 }
 0x1de   : > { %1476 = vst [vmem:[#allocation2 + $0x90] sm:$0xff] %v1444_v40 }
 0x1df   : > { %v1309_v42 = vpop.f32.mrf.mxu2  ;;  %v1133_v45 = vpop.f32.mrf.mxu0 }
 0x1e0   : > { %v1398_v43 = vpop.f32.mrf.mxu3  ;;  %v1310_v44 = vadd.f32 %v1309_v42, %v1221_v41  ;;  %v1222_v46 = vpop.f32.mrf.mxu1 }
 0x1e1   : > { %v1223_v50 = vadd.f32 %v1222_v46, %v1133_v45 }
 0x1e2   : > { %v1399_v48 = vadd.f32 %v1398_v43, %v1310_v44  ;;  %v424_v44 = vld [vmem:[#allocation2 + $0xf8] sm:$0xff] }
 0x1e4   : > { %v1445_v49 = vadd.f32 %v1399_v48, %v417_v47 }
 0x1e6   : > { %1477 = vst [vmem:[#allocation2 + $0x70] sm:$0xff] %v1445_v49 }
 0x1e7   : > { %v1311_v51 = vpop.f32.mrf.mxu2  ;;  %v1136_v54 = vpop.f32.mrf.mxu0 }
 0x1e8   : > { %v1400_v52 = vpop.f32.mrf.mxu3  ;;  %v1312_v53 = vadd.f32 %v1311_v51, %v1223_v50  ;;  %v1225_v55 = vpop.f32.mrf.mxu1 }
 0x1e9   : > { %v1226_v59 = vadd.f32 %v1225_v55, %v1136_v54 }
 0x1ea   : > { %v1401_v57 = vadd.f32 %v1400_v52, %v1312_v53  ;;  %v425_v53 = vld [vmem:[#allocation2 + $0x20] sm:$0xff] }
 0x1ec   : > { %v1446_v58 = vadd.f32 %v1401_v57, %v418_v56 }
 0x1ee   : > { %1478 = vst [vmem:[#allocation2 + $0xc0] sm:$0xff] %v1446_v58 }
 0x1ef   : > { %v1314_v60 = vpop.f32.mrf.mxu2  ;;  %v1138_v63 = vpop.f32.mrf.mxu0 }
 0x1f0   : > { %v1403_v61 = vpop.f32.mrf.mxu3  ;;  %v1315_v62 = vadd.f32 %v1314_v60, %v1226_v59  ;;  %v1227_v0 = vpop.f32.mrf.mxu1 }
 0x1f1   : > { %v1228_v4 = vadd.f32 %v1227_v0, %v1138_v63 }
 0x1f2   : > { %v1404_v2 = vadd.f32 %v1403_v61, %v1315_v62  ;;  %v426_v61 = vld [vmem:[#allocation2 + $0x98] sm:$0xff] }
 0x1f4   : > { %v1447_v3 = vadd.f32 %v1404_v2, %v419_v1 }
 0x1f6   : > { %1479 = vst [vmem:[#allocation2 + $0xa8] sm:$0xff] %v1447_v3 }
 0x1f7   : > { %v1316_v5 = vpop.f32.mrf.mxu2  ;;  %v1141_v8 = vpop.f32.mrf.mxu0 }
 0x1f8   : > { %v1405_v6 = vpop.f32.mrf.mxu3  ;;  %v1317_v7 = vadd.f32 %v1316_v5, %v1228_v4  ;;  %v1230_v9 = vpop.f32.mrf.mxu1 }
 0x1f9   : > { %v1231_v13 = vadd.f32 %v1230_v9, %v1141_v8 }
 0x1fa   : > { %v1406_v11 = vadd.f32 %v1405_v6, %v1317_v7 }
 0x1fc   : > { %v1448_v12 = vadd.f32 %v1406_v11, %v420_v10 }
 0x1fe   : > { %1480 = vst [vmem:[#allocation2 + $0xd0] sm:$0xff] %v1448_v12 }
 0x1ff   : > { %v1319_v14 = vpop.f32.mrf.mxu2  ;;  %v1143_v17 = vpop.f32.mrf.mxu0 }
 0x200   : > { %v1408_v15 = vpop.f32.mrf.mxu3  ;;  %v1320_v16 = vadd.f32 %v1319_v14, %v1231_v13  ;;  %v1232_v18 = vpop.f32.mrf.mxu1 }
 0x201   : > { %v1233_v22 = vadd.f32 %v1232_v18, %v1143_v17 }
 0x202   : > { %v1409_v20 = vadd.f32 %v1408_v15, %v1320_v16 }
 0x204   : > { %v1449_v21 = vadd.f32 %v1409_v20, %v421_v19 }
 0x206   : > { %1481 = vst [vmem:[#allocation2 + $0x10] sm:$0xff] %v1449_v21 }
 0x207   : > { %v1321_v23 = vpop.f32.mrf.mxu2  ;;  %v1146_v26 = vpop.f32.mrf.mxu0 }
 0x208   : > { %v1410_v24 = vpop.f32.mrf.mxu3  ;;  %v1322_v25 = vadd.f32 %v1321_v23, %v1233_v22  ;;  %v1235_v27 = vpop.f32.mrf.mxu1 }
 0x209   : > { %v1236_v31 = vadd.f32 %v1235_v27, %v1146_v26 }
 0x20a   : > { %v1411_v29 = vadd.f32 %v1410_v24, %v1322_v25 }
 0x20c   : > { %v1450_v30 = vadd.f32 %v1411_v29, %v422_v28 }
 0x20e   : > { %1482 = vst [vmem:[#allocation2 + $0x28] sm:$0xff] %v1450_v30 }
 0x20f   : > { %v1324_v32 = vpop.f32.mrf.mxu2  ;;  %v1148_v35 = vpop.f32.mrf.mxu0 }
 0x210   : > { %v1413_v33 = vpop.f32.mrf.mxu3  ;;  %v1325_v34 = vadd.f32 %v1324_v32, %v1236_v31  ;;  %v1237_v36 = vpop.f32.mrf.mxu1 }
 0x211   : > { %v1238_v40 = vadd.f32 %v1237_v36, %v1148_v35 }
 0x212   : > { %v1414_v38 = vadd.f32 %v1413_v33, %v1325_v34 }
 0x214   : > { %v1451_v39 = vadd.f32 %v1414_v38, %v423_v37 }
 0x216   : > { %1483 = vst [vmem:[#allocation2 + $0xa0] sm:$0xff] %v1451_v39 }
 0x217   : > { %v1326_v41 = vpop.f32.mrf.mxu2  ;;  %v1151_v45 = vpop.f32.mrf.mxu0 }
 0x218   : > { %v1415_v42 = vpop.f32.mrf.mxu3  ;;  %v1327_v43 = vadd.f32 %v1326_v41, %v1238_v40  ;;  %v1240_v46 = vpop.f32.mrf.mxu1 }
 0x219   : > { %v1241_v49 = vadd.f32 %v1240_v46, %v1151_v45 }
 0x21a   : > { %v1416_v47 = vadd.f32 %v1415_v42, %v1327_v43 }
 0x21c   : > { %v1452_v48 = vadd.f32 %v1416_v47, %v424_v44 }
 0x21e   : > { %1484 = vst [vmem:[#allocation2 + $0xf8] sm:$0xff] %v1452_v48 }
 0x21f   : > { %v1329_v50 = vpop.f32.mrf.mxu2  ;;  %v1153_v55 = vpop.f32.mrf.mxu0 }
 0x220   : > { %v1418_v51 = vpop.f32.mrf.mxu3  ;;  %v1330_v52 = vadd.f32 %v1329_v50, %v1241_v49  ;;  %v1242_v56 = vpop.f32.mrf.mxu1 }
 0x221   : > { %v1243_v58 = vadd.f32 %v1242_v56, %v1153_v55 }
 0x222   : > { %v1419_v54 = vadd.f32 %v1418_v51, %v1330_v52 }
 0x224   : > { %v1453_v57 = vadd.f32 %v1419_v54, %v425_v53 }
 0x226   : > { %1485 = vst [vmem:[#allocation2 + $0x20] sm:$0xff] %v1453_v57 }
 0x227   : > { %v1331_v59 = vpop.f32.mrf.mxu2 }
 0x228   : > { %v1332_v60 = vadd.f32 %v1331_v59, %v1243_v58  ;;  %v1420_v62 = vpop.f32.mrf.mxu3 }
 0x22a   : > { %v1421_v63 = vadd.f32 %v1420_v62, %v1332_v60  ;;  %1490 = sbr.rel (%p2080_p13) target bundleno = 594 (0x252), region = 63 }
 0x22c   : > { %v1454_v0 = vadd.f32 %v1421_v63, %v426_v61 }
 0x22e   : > { %1486 = vst [vmem:[#allocation2 + $0x98] sm:$0xff] %v1454_v0 }
 0x22f   : > { %v1491_v1 = vld [vmem:[#allocation2 + $0xb0] sm:$0xff]  ;;  %v2689_v2 = vld [vmem:[%s2778_s2] ss:$0 sm:$0xff]  ;;  %v1493_v4 = vld [vmem:[#allocation2 + $0xd8] sm:$0xff] }
 0x230   : > { %v1492_v3 = vld [vmem:[#allocation2] sm:$0xff]  ;;  %v1494_v5 = vld [vmem:[#allocation2 + $0x18] sm:$0xff]  ;;  %v1527_v6 = vadd.f32 %v2689_v2, %v1491_v1  ;;  %v1529_v8 = vadd.f32 %v2689_v2, %v1493_v4  ;;  %v1495_v9 = vld [vmem:[#allocation2 + $0x50] sm:$0xff] }
 0x231   : > { %v1528_v7 = vadd.f32 %v2689_v2, %v1492_v3  ;;  %v1496_v10 = vld [vmem:[#allocation2 + $0x68] sm:$0xff]  ;;  %v1530_v11 = vadd.f32 %v2689_v2, %v1494_v5  ;;  %v1497_v12 = vld [vmem:[#allocation2 + $0x30] sm:$0xff]  ;;  %v1531_v13 = vadd.f32 %v2689_v2, %v1495_v9  ;;  %v1499_v16 = vld [vmem:[#allocation2 + $0x80] sm:$0xff] }
 0x232   : > { %1559 = vst [vmem:[%s2520_s30] sm:$0xff] %v1527_v6  ;;  %v1498_v14 = vld [vmem:[#allocation2 + $0x48] sm:$0xff]  ;;  %v1532_v15 = vadd.f32 %v2689_v2, %v1496_v10  ;;  %v1533_v17 = vadd.f32 %v2689_v2, %v1497_v12  ;;  %v1535_v21 = vadd.f32 %v2689_v2, %v1499_v16  ;;  %v1502_v22 = vld [vmem:[#allocation2 + $0xb8] sm:$0xff]  ;;  %v1503_v24 = vld [vmem:[#allocation2 + $0x60] sm:$0xff] }
 0x233   : > { %1560 = vst [vmem:[%s2520_s30 + $0x8] sm:$0xff] %v1528_v7  ;;  %v1500_v18 = vld [vmem:[#allocation2 + $0x88] sm:$0xff]  ;;  %v1534_v19 = vadd.f32 %v2689_v2, %v1498_v14  ;;  %v1504_v26 = vld [vmem:[#allocation2 + $0xf0] sm:$0xff]  ;;  %v1538_v27 = vadd.f32 %v2689_v2, %v1502_v22  ;;  %v1539_v29 = vadd.f32 %v2689_v2, %v1503_v24  ;;  %v1506_v30 = vld [vmem:[#allocation2 + $0x78] sm:$0xff] }
 0x234   : > { %1561 = vst [vmem:[%s2520_s30 + $0x10] sm:$0xff] %v1529_v8  ;;  %v1501_v20 = vld [vmem:[#allocation2 + $0xe8] sm:$0xff]  ;;  %v1536_v23 = vadd.f32 %v2689_v2, %v1500_v18  ;;  %v1540_v31 = vadd.f32 %v2689_v2, %v1504_v26  ;;  %v1507_v32 = vld [vmem:[#allocation2 + $0x38] sm:$0xff]  ;;  %v1542_v35 = vadd.f32 %v2689_v2, %v1506_v30  ;;  %v1509_v36 = vld [vmem:[#allocation2 + $0x40] sm:$0xff] }
 0x235   : > { %1562 = vst [vmem:[%s2520_s30 + $0x18] sm:$0xff] %v1530_v11  ;;  %v1537_v25 = vadd.f32 %v2689_v2, %v1501_v20  ;;  %v1505_v28 = vld [vmem:[#allocation2 + $0x8] sm:$0xff]  ;;  %v1508_v34 = vld [vmem:[#allocation2 + $0x58] sm:$0xff]  ;;  %v1543_v37 = vadd.f32 %v2689_v2, %v1507_v32  ;;  %v1511_v40 = vld [vmem:[#allocation2 + $0xe0] sm:$0xff]  ;;  %v1545_v41 = vadd.f32 %v2689_v2, %v1509_v36 }
 0x236   : > { %1563 = vst [vmem:[%s2520_s30 + $0x20] sm:$0xff] %v1531_v13  ;;  %v1541_v33 = vadd.f32 %v2689_v2, %v1505_v28  ;;  %v1510_v38 = vld [vmem:[#allocation2 + $0xc8] sm:$0xff]  ;;  %v1544_v39 = vadd.f32 %v2689_v2, %v1508_v34  ;;  %v1512_v42 = vld [vmem:[#allocation2 + $0x90] sm:$0xff]  ;;  %v1547_v45 = vadd.f32 %v2689_v2, %v1511_v40  ;;  %v1514_v46 = vld [vmem:[#allocation2 + $0xc0] sm:$0xff] }
 0x237   : > { %1564 = vst [vmem:[%s2520_s30 + $0x28] sm:$0xff] %v1532_v15  ;;  %v1546_v43 = vadd.f32 %v2689_v2, %v1510_v38  ;;  %v1513_v44 = vld [vmem:[#allocation2 + $0x70] sm:$0xff]  ;;  %v1548_v47 = vadd.f32 %v2689_v2, %v1512_v42  ;;  %v1515_v48 = vld [vmem:[#allocation2 + $0xa8] sm:$0xff]  ;;  %v1550_v51 = vadd.f32 %v2689_v2, %v1514_v46  ;;  %v1519_v56 = vld [vmem:[#allocation2 + $0xa0] sm:$0xff] }
 0x238   : > { %1565 = vst [vmem:[%s2520_s30 + $0x30] sm:$0xff] %v1533_v17  ;;  %v1549_v49 = vadd.f32 %v2689_v2, %v1513_v44  ;;  %v1516_v50 = vld [vmem:[#allocation2 + $0xd0] sm:$0xff]  ;;  %v1551_v53 = vadd.f32 %v2689_v2, %v1515_v48  ;;  %v1518_v54 = vld [vmem:[#allocation2 + $0x28] sm:$0xff]  ;;  %v1520_v58 = vld [vmem:[#allocation2 + $0xf8] sm:$0xff]  ;;  %v1555_v61 = vadd.f32 %v2689_v2, %v1519_v56 }
 0x239   : > { %1566 = vst [vmem:[%s2520_s30 + $0x38] sm:$0xff] %v1534_v19  ;;  %v1517_v52 = vld [vmem:[#allocation2 + $0x10] sm:$0xff]  ;;  %v1552_v55 = vadd.f32 %v2689_v2, %v1516_v50  ;;  %v1554_v59 = vadd.f32 %v2689_v2, %v1518_v54  ;;  %v1521_v60 = vld [vmem:[#allocation2 + $0x20] sm:$0xff]  ;;  %v1522_v62 = vld [vmem:[#allocation2 + $0x98] sm:$0xff]  ;;  %v1556_v63 = vadd.f32 %v2689_v2, %v1520_v58 }
 0x23a   : > { %1567 = vst [vmem:[%s2520_s30 + $0x40] sm:$0xff] %v1535_v21  ;;  %v1553_v57 = vadd.f32 %v2689_v2, %v1517_v52  ;;  %v1557_v0 = vadd.f32 %v2689_v2, %v1521_v60  ;;  %v1558_v1 = vadd.f32 %v2689_v2, %v1522_v62 }
 0x23b   : > { %1568 = vst [vmem:[%s2520_s30 + $0x48] sm:$0xff] %v1536_v23 }
 0x23c   : > { %1569 = vst [vmem:[%s2520_s30 + $0x50] sm:$0xff] %v1537_v25 }
 0x23d   : > { %1570 = vst [vmem:[%s2520_s30 + $0x58] sm:$0xff] %v1538_v27 }
 0x23e   : > { %1571 = vst [vmem:[%s2520_s30 + $0x60] sm:$0xff] %v1539_v29 }
 0x23f   : > { %1572 = vst [vmem:[%s2520_s30 + $0x68] sm:$0xff] %v1540_v31 }
 0x240   : > { %1573 = vst [vmem:[%s2520_s30 + $0x70] sm:$0xff] %v1541_v33 }
 0x241   : > { %1574 = vst [vmem:[%s2520_s30 + $0x78] sm:$0xff] %v1542_v35 }
 0x242   : > { %1575 = vst [vmem:[%s2520_s30 + $0x80] sm:$0xff] %v1543_v37 }
 0x243   : > { %1576 = vst [vmem:[%s2520_s30 + $0x88] sm:$0xff] %v1544_v39 }
 0x244   : > { %1577 = vst [vmem:[%s2520_s30 + $0x90] sm:$0xff] %v1545_v41 }
 0x245   : > { %1578 = vst [vmem:[%s2520_s30 + $0x98] sm:$0xff] %v1546_v43 }
 0x246   : > { %1579 = vst [vmem:[%s2520_s30 + $0xa0] sm:$0xff] %v1547_v45 }
 0x247   : > { %1580 = vst [vmem:[%s2520_s30 + $0xa8] sm:$0xff] %v1548_v47 }
 0x248   : > { %1581 = vst [vmem:[%s2520_s30 + $0xb0] sm:$0xff] %v1549_v49 }
 0x249   : > { %1582 = vst [vmem:[%s2520_s30 + $0xb8] sm:$0xff] %v1550_v51 }
 0x24a   : > { %1583 = vst [vmem:[%s2520_s30 + $0xc0] sm:$0xff] %v1551_v53 }
 0x24b   : > { %1584 = vst [vmem:[%s2520_s30 + $0xc8] sm:$0xff] %v1552_v55 }
 0x24c   : > { %1585 = vst [vmem:[%s2520_s30 + $0xd0] sm:$0xff] %v1553_v57 }
 0x24d   : > { %1586 = vst [vmem:[%s2520_s30 + $0xd8] sm:$0xff] %v1554_v59 }
 0x24e   : > { %1587 = vst [vmem:[%s2520_s30 + $0xe0] sm:$0xff] %v1555_v61 }
 0x24f   : > { %1588 = vst [vmem:[%s2520_s30 + $0xe8] sm:$0xff] %v1556_v63 }
 0x250   : > { %1589 = vst [vmem:[%s2520_s30 + $0xf0] sm:$0xff] %v1557_v0 }
 0x251   : > { %1590 = vst [vmem:[%s2520_s30 + $0xf8] sm:$0xff] %v1558_v1 }
 0x252 PF: > { %s13_s18 = sadd.s32 1, %s2292_s18   ;;  %s2780_s12 = smov %s2272_s13 }
 0x253   : > { %p10_p0 = scmp.ge.s32.totalorder %s13_s18, 8   ;;  %s2781_s13 = smov %s2366_s25 }
 0x254   : > { %s2782_s14 = smov %s2284_s16  ;;  %s2783_s15 = smov %s2288_s17 }
 0x255   : > { %s2784_s16 = smov %s2787_s19  ;;  %s2785_s17 = smov %s2791_s20 }
 0x256   :  { %12 = sbr.rel (!%p10_p0) target bundleno = 4 (0x4), region = 101 }

// kernel: ff2_forward.6
= control target key start
LH: loop header
LB: loop body
LE: loop exit
PB: predicated region body
PF: predicated region fallthrough
CT: control target
= control target key end

     0   :  { %s2658_s12 = smov 0   ;;  %s2660_s13 = smov 0   ;;  %s3131_s0 = inlined_call_operand.vmem [shape: bf16[512,640], index: 0, kind: input, shape index: {}]   ;;  %s3132_s1 = inlined_call_operand.vmem [shape: bf16[640,128], index: 1, kind: input, shape index: {}]   ;;  %s3133_s2 = inlined_call_operand.vmem [shape: f32[1,128], index: 2, kind: input, shape index: {}]   ;;  %s3134_s3 = inlined_call_operand.vmem [shape: bf16[512,128], index: 3, kind: output, shape index: {}]  }
   0x1   :  { %s2662_s14 = smov 0  }
   0x2 LB: > { %s25_s15 = sadd.s32 1, %s2632_s13  ;;  %p1862_p0 = scmp.ge.s32.totalorder %s2636_s14, 1  ;;  %s2636_s14 = sphi %s2662_s14, %s13_s14   ;;  %s2632_s13 = sphi %s2660_s13, %s3136_s13   ;;  %s2628_s12 = sphi %s2658_s12, %s3135_s12  }
   0x3   : > { %p27_p1 = scmp.ge.s32.totalorder %s25_s15, 2  ;;  %p169_p2 = scmp.lt.s32.totalorder %s2636_s14, 3 }
   0x5   : > { %s3138_s15 = smov (%p27_p1, %s25_s15), 0  ;;  %p170_p3 = pnand %p1862_p0, %p169_p2 }
   0x6   : > { %s1863_s22 = sshll.u32 (!%p170_p3), %s2628_s12, 5 }
   0x7   : > { %173 = sbr.rel (%p170_p3) target bundleno = 499 (0x1f3), region = 32  ;;  %p205_p4 = scmp.lt.s32.totalorder (!%p170_p3), %s1863_s22, 63 }
   0xc   : > { %v2436_v0 = vld [vmem:[%s3132_s1 + $0x38] sm:$0xff]  ;;  %v2435_v1 = vld [vmem:[%s3132_s1 + $0x30] sm:$0xff]  ;;  %v2434_v2 = vld [vmem:[%s3132_s1 + $0x28] sm:$0xff]  ;;  %s3140_s22 = smov (!%p205_p4, %s1863_s22), 63 }
   0xd   : > { %2564 = vmatpush.bf16.msra.mxu1 %v2436_v0  ;;  %2565 = vmatpush.bf16.msra.mxu2 %v2436_v0  ;;  %v2433_v3 = vld [vmem:[%s3132_s1 + $0x20] sm:$0xff]  ;;  %v2432_v4 = vld [vmem:[%s3132_s1 + $0x18] sm:$0xff]  ;;  %v2431_v5 = vld [vmem:[%s3132_s1 + $0x10] sm:$0xff]  ;;  %s2588_s29 = smul.u32 20, %s3140_s22  ;;  %s1866_s10 = sshll.u32 %s3140_s22, 2 }
   0xe   : > { %2566 = vmatpush.bf16.msra.mxu3 %v2436_v0  ;;  %1127 = vmatpush.bf16.msra.mxu0 %v2436_v0  ;;  %v2430_v6 = vld [vmem:[%s3132_s1 + $0x8] sm:$0xff]  ;;  %v2429_v7 = vld [vmem:[%s3132_s1] sm:$0xff]  ;;  %v2452_v16 = vld [vmem:[%s3132_s1 + $0xb8] sm:$0xff]  ;;  %s2996_s16 = scalar_lea.vmem %s3134_s3, %s1866_s10 }
   0xf   : > { %s2706_s7 = scalar_lea.vmem %s3131_s0, %s2588_s29  ;;  %v2460_v17 = vld [vmem:[%s3132_s1 + $0xf8] sm:$0xff]  ;;  %v2451_v24 = vld [vmem:[%s3132_s1 + $0xb0] sm:$0xff]  ;;  %v2450_v28 = vld [vmem:[%s3132_s1 + $0xa8] sm:$0xff] }
  0x10   : > { %v1949_v8 = vld [vmem:[%s2706_s7 + $0xa0] sm:$0xf]  ;;  %v2371_v9 = vld [vmem:[%s2706_s7 + $0xb0] sm:$0xf0]  ;;  %v2444_v22 = vld [vmem:[%s3132_s1 + $0x78] sm:$0xff] }
  0x11   : > { %2567 = vmatpush.bf16.msra.mxu1 %v2435_v1  ;;  %2568 = vmatpush.bf16.msra.mxu2 %v2435_v1  ;;  %v2029_v10 = vld [vmem:[%s2706_s7 + $0x140] sm:$0xf]  ;;  %v2391_v11 = vld [vmem:[%s2706_s7 + $0x150] sm:$0xf0]  ;;  %v1950_v18 = vor.u32 %v2371_v9, %v1949_v8  ;;  %v2468_v23 = vld [vmem:[%s3132_s1 + $0x138] sm:$0xff] }
  0x12   : > { %2569 = vmatpush.bf16.msra.mxu3 %v2435_v1  ;;  %1128 = vmatpush.bf16.msra.mxu0 %v2435_v1  ;;  %v2109_v12 = vld [vmem:[%s2706_s7 + $0x1e0] sm:$0xf]  ;;  %v2411_v13 = vld [vmem:[%s2706_s7 + $0x1f0] sm:$0xf0]  ;;  %v2030_v19 = vor.u32 %v2391_v11, %v2029_v10  ;;  %v2458_v29 = vld [vmem:[%s3132_s1 + $0xe8] sm:$0xff] }
  0x13   : > { %v1869_v14 = vld [vmem:[%s2706_s7] sm:$0xf]  ;;  %v2351_v15 = vld [vmem:[%s2706_s7 + $0x10] sm:$0xf0]  ;;  %v2110_v20 = vor.u32 %v2411_v13, %v2109_v12  ;;  %v2442_v30 = vld [vmem:[%s3132_s1 + $0x68] sm:$0xff] }
  0x14   : > { %v1870_v21 = vor.u32 %v2351_v15, %v1869_v14  ;;  %v2459_v25 = vld [vmem:[%s3132_s1 + $0xf0] sm:$0xff]  ;;  %v2466_v31 = vld [vmem:[%s3132_s1 + $0x128] sm:$0xff]  ;;  %v2449_v33 = vld [vmem:[%s3132_s1 + $0xa0] sm:$0xff] }
  0x15   : > { %2570 = vmatpush.bf16.msra.mxu1 %v2434_v2  ;;  %2571 = vmatpush.bf16.msra.mxu2 %v2434_v2  ;;  %v2443_v26 = vld [vmem:[%s3132_s1 + $0x70] sm:$0xff]  ;;  %v1969_v32 = vld [vmem:[%s2706_s7 + $0xc8] sm:$0xf]  ;;  %v2457_v34 = vld [vmem:[%s3132_s1 + $0xe0] sm:$0xff] }
  0x16   : > { %2572 = vmatpush.bf16.msra.mxu3 %v2434_v2  ;;  %1129 = vmatpush.bf16.msra.mxu0 %v2434_v2  ;;  %v2467_v27 = vld [vmem:[%s3132_s1 + $0x130] sm:$0xff]  ;;  %v2376_v35 = vld [vmem:[%s2706_s7 + $0xd8] sm:$0xf0]  ;;  %v2049_v36 = vld [vmem:[%s2706_s7 + $0x168] sm:$0xf] }
  0x17   : > { %v2396_v37 = vld [vmem:[%s2706_s7 + $0x178] sm:$0xf0]  ;;  %v2129_v38 = vld [vmem:[%s2706_s7 + $0x208] sm:$0xf]  ;;  %v2441_v42 = vld [vmem:[%s3132_s1 + $0x60] sm:$0xff]  ;;  %v1970_v46 = vor.u32 %v2376_v35, %v1969_v32 }
  0x18   : > { %v2416_v39 = vld [vmem:[%s2706_s7 + $0x218] sm:$0xf0]  ;;  %v1889_v40 = vld [vmem:[%s2706_s7 + $0x28] sm:$0xf]  ;;  %v2465_v43 = vld [vmem:[%s3132_s1 + $0x120] sm:$0xff]  ;;  %v2050_v47 = vor.u32 %v2396_v37, %v2049_v36 }
  0x19   : > { %2573 = vmatpush.bf16.msra.mxu1 %v2433_v3  ;;  %2574 = vmatpush.bf16.msra.mxu2 %v2433_v3  ;;  %v2356_v41 = vld [vmem:[%s2706_s7 + $0x38] sm:$0xf0]  ;;  %v2130_v48 = vor.u32 %v2416_v39, %v2129_v38  ;;  %v2447_v52 = vld [vmem:[%s3132_s1 + $0x90] sm:$0xff]  ;;  %v2446_v56 = vld [vmem:[%s3132_s1 + $0x88] sm:$0xff] }
  0x1a   : > { %2575 = vmatpush.bf16.msra.mxu3 %v2433_v3  ;;  %1130 = vmatpush.bf16.msra.mxu0 %v2433_v3  ;;  %v2448_v44 = vld [vmem:[%s3132_s1 + $0x98] sm:$0xff]  ;;  %v1890_v49 = vor.u32 %v2356_v41, %v1889_v40  ;;  %v2455_v53 = vld [vmem:[%s3132_s1 + $0xd0] sm:$0xff]  ;;  %v2454_v57 = vld [vmem:[%s3132_s1 + $0xc8] sm:$0xff] }
  0x1b   : > { %v2456_v45 = vld [vmem:[%s3132_s1 + $0xd8] sm:$0xff]  ;;  %v2439_v54 = vld [vmem:[%s3132_s1 + $0x50] sm:$0xff]  ;;  %v2438_v58 = vld [vmem:[%s3132_s1 + $0x48] sm:$0xff] }
  0x1c   : > { %v2440_v50 = vld [vmem:[%s3132_s1 + $0x58] sm:$0xff]  ;;  %v2463_v55 = vld [vmem:[%s3132_s1 + $0x110] sm:$0xff]  ;;  %v2462_v59 = vld [vmem:[%s3132_s1 + $0x108] sm:$0xff] }
  0x1d   : > { %2576 = vmatpush.bf16.msra.mxu1 %v2432_v4  ;;  %2577 = vmatpush.bf16.msra.mxu2 %v2432_v4  ;;  %v2464_v51 = vld [vmem:[%s3132_s1 + $0x118] sm:$0xff]  ;;  %v1989_v60 = vld [vmem:[%s2706_s7 + $0xf0] sm:$0xf]  ;;  %v2445_v61 = vld [vmem:[%s3132_s1 + $0x80] sm:$0xff] }
  0x1e   : > { %2578 = vmatpush.bf16.msra.mxu3 %v2432_v4  ;;  %1131 = vmatpush.bf16.msra.mxu0 %v2432_v4  ;;  %v2453_v62 = vld [vmem:[%s3132_s1 + $0xc0] sm:$0xff]  ;;  %v2069_v0 = vld [vmem:[%s2706_s7 + $0x190] sm:$0xf]  ;;  %v2009_v12 = vld [vmem:[%s2706_s7 + $0x118] sm:$0xf] }
  0x1f   : > { %v2381_v63 = vld [vmem:[%s2706_s7 + $0x100] sm:$0xf0]  ;;  %v2149_v2 = vld [vmem:[%s2706_s7 + $0x230] sm:$0xf]  ;;  %v2386_v13 = vld [vmem:[%s2706_s7 + $0x128] sm:$0xf0] }
  0x20   : > { %v2401_v1 = vld [vmem:[%s2706_s7 + $0x1a0] sm:$0xf0]  ;;  %v1909_v4 = vld [vmem:[%s2706_s7 + $0x50] sm:$0xf]  ;;  %v1990_v8 = vor.u32 %v2381_v63, %v1989_v60  ;;  %v2089_v14 = vld [vmem:[%s2706_s7 + $0x1b8] sm:$0xf] }
  0x21   : > { %2579 = vmatpush.bf16.msra.mxu1 %v2431_v5  ;;  %2580 = vmatpush.bf16.msra.mxu2 %v2431_v5  ;;  %v2421_v3 = vld [vmem:[%s2706_s7 + $0x240] sm:$0xf0]  ;;  %v2070_v9 = vor.u32 %v2401_v1, %v2069_v0  ;;  %v2406_v15 = vld [vmem:[%s2706_s7 + $0x1c8] sm:$0xf0]  ;;  %v1891_v37 = vld [vmem:[%s2706_s7 + $0x3c] sm:$0xf0] }
  0x22   : > { %2581 = vmatpush.bf16.msra.mxu3 %v2431_v5  ;;  %1132 = vmatpush.bf16.msra.mxu0 %v2431_v5  ;;  %v2361_v5 = vld [vmem:[%s2706_s7 + $0x60] sm:$0xf0]  ;;  %v2150_v10 = vor.u32 %v2421_v3, %v2149_v2  ;;  %v2354_v36 = vld [vmem:[%s2706_s7 + $0x2c] sm:$0xf]  ;;  %v1897_v38 = vld [vmem:[%s2706_s7 + $0x30] sm:$0xf] }
  0x23   : > { %v1910_v11 = vor.u32 %v2361_v5, %v1909_v4  ;;  %v2357_v39 = vld [vmem:[%s2706_s7 + $0x40] sm:$0xf0]  ;;  %v2355_v40 = vld [vmem:[%s2706_s7 + $0x34] sm:$0xf]  ;;  %v1899_v41 = vld [vmem:[%s2706_s7 + $0x44] sm:$0xf0] }
  0x24   : > { %v2364_v60 = vld [vmem:[%s2706_s7 + $0x7c] sm:$0xf]  ;;  %v2367_v63 = vld [vmem:[%s2706_s7 + $0x90] sm:$0xf0]  ;;  %v2365_v0 = vld [vmem:[%s2706_s7 + $0x84] sm:$0xf] }
  0x25   : > { %2582 = vmatpush.bf16.msra.mxu1 %v2430_v6  ;;  %2583 = vmatpush.bf16.msra.mxu2 %v2430_v6  ;;  %v1939_v1 = vld [vmem:[%s2706_s7 + $0x94] sm:$0xf0]  ;;  %v1945_v2 = vld [vmem:[%s2706_s7 + $0x88] sm:$0xf]  ;;  %v2368_v3 = vld [vmem:[%s2706_s7 + $0x98] sm:$0xf0] }
  0x26   : > { %2584 = vmatpush.bf16.msra.mxu3 %v2430_v6  ;;  %1133 = vmatpush.bf16.msra.mxu0 %v2430_v6  ;;  %v2437_v6 = vld [vmem:[%s3132_s1 + $0x40] sm:$0xff] }
  0x29   : > { %2585 = vmatpush.bf16.msra.mxu1 %v2429_v7  ;;  %2586 = vmatpush.bf16.msra.mxu2 %v2429_v7 }
  0x2a   : > { %2587 = vmatpush.bf16.msra.mxu3 %v2429_v7  ;;  %1134 = vmatpush.bf16.msra.mxu0 %v2429_v7  ;;  %v2461_v7 = vld [vmem:[%s3132_s1 + $0x100] sm:$0xff] }
  0x2c   : > { %1155 = vmatmul.bf16.vlgmr.msra.gmra.mxu1 %v1950_v18  ;;  %1175 = vmatmul.bf16.vlgmr.msra.gmra.mxu2 %v2030_v19  ;;  %v1929_v18 = vld [vmem:[%s2706_s7 + $0x78] sm:$0xf]  ;;  %v2366_v19 = vld [vmem:[%s2706_s7 + $0x88] sm:$0xf0] }
  0x2d   : > { %1305 = vmatpush.bf16.msrb.mxu2 %v2452_v16  ;;  %1195 = vmatmul.bf16.vlgmr.msra.gmra.mxu3 %v2110_v20  ;;  %v2169_v16 = vld [vmem:[%s2706_s7 + $0x258] sm:$0xf]  ;;  %v2010_v20 = vor.u32 %v2386_v13, %v2009_v12  ;;  %v2370_v12 = vld [vmem:[%s2706_s7 + $0xac] sm:$0xf]  ;;  %v1959_v13 = vld [vmem:[%s2706_s7 + $0xbc] sm:$0xf0] }
  0x2e   : > { %1394 = vmatpush.bf16.msrb.mxu3 %v2460_v17  ;;  %1135 = vmatmul.bf16.vlgmr.msra.gmra.mxu0 %v1870_v21  ;;  %v2426_v17 = vld [vmem:[%s2706_s7 + $0x268] sm:$0xf0]  ;;  %v2090_v21 = vor.u32 %v2406_v15, %v2089_v14  ;;  %v1965_v14 = vld [vmem:[%s2706_s7 + $0xb0] sm:$0xf]  ;;  %v2373_v15 = vld [vmem:[%s2706_s7 + $0xc0] sm:$0xf0] }
  0x2f   : > { %1216 = vmatpush.bf16.msrb.mxu1 %v2444_v22  ;;  %1483 = vmatpush.bf16.msrb.mxu0 %v2468_v23  ;;  %v2170_v22 = vor.u32 %v2426_v17, %v2169_v16  ;;  %v1930_v23 = vor.u32 %v2366_v19, %v1929_v18  ;;  %v1962_v19 = vor.u32 %v2370_v12, %v1959_v13 }
  0x31   : > { %1306 = vmatpush.bf16.msrb.mxu2 %v2451_v24  ;;  %v2349_v24 = vld [vmem:[%s2706_s7 + $0x4] sm:$0xf] }
  0x32   : > { %1395 = vmatpush.bf16.msrb.mxu3 %v2459_v25  ;;  %v1871_v25 = vld [vmem:[%s2706_s7 + $0x14] sm:$0xf0] }
  0x33   : > { %1217 = vmatpush.bf16.msrb.mxu1 %v2443_v26  ;;  %1484 = vmatpush.bf16.msrb.mxu0 %v2467_v27  ;;  %v1877_v26 = vld [vmem:[%s2706_s7 + $0x8] sm:$0xf]  ;;  %v2352_v27 = vld [vmem:[%s2706_s7 + $0x18] sm:$0xf0]  ;;  %v1874_v32 = vor.u32 %v2349_v24, %v1871_v25 }
  0x35   : > { %1307 = vmatpush.bf16.msrb.mxu2 %v2450_v28  ;;  %v2350_v28 = vld [vmem:[%s2706_s7 + $0xc] sm:$0xf] }
  0x36   : > { %1396 = vmatpush.bf16.msrb.mxu3 %v2458_v29  ;;  %v1879_v29 = vld [vmem:[%s2706_s7 + $0x1c] sm:$0xf0] }
  0x37   : > { %1218 = vmatpush.bf16.msrb.mxu1 %v2442_v30  ;;  %1485 = vmatpush.bf16.msrb.mxu0 %v2466_v31  ;;  %v1885_v30 = vld [vmem:[%s2706_s7 + $0x10] sm:$0xf]  ;;  %v2353_v31 = vld [vmem:[%s2706_s7 + $0x20] sm:$0xf0] }
  0x38   : > { %v1886_v35 = vor.u32 %v2353_v31, %v1885_v30  ;;  %v2375_v30 = vld [vmem:[%s2706_s7 + $0xd4] sm:$0xf]  ;;  %v1979_v31 = vld [vmem:[%s2706_s7 + $0xe4] sm:$0xf0] }
  0x39   : > { %1308 = vmatpush.bf16.msrb.mxu2 %v2449_v33  ;;  %v1878_v33 = vor.u32 %v2352_v27, %v1877_v26  ;;  %v2374_v26 = vld [vmem:[%s2706_s7 + $0xcc] sm:$0xf]  ;;  %v1971_v27 = vld [vmem:[%s2706_s7 + $0xdc] sm:$0xf0] }
  0x3a   : > { %1397 = vmatpush.bf16.msrb.mxu3 %v2457_v34  ;;  %v1882_v34 = vor.u32 %v2350_v28, %v1879_v29  ;;  %v1977_v28 = vld [vmem:[%s2706_s7 + $0xd0] sm:$0xf]  ;;  %v2377_v29 = vld [vmem:[%s2706_s7 + $0xe0] sm:$0xf0] }
  0x3b   : > { %1219 = vmatpush.bf16.msrb.mxu1 %v2441_v42  ;;  %1486 = vmatpush.bf16.msrb.mxu0 %v2465_v43  ;;  %v1905_v42 = vld [vmem:[%s2706_s7 + $0x38] sm:$0xf]  ;;  %v2358_v43 = vld [vmem:[%s2706_s7 + $0x48] sm:$0xf0] }
  0x3c   : > { %1160 = vmatmul.bf16.gmra.mxu1 %v1970_v46  ;;  %1180 = vmatmul.bf16.gmra.mxu2 %v2050_v47  ;;  %v1902_v46 = vor.u32 %v2355_v40, %v1899_v41  ;;  %v1906_v47 = vor.u32 %v2358_v43, %v1905_v42 }
  0x3d   : > { %1309 = vmatpush.bf16.msrb.mxu2 %v2448_v44  ;;  %1200 = vmatmul.bf16.gmra.mxu3 %v2130_v48  ;;  %v1894_v44 = vor.u32 %v2354_v36, %v1891_v37  ;;  %v2359_v48 = vld [vmem:[%s2706_s7 + $0x54] sm:$0xf]  ;;  %v1974_v36 = vor.u32 %v2374_v26, %v1971_v27  ;;  %v1978_v37 = vor.u32 %v2377_v29, %v1977_v28  ;;  %v2389_v28 = vld [vmem:[%s2706_s7 + $0x144] sm:$0xf]  ;;  %v2031_v29 = vld [vmem:[%s2706_s7 + $0x154] sm:$0xf0] }
  0x3e   : > { %1398 = vmatpush.bf16.msrb.mxu3 %v2456_v45  ;;  %1140 = vmatmul.bf16.gmra.mxu0 %v1890_v49  ;;  %v1898_v45 = vor.u32 %v2357_v39, %v1897_v38  ;;  %v1911_v49 = vld [vmem:[%s2706_s7 + $0x64] sm:$0xf0]  ;;  %v1982_v39 = vor.u32 %v2375_v30, %v1979_v31  ;;  %v2392_v31 = vld [vmem:[%s2706_s7 + $0x158] sm:$0xf0] }
  0x3f   : > { %1220 = vmatpush.bf16.msrb.mxu1 %v2440_v50  ;;  %1487 = vmatpush.bf16.msrb.mxu0 %v2464_v51  ;;  %v1917_v50 = vld [vmem:[%s2706_s7 + $0x58] sm:$0xf]  ;;  %v2362_v51 = vld [vmem:[%s2706_s7 + $0x68] sm:$0xf0]  ;;  %v2037_v30 = vld [vmem:[%s2706_s7 + $0x148] sm:$0xf] }
  0x41   : > { %1310 = vmatpush.bf16.msrb.mxu2 %v2447_v52  ;;  %v2360_v52 = vld [vmem:[%s2706_s7 + $0x5c] sm:$0xf] }
  0x42   : > { %1399 = vmatpush.bf16.msrb.mxu3 %v2455_v53  ;;  %v1919_v53 = vld [vmem:[%s2706_s7 + $0x6c] sm:$0xf0] }
  0x43   : > { %1221 = vmatpush.bf16.msrb.mxu1 %v2439_v54  ;;  %1488 = vmatpush.bf16.msrb.mxu0 %v2463_v55  ;;  %v1925_v54 = vld [vmem:[%s2706_s7 + $0x60] sm:$0xf]  ;;  %v2363_v55 = vld [vmem:[%s2706_s7 + $0x70] sm:$0xf0] }
  0x45   : > { %1311 = vmatpush.bf16.msrb.mxu2 %v2446_v56  ;;  %v1914_v56 = vor.u32 %v2359_v48, %v1911_v49  ;;  %v1997_v48 = vld [vmem:[%s2706_s7 + $0xf8] sm:$0xf]  ;;  %v2382_v49 = vld [vmem:[%s2706_s7 + $0x108] sm:$0xf0] }
  0x46   : > { %1400 = vmatpush.bf16.msrb.mxu3 %v2454_v57  ;;  %v1918_v57 = vor.u32 %v2362_v51, %v1917_v50  ;;  %v2380_v50 = vld [vmem:[%s2706_s7 + $0xfc] sm:$0xf]  ;;  %v1999_v51 = vld [vmem:[%s2706_s7 + $0x10c] sm:$0xf0] }
  0x47   : > { %1222 = vmatpush.bf16.msrb.mxu1 %v2438_v58  ;;  %1489 = vmatpush.bf16.msrb.mxu0 %v2462_v59  ;;  %v1922_v58 = vor.u32 %v2360_v52, %v1919_v53  ;;  %v1926_v59 = vor.u32 %v2363_v55, %v1925_v54  ;;  %v2005_v52 = vld [vmem:[%s2706_s7 + $0x100] sm:$0xf]  ;;  %v2383_v53 = vld [vmem:[%s2706_s7 + $0x110] sm:$0xf0] }
  0x49   : > { %1312 = vmatpush.bf16.msrb.mxu2 %v2445_v61  ;;  %v1931_v61 = vld [vmem:[%s2706_s7 + $0x8c] sm:$0xf0] }
  0x4a   : > { %1401 = vmatpush.bf16.msrb.mxu3 %v2453_v62  ;;  %v1937_v62 = vld [vmem:[%s2706_s7 + $0x80] sm:$0xf]  ;;  %v1934_v4 = vor.u32 %v2364_v60, %v1931_v61  ;;  %v2006_v60 = vor.u32 %v2383_v53, %v2005_v52 }
  0x4b   : > { %1223 = vmatpush.bf16.msrb.mxu1 %v2437_v6  ;;  %1490 = vmatpush.bf16.msrb.mxu0 %v2461_v7  ;;  %v1938_v5 = vor.u32 %v2367_v63, %v1937_v62  ;;  %v1942_v6 = vor.u32 %v2365_v0, %v1939_v1  ;;  %v1946_v7 = vor.u32 %v2368_v3, %v1945_v2  ;;  %v2384_v2 = vld [vmem:[%s2706_s7 + $0x11c] sm:$0xf]  ;;  %v2011_v3 = vld [vmem:[%s2706_s7 + $0x12c] sm:$0xf0] }
  0x4c   : > { %1165 = vmatmul.bf16.gmra.mxu1 %v1990_v8  ;;  %1185 = vmatmul.bf16.gmra.mxu2 %v2070_v9  ;;  %v2369_v8 = vld [vmem:[%s2706_s7 + $0xa4] sm:$0xf]  ;;  %v1951_v9 = vld [vmem:[%s2706_s7 + $0xb4] sm:$0xf0]  ;;  %v2014_v12 = vor.u32 %v2384_v2, %v2011_v3  ;;  %v2394_v2 = vld [vmem:[%s2706_s7 + $0x16c] sm:$0xf] }
  0x4d   : > { %1205 = vmatmul.bf16.gmra.mxu3 %v2150_v10  ;;  %v1957_v10 = vld [vmem:[%s2706_s7 + $0xa8] sm:$0xf]  ;;  %v1954_v16 = vor.u32 %v2369_v8, %v1951_v9  ;;  %v2388_v9 = vld [vmem:[%s2706_s7 + $0x138] sm:$0xf0]  ;;  %v2051_v3 = vld [vmem:[%s2706_s7 + $0x17c] sm:$0xf0] }
  0x4e   : > { %1145 = vmatmul.bf16.gmra.mxu0 %v1910_v11  ;;  %v2372_v11 = vld [vmem:[%s2706_s7 + $0xb8] sm:$0xf0]  ;;  %v2025_v8 = vld [vmem:[%s2706_s7 + $0x128] sm:$0xf] }
  0x4f   : > { %v1958_v17 = vor.u32 %v2372_v11, %v1957_v10 }
  0x5c   : > { %1170 = vmatmul.bf16.gmra.mxu1 %v2010_v20  ;;  %1190 = vmatmul.bf16.gmra.mxu2 %v2090_v21  ;;  %v1966_v20 = vor.u32 %v2373_v15, %v1965_v14 }
  0x5d   : > { %1210 = vmatmul.bf16.gmra.mxu3 %v2170_v22 }
  0x5e   : > { %1150 = vmatmul.bf16.gmra.mxu0 %v1930_v23 }
  0x6c   : > { %1224 = vmatmul.bf16.vlgmr.msrb.gmra.mxu1 %v1874_v32  ;;  %1313 = vmatmul.bf16.vlgmr.msrb.gmra.mxu2 %v1878_v33  ;;  %v1985_v32 = vld [vmem:[%s2706_s7 + $0xd8] sm:$0xf]  ;;  %v2378_v33 = vld [vmem:[%s2706_s7 + $0xe8] sm:$0xf0] }
  0x6d   : > { %1402 = vmatmul.bf16.vlgmr.msrb.gmra.mxu3 %v1882_v34  ;;  %v1986_v40 = vor.u32 %v2378_v33, %v1985_v32  ;;  %v2390_v32 = vld [vmem:[%s2706_s7 + $0x14c] sm:$0xf]  ;;  %v2039_v33 = vld [vmem:[%s2706_s7 + $0x15c] sm:$0xf0] }
  0x6e   : > { %1491 = vmatmul.bf16.vlgmr.msrb.gmra.mxu0 %v1886_v35 }
  0x7c   : > { %1229 = vmatmul.bf16.gmra.mxu1 %v1894_v44  ;;  %1318 = vmatmul.bf16.gmra.mxu2 %v1898_v45 }
  0x7d   : > { %1407 = vmatmul.bf16.gmra.mxu3 %v1902_v46  ;;  %v2379_v46 = vld [vmem:[%s2706_s7 + $0xf4] sm:$0xf] }
  0x7e   : > { %1496 = vmatmul.bf16.gmra.mxu0 %v1906_v47  ;;  %v1991_v47 = vld [vmem:[%s2706_s7 + $0x104] sm:$0xf0] }
  0x8c   : > { %1234 = vmatmul.bf16.gmra.mxu1 %v1914_v56  ;;  %1323 = vmatmul.bf16.gmra.mxu2 %v1918_v57  ;;  %v1994_v56 = vor.u32 %v2379_v46, %v1991_v47  ;;  %v1998_v57 = vor.u32 %v2382_v49, %v1997_v48  ;;  %v2034_v46 = vor.u32 %v2389_v28, %v2031_v29 }
  0x8d   : > { %1412 = vmatmul.bf16.gmra.mxu3 %v1922_v58  ;;  %v2038_v47 = vor.u32 %v2392_v31, %v2037_v30  ;;  %v2042_v49 = vor.u32 %v2390_v32, %v2039_v33 }
  0x8e   : > { %1501 = vmatmul.bf16.gmra.mxu0 %v1926_v59  ;;  %v2002_v59 = vor.u32 %v2380_v50, %v1999_v51 }
  0x9c   : > { %1239 = vmatmul.bf16.gmra.mxu1 %v1934_v4  ;;  %1328 = vmatmul.bf16.gmra.mxu2 %v1938_v5  ;;  %v2017_v4 = vld [vmem:[%s2706_s7 + $0x120] sm:$0xf]  ;;  %v2387_v5 = vld [vmem:[%s2706_s7 + $0x130] sm:$0xf0] }
  0x9d   : > { %1417 = vmatmul.bf16.gmra.mxu3 %v1942_v6  ;;  %v2385_v6 = vld [vmem:[%s2706_s7 + $0x124] sm:$0xf]  ;;  %v2018_v13 = vor.u32 %v2387_v5, %v2017_v4  ;;  %v2057_v4 = vld [vmem:[%s2706_s7 + $0x170] sm:$0xf] }
  0x9e   : > { %1506 = vmatmul.bf16.gmra.mxu0 %v1946_v7  ;;  %v2019_v7 = vld [vmem:[%s2706_s7 + $0x134] sm:$0xf0]  ;;  %v2397_v5 = vld [vmem:[%s2706_s7 + $0x180] sm:$0xf0] }
  0x9f   : > { %v2022_v15 = vor.u32 %v2385_v6, %v2019_v7  ;;  %v2395_v6 = vld [vmem:[%s2706_s7 + $0x174] sm:$0xf]  ;;  %v2058_v29 = vor.u32 %v2397_v5, %v2057_v4  ;;  %v2400_v4 = vld [vmem:[%s2706_s7 + $0x19c] sm:$0xf] }
  0xa9   : > { %v2879_v18 = vpop.f32.mrf.mxu1 }
  0xab   : > { %v2881_v21 = vpop.f32.mrf.mxu0 }
  0xac   : > { %1244 = vmatmul.bf16.gmra.mxu1 %v1954_v16  ;;  %1333 = vmatmul.bf16.gmra.mxu2 %v1958_v17  ;;  %v2026_v16 = vor.u32 %v2388_v9, %v2025_v8  ;;  %v2059_v9 = vld [vmem:[%s2706_s7 + $0x184] sm:$0xf0] }
  0xad   : > { %1422 = vmatmul.bf16.gmra.mxu3 %v1962_v19  ;;  %v2062_v31 = vor.u32 %v2395_v6, %v2059_v9  ;;  %v2403_v9 = vld [vmem:[%s2706_s7 + $0x1b0] sm:$0xf0] }
  0xae   : > { %1511 = vmatmul.bf16.gmra.mxu0 %v1966_v20 }
  0xaf   : > { %v2883_v22 = vpop.f32.mrf.mxu2 }
  0xb0   : > { %v2885_v23 = vpop.f32.mrf.mxu3 }
  0xb1   : > { %v2887_v24 = vpop.f32.mrf.mxu1 }
  0xb3   : > { %v2889_v25 = vpop.f32.mrf.mxu0 }
  0xb7   : > { %v2899_v34 = vpop.f32.mrf.mxu2 }
  0xb8   : > { %v2901_v35 = vpop.f32.mrf.mxu3 }
  0xb9   : > { %v2903_v38 = vpop.f32.mrf.mxu1 }
  0xbb   : > { %v2905_v41 = vpop.f32.mrf.mxu0 }
  0xbc   : > { %1249 = vmatmul.bf16.gmra.mxu1 %v1974_v36  ;;  %1338 = vmatmul.bf16.gmra.mxu2 %v1978_v37  ;;  %v2045_v36 = vld [vmem:[%s2706_s7 + $0x150] sm:$0xf]  ;;  %v2393_v37 = vld [vmem:[%s2706_s7 + $0x160] sm:$0xf0] }
  0xbd   : > { %1427 = vmatmul.bf16.gmra.mxu3 %v1982_v39  ;;  %v2046_v50 = vor.u32 %v2393_v37, %v2045_v36  ;;  %v2988_v36 = vld [vmem:[%s3133_s2] ss:$0 sm:$0xff] }
  0xbe   : > { %1516 = vmatmul.bf16.gmra.mxu0 %v1986_v40 }
  0xbf   : > { %v2907_v42 = vpop.f32.mrf.mxu2 }
  0xc0   : > { %v2909_v43 = vpop.f32.mrf.mxu3 }
  0xc1   : > { %v2911_v44 = vpop.f32.mrf.mxu1 }
  0xc3   : > { %v2913_v45 = vpop.f32.mrf.mxu0 }
  0xc7   : > { %v2923_v54 = vpop.f32.mrf.mxu2 }
  0xc8   : > { %v2925_v55 = vpop.f32.mrf.mxu3 }
  0xc9   : > { %v2927_v58 = vpop.f32.mrf.mxu1 }
  0xcb   : > { %v2929_v61 = vpop.f32.mrf.mxu0 }
  0xcc   : > { %1254 = vmatmul.bf16.gmra.mxu1 %v1994_v56  ;;  %1343 = vmatmul.bf16.gmra.mxu2 %v1998_v57 }
  0xcd   : > { %1432 = vmatmul.bf16.gmra.mxu3 %v2002_v59 }
  0xce   : > { %1521 = vmatmul.bf16.gmra.mxu0 %v2006_v60 }
  0xcf   : > { %v2931_v62 = vpop.f32.mrf.mxu2 }
  0xd0   : > { %v2933_v63 = vpop.f32.mrf.mxu3 }
  0xd1   : > { %v2935_v0 = vpop.f32.mrf.mxu1 }
  0xd3   : > { %v2937_v1 = vpop.f32.mrf.mxu0 }
  0xd7   : > { %v2947_v10 = vpop.f32.mrf.mxu2 }
  0xd8   : > { %v2949_v11 = vpop.f32.mrf.mxu3 }
  0xd9   : > { %v2951_v14 = vpop.f32.mrf.mxu1 }
  0xdb   : > { %v2953_v17 = vpop.f32.mrf.mxu0 }
  0xdc   : > { %1259 = vmatmul.bf16.gmra.mxu1 %v2014_v12  ;;  %1348 = vmatmul.bf16.gmra.mxu2 %v2018_v13  ;;  %v2065_v12 = vld [vmem:[%s2706_s7 + $0x178] sm:$0xf]  ;;  %v2398_v13 = vld [vmem:[%s2706_s7 + $0x188] sm:$0xf0] }
  0xdd   : > { %1437 = vmatmul.bf16.gmra.mxu3 %v2022_v15  ;;  %v2066_v32 = vor.u32 %v2398_v13, %v2065_v12 }
  0xde   : > { %1526 = vmatmul.bf16.gmra.mxu0 %v2026_v16 }
  0xdf   : > { %v2955_v19 = vpop.f32.mrf.mxu2 }
  0xe0   : > { %v2957_v20 = vpop.f32.mrf.mxu3 }
  0xe1   : > { %v2959_v26 = vpop.f32.mrf.mxu1 }
  0xe3   : > { %v2961_v27 = vpop.f32.mrf.mxu0 }
  0xe7   : > { %v2971_v39 = vpop.f32.mrf.mxu2 }
  0xe8   : > { %v2973_v40 = vpop.f32.mrf.mxu3 }
  0xe9   : > { %v1225_v48 = vpop.f32.mrf.mxu1 }
  0xea   : > { %v1226_v53 = vadd.f32 %v1225_v48, %v2881_v21  ;;  %v2054_v21 = vor.u32 %v2394_v2, %v2051_v3  ;;  %v2077_v2 = vld [vmem:[%s2706_s7 + $0x198] sm:$0xf]  ;;  %v2402_v3 = vld [vmem:[%s2706_s7 + $0x1a8] sm:$0xf0] }
  0xeb   : > { %v1492_v51 = vpop.f32.mrf.mxu0 }
  0xec   : > { %1264 = vmatmul.bf16.gmra.mxu1 %v2034_v46  ;;  %1353 = vmatmul.bf16.gmra.mxu2 %v2038_v47 }
  0xed   : > { %1442 = vmatmul.bf16.gmra.mxu3 %v2042_v49 }
  0xee   : > { %1531 = vmatmul.bf16.gmra.mxu0 %v2046_v50 }
  0xef   : > { %v1314_v52 = vpop.f32.mrf.mxu2 }
  0xf0   : > { %v1403_v56 = vpop.f32.mrf.mxu3  ;;  %v1315_v59 = vadd.f32 %v1314_v52, %v1226_v53 }
  0xf1   : > { %v1227_v57 = vpop.f32.mrf.mxu1 }
  0xf2   : > { %v1404_v7 = vadd.f32 %v1403_v56, %v1315_v59  ;;  %v1228_v8 = vadd.f32 %v1227_v57, %v2889_v25  ;;  %v2399_v59 = vld [vmem:[%s2706_s7 + $0x194] sm:$0xf] }
  0xf3   : > { %v1494_v60 = vpop.f32.mrf.mxu0 }
  0xf4   : > { %v1493_v33 = vadd.f32 %v1492_v51, %v1404_v7  ;;  %v2079_v7 = vld [vmem:[%s2706_s7 + $0x1ac] sm:$0xf0] }
  0xf6   : > { %v1675_v47 = vadd.f32 %v2988_v36, %v1493_v33 }
  0xf7   : > { %v1316_v15 = vpop.f32.mrf.mxu2 }
  0xf8   : > { %v1317_v16 = vadd.f32 %v1316_v15, %v1228_v8  ;;  %v1405_v28 = vpop.f32.mrf.mxu3  ;;  %v2085_v8 = vld [vmem:[%s2706_s7 + $0x1a0] sm:$0xf] }
  0xf9   : > { %v1230_v30 = vpop.f32.mrf.mxu1 }
  0xfa   : > { %v1406_v37 = vadd.f32 %v1405_v28, %v1317_v16  ;;  %v1231_v51 = vadd.f32 %v1230_v30, %v2905_v41  ;;  %v2078_v16 = vor.u32 %v2402_v3, %v2077_v2  ;;  %v2099_v3 = vld [vmem:[%s2706_s7 + $0x1d4] sm:$0xf0] }
  0xfb   : > { %v1497_v25 = vpop.f32.mrf.mxu0 }
  0xfc   : > { %v1495_v46 = vadd.f32 %v1494_v60, %v1406_v37  ;;  %1269 = vmatmul.bf16.gmra.mxu1 %v2054_v21  ;;  %1358 = vmatmul.bf16.gmra.mxu2 %v2058_v29  ;;  %v2071_v60 = vld [vmem:[%s2706_s7 + $0x1a4] sm:$0xf0]  ;;  %v2082_v21 = vor.u32 %v2400_v4, %v2079_v7  ;;  %v2086_v29 = vor.u32 %v2403_v9, %v2085_v8 }
  0xfd   : > { %1447 = vmatmul.bf16.gmra.mxu3 %v2062_v31  ;;  %v2074_v41 = vor.u32 %v2399_v59, %v2071_v60  ;;  %v2405_v59 = vld [vmem:[%s2706_s7 + $0x1c4] sm:$0xf]  ;;  %v2105_v4 = vld [vmem:[%s2706_s7 + $0x1c8] sm:$0xf] }
  0xfe   : > { %1536 = vmatmul.bf16.gmra.mxu0 %v2066_v32  ;;  %v1676_v48 = vadd.f32 %v2988_v36, %v1495_v46 }
  0xff   : > { %v1319_v49 = vpop.f32.mrf.mxu2 }
 0x100   : > { %v2472_v50 = vpack.c.bf16 %v1676_v48, %v1675_v47  ;;  %v1408_v52 = vpop.f32.mrf.mxu3  ;;  %v1320_v56 = vadd.f32 %v1319_v49, %v1231_v51 }
 0x101   : > { %v1232_v53 = vpop.f32.mrf.mxu1 }
 0x102   : > { %2473 = vst [vmem:[%s2996_s16] sm:$0xff] %v2472_v50   ;;  %v1409_v5 = vadd.f32 %v1408_v52, %v1320_v56  ;;  %v1233_v6 = vadd.f32 %v1232_v53, %v2913_v45  ;;  %v2404_v52 = vld [vmem:[%s2706_s7 + $0x1bc] sm:$0xf]  ;;  %v2091_v53 = vld [vmem:[%s2706_s7 + $0x1cc] sm:$0xf0]  ;;  %v2097_v56 = vld [vmem:[%s2706_s7 + $0x1c0] sm:$0xf] }
 0x103   : > { %v1499_v57 = vpop.f32.mrf.mxu0 }
 0x104   : > { %v1498_v30 = vadd.f32 %v1497_v25, %v1409_v5  ;;  %v2408_v5 = vld [vmem:[%s2706_s7 + $0x1d8] sm:$0xf0] }
 0x106   : > { %v1677_v45 = vadd.f32 %v2988_v36, %v1498_v30 }
 0x107   : > { %v1321_v12 = vpop.f32.mrf.mxu2 }
 0x108   : > { %v1322_v13 = vadd.f32 %v1321_v12, %v1233_v6  ;;  %v1410_v15 = vpop.f32.mrf.mxu3 }
 0x109   : > { %v1235_v28 = vpop.f32.mrf.mxu1 }
 0x10a   : > { %v1411_v31 = vadd.f32 %v1410_v15, %v1322_v13  ;;  %v1236_v47 = vadd.f32 %v1235_v28, %v2929_v61  ;;  %v2094_v61 = vor.u32 %v2404_v52, %v2091_v53  ;;  %v2102_v13 = vor.u32 %v2405_v59, %v2099_v3  ;;  %v2119_v53 = vld [vmem:[%s2706_s7 + $0x1fc] sm:$0xf0] }
 0x10b   : > { %v1502_v32 = vpop.f32.mrf.mxu0  ;;  %v2106_v15 = vor.u32 %v2408_v5, %v2105_v4 }
 0x10c   : > { %v1500_v33 = vadd.f32 %v1499_v57, %v1411_v31  ;;  %1274 = vmatmul.bf16.gmra.mxu1 %v2074_v41  ;;  %1363 = vmatmul.bf16.gmra.mxu2 %v2078_v16  ;;  %v2407_v57 = vld [vmem:[%s2706_s7 + $0x1d0] sm:$0xf0] }
 0x10d   : > { %1452 = vmatmul.bf16.gmra.mxu3 %v2082_v21  ;;  %v2098_v9 = vor.u32 %v2407_v57, %v2097_v56  ;;  %v2125_v56 = vld [vmem:[%s2706_s7 + $0x1f0] sm:$0xf]  ;;  %v2413_v57 = vld [vmem:[%s2706_s7 + $0x200] sm:$0xf0] }
 0x10e   : > { %1541 = vmatmul.bf16.gmra.mxu0 %v2086_v29  ;;  %v1678_v37 = vadd.f32 %v2988_v36, %v1500_v33 }
 0x10f   : > { %v1324_v46 = vpop.f32.mrf.mxu2 }
 0x110   : > { %v2477_v25 = vpack.c.bf16 %v1678_v37, %v1677_v45  ;;  %v1413_v48 = vpop.f32.mrf.mxu3  ;;  %v1325_v50 = vadd.f32 %v1324_v46, %v1236_v47  ;;  %v2111_v47 = vld [vmem:[%s2706_s7 + $0x1f4] sm:$0xf0] }
 0x111   : > { %v1237_v49 = vpop.f32.mrf.mxu1 }
 0x112   : > { %2549 = vst [vmem:[%s2996_s16 + $0x8] sm:$0xff] %v2477_v25   ;;  %v1414_v60 = vadd.f32 %v1413_v48, %v1325_v50  ;;  %v1238_v2 = vadd.f32 %v1237_v49, %v2937_v1  ;;  %v2409_v25 = vld [vmem:[%s2706_s7 + $0x1e4] sm:$0xf]  ;;  %v2117_v48 = vld [vmem:[%s2706_s7 + $0x1e8] sm:$0xf] }
 0x113   : > { %v1504_v51 = vpop.f32.mrf.mxu0  ;;  %v2412_v49 = vld [vmem:[%s2706_s7 + $0x1f8] sm:$0xf0]  ;;  %v2410_v50 = vld [vmem:[%s2706_s7 + $0x1ec] sm:$0xf] }
 0x114   : > { %v1503_v41 = vadd.f32 %v1502_v32, %v1414_v60  ;;  %v2118_v3 = vor.u32 %v2412_v49, %v2117_v48  ;;  %v2122_v5 = vor.u32 %v2410_v50, %v2119_v53 }
 0x116   : > { %v1679_v1 = vadd.f32 %v2988_v36, %v1503_v41 }
 0x117   : > { %v1326_v6 = vpop.f32.mrf.mxu2 }
 0x118   : > { %v1327_v7 = vadd.f32 %v1326_v6, %v1238_v2  ;;  %v1415_v8 = vpop.f32.mrf.mxu3  ;;  %v2126_v6 = vor.u32 %v2413_v57, %v2125_v56 }
 0x119   : > { %v1240_v12 = vpop.f32.mrf.mxu1 }
 0x11a   : > { %v1416_v16 = vadd.f32 %v1415_v8, %v1327_v7  ;;  %v1241_v32 = vadd.f32 %v1240_v12, %v2953_v17  ;;  %v2114_v17 = vor.u32 %v2409_v25, %v2111_v47  ;;  %v2145_v25 = vld [vmem:[%s2706_s7 + $0x218] sm:$0xf]  ;;  %v2418_v47 = vld [vmem:[%s2706_s7 + $0x228] sm:$0xf0] }
 0x11b   : > { %v1507_v28 = vpop.f32.mrf.mxu0  ;;  %v2146_v56 = vor.u32 %v2418_v47, %v2145_v25 }
 0x11c   : > { %v1505_v21 = vadd.f32 %v1504_v51, %v1416_v16  ;;  %1279 = vmatmul.bf16.gmra.mxu1 %v2094_v61  ;;  %1368 = vmatmul.bf16.gmra.mxu2 %v2098_v9 }
 0x11d   : > { %1457 = vmatmul.bf16.gmra.mxu3 %v2102_v13 }
 0x11e   : > { %1546 = vmatmul.bf16.gmra.mxu0 %v2106_v15  ;;  %v1680_v29 = vadd.f32 %v2988_v36, %v1505_v21 }
 0x11f   : > { %v1329_v30 = vpop.f32.mrf.mxu2 }
 0x120   : > { %v2482_v31 = vpack.c.bf16 %v1680_v29, %v1679_v1  ;;  %v1418_v33 = vpop.f32.mrf.mxu3  ;;  %v1330_v37 = vadd.f32 %v1329_v30, %v1241_v32  ;;  %v2414_v29 = vld [vmem:[%s2706_s7 + $0x20c] sm:$0xf]  ;;  %v2131_v30 = vld [vmem:[%s2706_s7 + $0x21c] sm:$0xf0]  ;;  %v2417_v32 = vld [vmem:[%s2706_s7 + $0x220] sm:$0xf0] }
 0x121   : > { %v1242_v45 = vpop.f32.mrf.mxu1 }
 0x122   : > { %2550 = vst [vmem:[%s2996_s16 + $0x10] sm:$0xff] %v2482_v31   ;;  %v1419_v51 = vadd.f32 %v1418_v33, %v1330_v37  ;;  %v1243_v52 = vadd.f32 %v1242_v45, %v2961_v27  ;;  %v2137_v31 = vld [vmem:[%s2706_s7 + $0x210] sm:$0xf]  ;;  %v2415_v33 = vld [vmem:[%s2706_s7 + $0x214] sm:$0xf] }
 0x123   : > { %v1509_v46 = vpop.f32.mrf.mxu0 }
 0x124   : > { %v1508_v7 = vadd.f32 %v1507_v28, %v1419_v51  ;;  %v2138_v51 = vor.u32 %v2417_v32, %v2137_v31 }
 0x126   : > { %v1681_v27 = vadd.f32 %v2988_v36, %v1508_v7 }
 0x127   : > { %v1331_v59 = vpop.f32.mrf.mxu2 }
 0x128   : > { %v1332_v60 = vadd.f32 %v1331_v59, %v1243_v52  ;;  %v1420_v2 = vpop.f32.mrf.mxu3 }
 0x129   : > { %v1245_v4 = vpop.f32.mrf.mxu1 }
 0x12a   : > { %v1421_v8 = vadd.f32 %v1420_v2, %v1332_v60  ;;  %v1246_v41 = vadd.f32 %v1245_v4, %v2879_v18  ;;  %v2134_v18 = vor.u32 %v2414_v29, %v2131_v30 }
 0x12b   : > { %v1512_v61 = vpop.f32.mrf.mxu0 }
 0x12c   : > { %v1510_v9 = vadd.f32 %v1509_v46, %v1421_v8  ;;  %1284 = vmatmul.bf16.gmra.mxu1 %v2114_v17  ;;  %1373 = vmatmul.bf16.gmra.mxu2 %v2118_v3  ;;  %v2139_v46 = vld [vmem:[%s2706_s7 + $0x224] sm:$0xf0] }
 0x12d   : > { %1462 = vmatmul.bf16.gmra.mxu3 %v2122_v5  ;;  %v2142_v53 = vor.u32 %v2415_v33, %v2139_v46 }
 0x12e   : > { %1551 = vmatmul.bf16.gmra.mxu0 %v2126_v6  ;;  %v1682_v12 = vadd.f32 %v2988_v36, %v1510_v9  ;;  %v2419_v9 = vld [vmem:[%s2706_s7 + $0x234] sm:$0xf] }
 0x12f   : > { %v1334_v13 = vpop.f32.mrf.mxu2 }
 0x130   : > { %v2487_v15 = vpack.c.bf16 %v1682_v12, %v1681_v27  ;;  %v1423_v16 = vpop.f32.mrf.mxu3  ;;  %v1335_v21 = vadd.f32 %v1334_v13, %v1246_v41  ;;  %v2151_v27 = vld [vmem:[%s2706_s7 + $0x244] sm:$0xf0]  ;;  %v2157_v12 = vld [vmem:[%s2706_s7 + $0x238] sm:$0xf]  ;;  %v2422_v13 = vld [vmem:[%s2706_s7 + $0x248] sm:$0xf0] }
 0x131   : > { %v1247_v28 = vpop.f32.mrf.mxu1  ;;  %v2158_v32 = vor.u32 %v2422_v13, %v2157_v12 }
 0x132   : > { %2551 = vst [vmem:[%s2996_s16 + $0x18] sm:$0xff] %v2487_v15   ;;  %v1424_v45 = vadd.f32 %v1423_v16, %v1335_v21  ;;  %v1248_v37 = vadd.f32 %v1247_v28, %v2887_v24  ;;  %v2420_v15 = vld [vmem:[%s2706_s7 + $0x23c] sm:$0xf]  ;;  %v2159_v28 = vld [vmem:[%s2706_s7 + $0x24c] sm:$0xf0] }
 0x133   : > { %v1514_v1 = vpop.f32.mrf.mxu0  ;;  %v2165_v21 = vld [vmem:[%s2706_s7 + $0x240] sm:$0xf] }
 0x134   : > { %v1513_v57 = vadd.f32 %v1512_v61, %v1424_v45  ;;  %v2162_v45 = vor.u32 %v2420_v15, %v2159_v28 }
 0x136   : > { %v1683_v24 = vadd.f32 %v2988_v36, %v1513_v57 }
 0x137   : > { %v1336_v48 = vpop.f32.mrf.mxu2 }
 0x138   : > { %v1337_v49 = vadd.f32 %v1336_v48, %v1248_v37  ;;  %v1425_v50 = vpop.f32.mrf.mxu3 }
 0x139   : > { %v1250_v52 = vpop.f32.mrf.mxu1 }
 0x13a   : > { %v1426_v59 = vadd.f32 %v1425_v50, %v1337_v49  ;;  %v1251_v5 = vadd.f32 %v1250_v52, %v2903_v38  ;;  %v2154_v38 = vor.u32 %v2419_v9, %v2151_v27 }
 0x13b   : > { %v1517_v60 = vpop.f32.mrf.mxu0 }
 0x13c   : > { %v1515_v2 = vadd.f32 %v1514_v1, %v1426_v59  ;;  %1289 = vmatmul.bf16.gmra.mxu1 %v2134_v18  ;;  %1378 = vmatmul.bf16.gmra.mxu2 %v2138_v51  ;;  %v2423_v1 = vld [vmem:[%s2706_s7 + $0x250] sm:$0xf0]  ;;  %v2424_v59 = vld [vmem:[%s2706_s7 + $0x25c] sm:$0xf] }
 0x13d   : > { %1467 = vmatmul.bf16.gmra.mxu3 %v2142_v53  ;;  %v2166_v37 = vor.u32 %v2423_v1, %v2165_v21 }
 0x13e   : > { %1556 = vmatmul.bf16.gmra.mxu0 %v2146_v56  ;;  %v1684_v17 = vadd.f32 %v2988_v36, %v1515_v2  ;;  %v2177_v2 = vld [vmem:[%s2706_s7 + $0x260] sm:$0xf] }
 0x13f   : > { %v1339_v3 = vpop.f32.mrf.mxu2 }
 0x140   : > { %v2492_v4 = vpack.c.bf16 %v1684_v17, %v1683_v24  ;;  %v1428_v6 = vpop.f32.mrf.mxu3  ;;  %v1340_v8 = vadd.f32 %v1339_v3, %v1251_v5  ;;  %v2427_v24 = vld [vmem:[%s2706_s7 + $0x270] sm:$0xf0]  ;;  %v2425_v17 = vld [vmem:[%s2706_s7 + $0x264] sm:$0xf]  ;;  %v2179_v5 = vld [vmem:[%s2706_s7 + $0x274] sm:$0xf0] }
 0x141   : > { %v1252_v7 = vpop.f32.mrf.mxu1  ;;  %v2178_v27 = vor.u32 %v2427_v24, %v2177_v2  ;;  %v2182_v13 = vor.u32 %v2425_v17, %v2179_v5 }
 0x142   : > { %2552 = vst [vmem:[%s2996_s16 + $0x20] sm:$0xff] %v2492_v4   ;;  %v1429_v41 = vadd.f32 %v1428_v6, %v1340_v8  ;;  %v1253_v16 = vadd.f32 %v1252_v7, %v2911_v44  ;;  %v2185_v6 = vld [vmem:[%s2706_s7 + $0x268] sm:$0xf]  ;;  %v2428_v7 = vld [vmem:[%s2706_s7 + $0x278] sm:$0xf0] }
 0x143   : > { %v1519_v61 = vpop.f32.mrf.mxu0  ;;  %v2186_v15 = vor.u32 %v2428_v7, %v2185_v6 }
 0x144   : > { %v1518_v46 = vadd.f32 %v1517_v60, %v1429_v41  ;;  %v2171_v60 = vld [vmem:[%s2706_s7 + $0x26c] sm:$0xf0] }
 0x146   : > { %v1685_v44 = vadd.f32 %v2988_v36, %v1518_v46 }
 0x147   : > { %v1341_v29 = vpop.f32.mrf.mxu2 }
 0x148   : > { %v1342_v30 = vadd.f32 %v1341_v29, %v1253_v16  ;;  %v1430_v31 = vpop.f32.mrf.mxu3 }
 0x149   : > { %v1255_v33 = vpop.f32.mrf.mxu1 }
 0x14a   : > { %v1431_v25 = vadd.f32 %v1430_v31, %v1342_v30  ;;  %v1256_v51 = vadd.f32 %v1255_v33, %v2927_v58  ;;  %v2174_v58 = vor.u32 %v2424_v59, %v2171_v60 }
 0x14b   : > { %v1522_v47 = vpop.f32.mrf.mxu0 }
 0x14c   : > { %v1520_v48 = vadd.f32 %v1519_v61, %v1431_v25  ;;  %1294 = vmatmul.bf16.gmra.mxu1 %v2154_v38  ;;  %1383 = vmatmul.bf16.gmra.mxu2 %v2158_v32 }
 0x14d   : > { %1472 = vmatmul.bf16.gmra.mxu3 %v2162_v45 }
 0x14e   : > { %1561 = vmatmul.bf16.gmra.mxu0 %v2166_v37  ;;  %v1686_v49 = vadd.f32 %v2988_v36, %v1520_v48 }
 0x14f   : > { %v1344_v50 = vpop.f32.mrf.mxu2 }
 0x150   : > { %v2497_v18 = vpack.c.bf16 %v1686_v49, %v1685_v44  ;;  %v1433_v52 = vpop.f32.mrf.mxu3  ;;  %v1345_v56 = vadd.f32 %v1344_v50, %v1256_v51 }
 0x151   : > { %v1257_v53 = vpop.f32.mrf.mxu1 }
 0x152   : > { %2553 = vst [vmem:[%s2996_s16 + $0x28] sm:$0xff] %v2497_v18   ;;  %v1434_v3 = vadd.f32 %v1433_v52, %v1345_v56  ;;  %v1258_v4 = vadd.f32 %v1257_v53, %v2935_v0 }
 0x153   : > { %v1524_v57 = vpop.f32.mrf.mxu0 }
 0x154   : > { %v1523_v41 = vadd.f32 %v1522_v47, %v1434_v3 }
 0x156   : > { %v1687_v0 = vadd.f32 %v2988_v36, %v1523_v41 }
 0x157   : > { %v1346_v8 = vpop.f32.mrf.mxu2 }
 0x158   : > { %v1347_v61 = vadd.f32 %v1346_v8, %v1258_v4  ;;  %v1435_v9 = vpop.f32.mrf.mxu3 }
 0x159   : > { %v1260_v12 = vpop.f32.mrf.mxu1 }
 0x15a   : > { %v1436_v16 = vadd.f32 %v1435_v9, %v1347_v61  ;;  %v1261_v31 = vadd.f32 %v1260_v12, %v2951_v14 }
 0x15b   : > { %v1527_v28 = vpop.f32.mrf.mxu0 }
 0x15c   : > { %v1525_v21 = vadd.f32 %v1524_v57, %v1436_v16  ;;  %1299 = vmatmul.bf16.gmra.mxu1 %v2174_v58  ;;  %1388 = vmatmul.bf16.gmra.mxu2 %v2178_v27 }
 0x15d   : > { %1477 = vmatmul.bf16.gmra.mxu3 %v2182_v13 }
 0x15e   : > { %1566 = vmatmul.bf16.gmra.mxu0 %v2186_v15  ;;  %v1688_v1 = vadd.f32 %v2988_v36, %v1525_v21 }
 0x15f   : > { %v1349_v29 = vpop.f32.mrf.mxu2 }
 0x160   : > { %v2502_v30 = vpack.c.bf16 %v1688_v1, %v1687_v0  ;;  %v1438_v38 = vpop.f32.mrf.mxu3  ;;  %v1350_v33 = vadd.f32 %v1349_v29, %v1261_v31 }
 0x161   : > { %v1262_v32 = vpop.f32.mrf.mxu1 }
 0x162   : > { %2554 = vst [vmem:[%s2996_s16 + $0x30] sm:$0xff] %v2502_v30   ;;  %v1439_v37 = vadd.f32 %v1438_v38, %v1350_v33  ;;  %v1263_v46 = vadd.f32 %v1262_v32, %v2959_v26 }
 0x163   : > { %v1529_v45 = vpop.f32.mrf.mxu0 }
 0x164   : > { %v1528_v49 = vadd.f32 %v1527_v28, %v1439_v37 }
 0x166   : > { %v1689_v52 = vadd.f32 %v2988_v36, %v1528_v49 }
 0x167   : > { %v1351_v25 = vpop.f32.mrf.mxu2 }
 0x168   : > { %v1352_v47 = vadd.f32 %v1351_v25, %v1263_v46  ;;  %v1440_v48 = vpop.f32.mrf.mxu3 }
 0x169   : > { %v1265_v44 = vpop.f32.mrf.mxu1 }
 0x16a   : > { %v1441_v50 = vadd.f32 %v1440_v48, %v1352_v47  ;;  %v1266_v57 = vadd.f32 %v1265_v44, %v2883_v22 }
 0x16b   : > { %v1532_v18 = vpop.f32.mrf.mxu0 }
 0x16c   : > { %v1530_v51 = vadd.f32 %v1529_v45, %v1441_v50 }
 0x16e   : > { %v1690_v14 = vadd.f32 %v2988_v36, %v1530_v51 }
 0x16f   : > { %v1354_v53 = vpop.f32.mrf.mxu2 }
 0x170   : > { %v2507_v56 = vpack.c.bf16 %v1690_v14, %v1689_v52  ;;  %v1443_v59 = vpop.f32.mrf.mxu3  ;;  %v1355_v26 = vadd.f32 %v1354_v53, %v1266_v57 }
 0x171   : > { %v1267_v60 = vpop.f32.mrf.mxu1 }
 0x172   : > { %2555 = vst [vmem:[%s2996_s16 + $0x38] sm:$0xff] %v2507_v56   ;;  %v1444_v24 = vadd.f32 %v1443_v59, %v1355_v26  ;;  %v1268_v17 = vadd.f32 %v1267_v60, %v2899_v34 }
 0x173   : > { %v1534_v2 = vpop.f32.mrf.mxu0 }
 0x174   : > { %v1533_v7 = vadd.f32 %v1532_v18, %v1444_v24 }
 0x176   : > { %v1691_v58 = vadd.f32 %v2988_v36, %v1533_v7 }
 0x177   : > { %v1356_v3 = vpop.f32.mrf.mxu2 }
 0x178   : > { %v1357_v4 = vadd.f32 %v1356_v3, %v1268_v17  ;;  %v1445_v5 = vpop.f32.mrf.mxu3 }
 0x179   : > { %v1270_v6 = vpop.f32.mrf.mxu1 }
 0x17a   : > { %v1446_v8 = vadd.f32 %v1445_v5, %v1357_v4  ;;  %v1271_v13 = vadd.f32 %v1270_v6, %v2907_v42 }
 0x17b   : > { %v1537_v61 = vpop.f32.mrf.mxu0 }
 0x17c   : > { %v1535_v9 = vadd.f32 %v1534_v2, %v1446_v8 }
 0x17e   : > { %v1692_v22 = vadd.f32 %v2988_v36, %v1535_v9 }
 0x17f   : > { %v1359_v27 = vpop.f32.mrf.mxu2 }
 0x180   : > { %v2512_v12 = vpack.c.bf16 %v1692_v22, %v1691_v58  ;;  %v1448_v15 = vpop.f32.mrf.mxu3  ;;  %v1360_v34 = vadd.f32 %v1359_v27, %v1271_v13 }
 0x181   : > { %v1272_v41 = vpop.f32.mrf.mxu1 }
 0x182   : > { %2556 = vst [vmem:[%s2996_s16 + $0x40] sm:$0xff] %v2512_v12   ;;  %v1449_v28 = vadd.f32 %v1448_v15, %v1360_v34  ;;  %v1273_v21 = vadd.f32 %v1272_v41, %v2923_v54 }
 0x183   : > { %v1539_v16 = vpop.f32.mrf.mxu0 }
 0x184   : > { %v1538_v31 = vadd.f32 %v1537_v61, %v1449_v28 }
 0x186   : > { %v1693_v45 = vadd.f32 %v2988_v36, %v1538_v31 }
 0x187   : > { %v1361_v0 = vpop.f32.mrf.mxu2 }
 0x188   : > { %v1362_v1 = vadd.f32 %v1361_v0, %v1273_v21  ;;  %v1450_v29 = vpop.f32.mrf.mxu3 }
 0x189   : > { %v1275_v30 = vpop.f32.mrf.mxu1 }
 0x18a   : > { %v1451_v38 = vadd.f32 %v1450_v29, %v1362_v1  ;;  %v1276_v25 = vadd.f32 %v1275_v30, %v2931_v62 }
 0x18b   : > { %v1542_v32 = vpop.f32.mrf.mxu0 }
 0x18c   : > { %v1540_v33 = vadd.f32 %v1539_v16, %v1451_v38 }
 0x18e   : > { %v1694_v42 = vadd.f32 %v2988_v36, %v1540_v33 }
 0x18f   : > { %v1364_v37 = vpop.f32.mrf.mxu2 }
 0x190   : > { %v2517_v46 = vpack.c.bf16 %v1694_v42, %v1693_v45  ;;  %v1453_v47 = vpop.f32.mrf.mxu3  ;;  %v1365_v54 = vadd.f32 %v1364_v37, %v1276_v25 }
 0x191   : > { %v1277_v48 = vpop.f32.mrf.mxu1 }
 0x192   : > { %2557 = vst [vmem:[%s2996_s16 + $0x48] sm:$0xff] %v2517_v46   ;;  %v1454_v49 = vadd.f32 %v1453_v47, %v1365_v54  ;;  %v1278_v50 = vadd.f32 %v1277_v48, %v2947_v10 }
 0x193   : > { %v1544_v44 = vpop.f32.mrf.mxu0 }
 0x194   : > { %v1543_v53 = vadd.f32 %v1542_v32, %v1454_v49 }
 0x196   : > { %v1695_v60 = vadd.f32 %v2988_v36, %v1543_v53 }
 0x197   : > { %v1366_v18 = vpop.f32.mrf.mxu2 }
 0x198   : > { %v1367_v51 = vadd.f32 %v1366_v18, %v1278_v50  ;;  %v1455_v52 = vpop.f32.mrf.mxu3 }
 0x199   : > { %v1280_v14 = vpop.f32.mrf.mxu1 }
 0x19a   : > { %v1456_v56 = vadd.f32 %v1455_v52, %v1367_v51  ;;  %v1281_v24 = vadd.f32 %v1280_v14, %v2955_v19 }
 0x19b   : > { %v1547_v57 = vpop.f32.mrf.mxu0 }
 0x19c   : > { %v1545_v59 = vadd.f32 %v1544_v44, %v1456_v56 }
 0x19e   : > { %v1696_v62 = vadd.f32 %v2988_v36, %v1545_v59 }
 0x19f   : > { %v1369_v26 = vpop.f32.mrf.mxu2 }
 0x1a0   : > { %v2522_v2 = vpack.c.bf16 %v1696_v62, %v1695_v60  ;;  %v1458_v17 = vpop.f32.mrf.mxu3  ;;  %v1370_v10 = vadd.f32 %v1369_v26, %v1281_v24 }
 0x1a1   : > { %v1282_v3 = vpop.f32.mrf.mxu1 }
 0x1a2   : > { %2558 = vst [vmem:[%s2996_s16 + $0x50] sm:$0xff] %v2522_v2   ;;  %v1459_v5 = vadd.f32 %v1458_v17, %v1370_v10  ;;  %v1283_v6 = vadd.f32 %v1282_v3, %v2971_v39 }
 0x1a3   : > { %v1549_v4 = vpop.f32.mrf.mxu0 }
 0x1a4   : > { %v1548_v58 = vadd.f32 %v1547_v57, %v1459_v5 }
 0x1a6   : > { %v1697_v13 = vadd.f32 %v2988_v36, %v1548_v58 }
 0x1a7   : > { %v1371_v7 = vpop.f32.mrf.mxu2 }
 0x1a8   : > { %v1372_v8 = vadd.f32 %v1371_v7, %v1283_v6  ;;  %v1460_v61 = vpop.f32.mrf.mxu3 }
 0x1a9   : > { %v1285_v9 = vpop.f32.mrf.mxu1 }
 0x1aa   : > { %v1461_v22 = vadd.f32 %v1460_v61, %v1372_v8  ;;  %v1286_v34 = vadd.f32 %v1285_v9, %v2885_v23 }
 0x1ab   : > { %v1552_v27 = vpop.f32.mrf.mxu0 }
 0x1ac   : > { %v1550_v12 = vadd.f32 %v1549_v4, %v1461_v22 }
 0x1ae   : > { %v1698_v19 = vadd.f32 %v2988_v36, %v1550_v12 }
 0x1af   : > { %v1374_v15 = vpop.f32.mrf.mxu2 }
 0x1b0   : > { %v2527_v41 = vpack.c.bf16 %v1698_v19, %v1697_v13  ;;  %v1463_v16 = vpop.f32.mrf.mxu3  ;;  %v1375_v39 = vadd.f32 %v1374_v15, %v1286_v34 }
 0x1b1   : > { %v1287_v28 = vpop.f32.mrf.mxu1 }
 0x1b2   : > { %2559 = vst [vmem:[%s2996_s16 + $0x58] sm:$0xff] %v2527_v41   ;;  %v1464_v0 = vadd.f32 %v1463_v16, %v1375_v39  ;;  %v1288_v1 = vadd.f32 %v1287_v28, %v2901_v35 }
 0x1b3   : > { %v1554_v21 = vpop.f32.mrf.mxu0 }
 0x1b4   : > { %v1553_v32 = vadd.f32 %v1552_v27, %v1464_v0 }
 0x1b6   : > { %v1699_v37 = vadd.f32 %v2988_v36, %v1553_v32 }
 0x1b7   : > { %v1376_v29 = vpop.f32.mrf.mxu2 }
 0x1b8   : > { %v1377_v30 = vadd.f32 %v1376_v29, %v1288_v1  ;;  %v1465_v31 = vpop.f32.mrf.mxu3 }
 0x1b9   : > { %v1290_v38 = vpop.f32.mrf.mxu1 }
 0x1ba   : > { %v1466_v33 = vadd.f32 %v1465_v31, %v1377_v30  ;;  %v1291_v47 = vadd.f32 %v1290_v38, %v2909_v43 }
 0x1bb   : > { %v1557_v45 = vpop.f32.mrf.mxu0 }
 0x1bc   : > { %v1555_v42 = vadd.f32 %v1554_v21, %v1466_v33 }
 0x1be   : > { %v1700_v23 = vadd.f32 %v2988_v36, %v1555_v42 }
 0x1bf   : > { %v1379_v46 = vpop.f32.mrf.mxu2 }
 0x1c0   : > { %v2532_v25 = vpack.c.bf16 %v1700_v23, %v1699_v37  ;;  %v1468_v48 = vpop.f32.mrf.mxu3  ;;  %v1380_v35 = vadd.f32 %v1379_v46, %v1291_v47 }
 0x1c1   : > { %v1292_v54 = vpop.f32.mrf.mxu1 }
 0x1c2   : > { %2560 = vst [vmem:[%s2996_s16 + $0x60] sm:$0xff] %v2532_v25   ;;  %v1469_v49 = vadd.f32 %v1468_v48, %v1380_v35  ;;  %v1293_v50 = vadd.f32 %v1292_v54, %v2925_v55 }
 0x1c3   : > { %v1559_v44 = vpop.f32.mrf.mxu0 }
 0x1c4   : > { %v1558_v53 = vadd.f32 %v1557_v45, %v1469_v49 }
 0x1c6   : > { %v1701_v60 = vadd.f32 %v2988_v36, %v1558_v53 }
 0x1c7   : > { %v1381_v18 = vpop.f32.mrf.mxu2 }
 0x1c8   : > { %v1382_v51 = vadd.f32 %v1381_v18, %v1293_v50  ;;  %v1470_v52 = vpop.f32.mrf.mxu3 }
 0x1c9   : > { %v1295_v14 = vpop.f32.mrf.mxu1 }
 0x1ca   : > { %v1471_v56 = vadd.f32 %v1470_v52, %v1382_v51  ;;  %v1296_v2 = vadd.f32 %v1295_v14, %v2933_v63 }
 0x1cb   : > { %v1562_v59 = vpop.f32.mrf.mxu0 }
 0x1cc   : > { %v1560_v57 = vadd.f32 %v1559_v44, %v1471_v56 }
 0x1ce   : > { %v1702_v43 = vadd.f32 %v2988_v36, %v1560_v57 }
 0x1cf   : > { %v1384_v62 = vpop.f32.mrf.mxu2 }
 0x1d0   : > { %v2537_v26 = vpack.c.bf16 %v1702_v43, %v1701_v60  ;;  %v1473_v24 = vpop.f32.mrf.mxu3  ;;  %v1385_v55 = vadd.f32 %v1384_v62, %v1296_v2 }
 0x1d1   : > { %v1297_v17 = vpop.f32.mrf.mxu1 }
 0x1d2   : > { %2561 = vst [vmem:[%s2996_s16 + $0x68] sm:$0xff] %v2537_v26   ;;  %v1474_v3 = vadd.f32 %v1473_v24, %v1385_v55  ;;  %v1298_v10 = vadd.f32 %v1297_v17, %v2949_v11 }
 0x1d3   : > { %v1564_v4 = vpop.f32.mrf.mxu0 }
 0x1d4   : > { %v1563_v61 = vadd.f32 %v1562_v59, %v1474_v3 }
 0x1d6   : > { %v1703_v22 = vadd.f32 %v2988_v36, %v1563_v61 }
 0x1d7   : > { %v1386_v5 = vpop.f32.mrf.mxu2 }
 0x1d8   : > { %v1387_v6 = vadd.f32 %v1386_v5, %v1298_v10  ;;  %v1475_v7 = vpop.f32.mrf.mxu3 }
 0x1d9   : > { %v1300_v8 = vpop.f32.mrf.mxu1 }
 0x1da   : > { %v1476_v9 = vadd.f32 %v1475_v7, %v1387_v6  ;;  %v1301_v13 = vadd.f32 %v1300_v8, %v2957_v20 }
 0x1db   : > { %v1567_v15 = vpop.f32.mrf.mxu0 }
 0x1dc   : > { %v1565_v58 = vadd.f32 %v1564_v4, %v1476_v9 }
 0x1de   : > { %v1704_v63 = vadd.f32 %v2988_v36, %v1565_v58 }
 0x1df   : > { %v1389_v27 = vpop.f32.mrf.mxu2 }
 0x1e0   : > { %v2542_v12 = vpack.c.bf16 %v1704_v63, %v1703_v22  ;;  %v1478_v19 = vpop.f32.mrf.mxu3  ;;  %v1390_v11 = vadd.f32 %v1389_v27, %v1301_v13 }
 0x1e1   : > { %v1302_v41 = vpop.f32.mrf.mxu1 }
 0x1e2   : > { %2562 = vst [vmem:[%s2996_s16 + $0x70] sm:$0xff] %v2542_v12   ;;  %v1479_v34 = vadd.f32 %v1478_v19, %v1390_v11  ;;  %v1303_v16 = vadd.f32 %v1302_v41, %v2973_v40 }
 0x1e3   : > { %v1569_v29 = vpop.f32.mrf.mxu0 }
 0x1e4   : > { %v1568_v0 = vadd.f32 %v1567_v15, %v1479_v34 }
 0x1e6   : > { %v1705_v31 = vadd.f32 %v2988_v36, %v1568_v0 }
 0x1e7   : > { %v1391_v28 = vpop.f32.mrf.mxu2 }
 0x1e8   : > { %v1392_v39 = vadd.f32 %v1391_v28, %v1303_v16  ;;  %v1480_v21 = vpop.f32.mrf.mxu3 }
 0x1ea   : > { %v1481_v1 = vadd.f32 %v1480_v21, %v1392_v39 }
 0x1ec   : > { %v1570_v30 = vadd.f32 %v1569_v29, %v1481_v1 }
 0x1ee   : > { %v1706_v20 = vadd.f32 %v2988_v36, %v1570_v30 }
 0x1f0   : > { %v2547_v38 = vpack.c.bf16 %v1706_v20, %v1705_v31 }
 0x1f2   : > { %2563 = vst [vmem:[%s2996_s16 + $0x78] sm:$0xff] %v2547_v38  }
 0x1f3 PF: > { %s13_s14 = sadd.s32 1, %s2636_s14   ;;  %s3135_s12 = smov %s2632_s13 }
 0x1f4   : > { %p10_p5 = scmp.ge.s32.totalorder %s13_s14, 4   ;;  %s3136_s13 = smov %s3138_s15 }
 0x1f6   :  { %12 = sbr.rel (!%p10_p5) target bundleno = 2 (0x2), region = 73 }

// kernel: ff2_forward.7
= control target key start
LH: loop header
LB: loop body
LE: loop exit
PB: predicated region body
PF: predicated region fallthrough
CT: control target
= control target key end

     0   :  { %s3127_s0 = inlined_call_operand.vmem [shape: bf16[512,1536], index: 0, kind: input, shape index: {}]   ;;  %s3128_s1 = inlined_call_operand.vmem [shape: bf16[1536,128], index: 1, kind: input, shape index: {}]   ;;  %s3129_s2 = inlined_call_operand.vmem [shape: f32[1,128], index: 2, kind: input, shape index: {}]   ;;  %s3130_s3 = inlined_call_operand.vmem [shape: f32[512,128], index: 3, kind: input, shape index: {}]   ;;  %s3131_s4 = inlined_call_operand.hbm [shape: f32[512,128], index: 4, kind: output, shape index: {}]  }
   0x1   :  { %3135 = sst [smem:[#allocation9_spill]] %s3127_s0 }
   0x2   :  { %9 = vsyncpa [#allocation5], 0 }
   0x3   :  { %11 = vsyncpa [#allocation5 + $0x1], 0  ;;  %s2560_s15 = smov 0   ;;  %s2562_s16 = smov 0  }
   0x4   :  { %s2564_s17 = smov 0   ;;  %s2566_s18 = smov 0  }
   0x5   :  { %s2568_s19 = smov 0   ;;  %s2570_s20 = smov 0  }
   0x6   :  { %s2572_s21 = smov 0   ;;  %s2574_s22 = smov 0  }
   0x7   :  { %s2576_s23 = smov 0   ;;  %s2578_s24 = smov 0  }
   0x8 LB: > { %s1824_s25 = sadd.s32 4294967295, %s2530_s24   ;;  %s1825_s26 = sadd.s32 4294967294, %s2530_s24   ;;  %s2530_s24 = sphi %s2578_s24, %s17_s24   ;;  %s2526_s23 = sphi %s2576_s23, %s3153_s23   ;;  %s2522_s22 = sphi %s2574_s22, %s3152_s22   ;;  %s2518_s21 = sphi %s2572_s21, %s3151_s21   ;;  %s2514_s20 = sphi %s2570_s20, %s3150_s20   ;;  %s2510_s19 = sphi %s2568_s19, %s3149_s19   ;;  %s2506_s18 = sphi %s2566_s18, %s3148_s18   ;;  %s2502_s17 = sphi %s2564_s17, %s3147_s17   ;;  %s2498_s16 = sphi %s2562_s16, %s3146_s16   ;;  %s2494_s15 = sphi %s2560_s15, %s3145_s15  }
   0x9   : > { %s26_s27 = sadd.s32 1, %s2522_s22  ;;  %s29_s28 = sadd.s32 1, %s2526_s23 }
   0xa   : > { %p27_p0 = scmp.ge.s32.totalorder %s26_s27, 3  ;;  %s38_s29 = sadd.s32 1, %s2510_s19 }
   0xb   : > { %p45_p1 = scmp.ne.s32.totalorder %s2510_s19, %s2506_s18  ;;  %p46_p2 = scmp.eq.s32.totalorder %s2530_s24, 0 }
   0xc   : > { %s3155_s27 = smov (%p27_p0, %s26_s27), 0  ;;  %s3157_s28 = smov (!%p27_p0, %s29_s28), %s2526_s23 }
   0xd   : > { %3136 = sst [smem:[#allocation7_spill]] %s3155_s27  ;;  %s34_s30 = ssub.s32 %s2522_s22, %s3155_s27 }
   0xe   : > { %p2623_p3 = por %p46_p2, %p45_p1  ;;  %p31_p4 = scmp.ge.s32.totalorder %s3157_s28, 2 }
   0xf   : > { %s137_s6 = sadd.s32 1, %s2502_s17  ;;  %p147_p5 = scmp.ne.s32.totalorder %s2502_s17, %s2498_s16 }
  0x10   : > { %p148_p6 = scmp.eq.s32.totalorder %s1824_s25, 5  ;;  %s3159_s28 = smov (%p31_p4, %s3157_s28), 0 }
  0x11   : > { %3138 = sst [smem:[#allocation8_spill]] %s3159_s28  ;;  %p153_p8 = scmp.ne.s32.totalorder %s2498_s16, %s2494_s15 }
  0x12   : > { %p2632_p7 = por %p148_p6, %p147_p5  ;;  %s33_s8 = ssub.s32 %s2526_s23, %s3159_s28 }
  0x13   : > { %p154_p9 = scmp.eq.s32.totalorder %s1825_s26, 5  ;;  %s35_s9 = sor.u32 %s34_s30, %s33_s8 }
  0x14   : > { %p135_p10 = scmp.eq.s32.totalorder %s33_s8, 0  ;;  %p36_p11 = scmp.eq.s32.totalorder %s35_s9, 0 }
  0x15   : > { %p2640_p12 = por %p154_p9, %p153_p8  ;;  %p1827_p13 = scmp.ge.s32.totalorder %s2530_s24, 6 }
  0x16   : > { %s2645_s11 = scalar_select %p135_p10, %s2502_s17, %s137_s6  }
  0x17   : > { %s2648_s12 = scalar_select %p36_p11, %s2510_s19, %s38_s29  }
  0x18   : > { %173 = sbr.rel (%p1827_p13) target bundleno = 103 (0x67), region = 20 }
  0x1d   : > { %176 = sbr.rel (!%p2623_p3) target bundleno = 103 (0x67), region = 24  ;;  %s178_s13 = sand.u32 (%p2623_p3), 1, %s2510_s19  }
  0x1e   : > { %s1830_s14 = sshll.u32 (%p2623_p3), %s2522_s22, 2  ;;  %s1828_s25 = sshll.u32 (%p2623_p3), %s178_s13, 9 }
  0x1f   : > { %s2328_s26 = smul.u32 (%p2623_p3), 384, %s2526_s23  ;;  %s3141_s0 = sld [smem:[#allocation9_spill]] (%p2623_p3) }
  0x20   : > { %s2664_s5 = scalar_lea.vmem (%p2623_p3), [#allocation3], %s1828_s25 }
  0x21   : > { %s184_s30 = sadd.s32 (%p2623_p3), %s2328_s26, %s1830_s14 }
  0x22   : > { %s1832_s8 = sshll.u32 %s184_s30, 2 }
  0x25   : > { %s2659_s29 = scalar_lea.vmem %s3141_s0, %s1832_s8 }
  0x26   : > { %v199_v0 = vld [vmem:[%s2659_s29] sm:$0xff]  ;;  %v201_v1 = vld [vmem:[%s2659_s29 + $0x8] sm:$0xff]  ;;  %v203_v2 = vld [vmem:[%s2659_s29 + $0x30] sm:$0xff] }
  0x27   : > { %200 = vst [vmem:[%s2664_s5] sm:$0xff] %v199_v0  ;;  %v205_v3 = vld [vmem:[%s2659_s29 + $0x38] sm:$0xff]  ;;  %v207_v4 = vld [vmem:[%s2659_s29 + $0x60] sm:$0xff]  ;;  %v209_v5 = vld [vmem:[%s2659_s29 + $0x68] sm:$0xff] }
  0x28   : > { %202 = vst [vmem:[%s2664_s5 + $0x8] sm:$0xff] %v201_v1  ;;  %v211_v6 = vld [vmem:[%s2659_s29 + $0x90] sm:$0xff]  ;;  %v213_v7 = vld [vmem:[%s2659_s29 + $0x98] sm:$0xff]  ;;  %v215_v8 = vld [vmem:[%s2659_s29 + $0xc0] sm:$0xff] }
  0x29   : > { %204 = vst [vmem:[%s2664_s5 + $0x10] sm:$0xff] %v203_v2  ;;  %v217_v9 = vld [vmem:[%s2659_s29 + $0xc8] sm:$0xff]  ;;  %v219_v10 = vld [vmem:[%s2659_s29 + $0xf0] sm:$0xff]  ;;  %v221_v11 = vld [vmem:[%s2659_s29 + $0xf8] sm:$0xff] }
  0x2a   : > { %206 = vst [vmem:[%s2664_s5 + $0x18] sm:$0xff] %v205_v3  ;;  %v223_v12 = vld [vmem:[%s2659_s29 + $0x120] sm:$0xff]  ;;  %v225_v13 = vld [vmem:[%s2659_s29 + $0x128] sm:$0xff]  ;;  %v227_v14 = vld [vmem:[%s2659_s29 + $0x150] sm:$0xff] }
  0x2b   : > { %208 = vst [vmem:[%s2664_s5 + $0x20] sm:$0xff] %v207_v4  ;;  %v229_v15 = vld [vmem:[%s2659_s29 + $0x158] sm:$0xff]  ;;  %v231_v16 = vld [vmem:[%s2659_s29 + $0x180] sm:$0xff]  ;;  %v233_v17 = vld [vmem:[%s2659_s29 + $0x188] sm:$0xff] }
  0x2c   : > { %210 = vst [vmem:[%s2664_s5 + $0x28] sm:$0xff] %v209_v5  ;;  %v235_v18 = vld [vmem:[%s2659_s29 + $0x1b0] sm:$0xff]  ;;  %v237_v19 = vld [vmem:[%s2659_s29 + $0x1b8] sm:$0xff]  ;;  %v239_v20 = vld [vmem:[%s2659_s29 + $0x1e0] sm:$0xff] }
  0x2d   : > { %212 = vst [vmem:[%s2664_s5 + $0x30] sm:$0xff] %v211_v6  ;;  %v241_v21 = vld [vmem:[%s2659_s29 + $0x1e8] sm:$0xff]  ;;  %v243_v22 = vld [vmem:[%s2659_s29 + $0x210] sm:$0xff]  ;;  %v245_v23 = vld [vmem:[%s2659_s29 + $0x218] sm:$0xff] }
  0x2e   : > { %214 = vst [vmem:[%s2664_s5 + $0x38] sm:$0xff] %v213_v7  ;;  %v247_v24 = vld [vmem:[%s2659_s29 + $0x240] sm:$0xff]  ;;  %v249_v25 = vld [vmem:[%s2659_s29 + $0x248] sm:$0xff]  ;;  %v251_v26 = vld [vmem:[%s2659_s29 + $0x270] sm:$0xff] }
  0x2f   : > { %216 = vst [vmem:[%s2664_s5 + $0x40] sm:$0xff] %v215_v8  ;;  %v253_v27 = vld [vmem:[%s2659_s29 + $0x278] sm:$0xff]  ;;  %v255_v28 = vld [vmem:[%s2659_s29 + $0x2a0] sm:$0xff]  ;;  %v257_v29 = vld [vmem:[%s2659_s29 + $0x2a8] sm:$0xff] }
  0x30   : > { %218 = vst [vmem:[%s2664_s5 + $0x48] sm:$0xff] %v217_v9  ;;  %v259_v30 = vld [vmem:[%s2659_s29 + $0x2d0] sm:$0xff]  ;;  %v261_v31 = vld [vmem:[%s2659_s29 + $0x2d8] sm:$0xff]  ;;  %v263_v32 = vld [vmem:[%s2659_s29 + $0x300] sm:$0xff] }
  0x31   : > { %220 = vst [vmem:[%s2664_s5 + $0x50] sm:$0xff] %v219_v10  ;;  %v265_v33 = vld [vmem:[%s2659_s29 + $0x308] sm:$0xff]  ;;  %v267_v34 = vld [vmem:[%s2659_s29 + $0x330] sm:$0xff]  ;;  %v269_v35 = vld [vmem:[%s2659_s29 + $0x338] sm:$0xff] }
  0x32   : > { %222 = vst [vmem:[%s2664_s5 + $0x58] sm:$0xff] %v221_v11  ;;  %v271_v36 = vld [vmem:[%s2659_s29 + $0x360] sm:$0xff]  ;;  %v273_v37 = vld [vmem:[%s2659_s29 + $0x368] sm:$0xff]  ;;  %v275_v38 = vld [vmem:[%s2659_s29 + $0x390] sm:$0xff] }
  0x33   : > { %224 = vst [vmem:[%s2664_s5 + $0x60] sm:$0xff] %v223_v12  ;;  %v277_v39 = vld [vmem:[%s2659_s29 + $0x398] sm:$0xff]  ;;  %v279_v40 = vld [vmem:[%s2659_s29 + $0x3c0] sm:$0xff]  ;;  %v281_v41 = vld [vmem:[%s2659_s29 + $0x3c8] sm:$0xff] }
  0x34   : > { %226 = vst [vmem:[%s2664_s5 + $0x68] sm:$0xff] %v225_v13  ;;  %v283_v42 = vld [vmem:[%s2659_s29 + $0x3f0] sm:$0xff]  ;;  %v285_v43 = vld [vmem:[%s2659_s29 + $0x3f8] sm:$0xff]  ;;  %v287_v44 = vld [vmem:[%s2659_s29 + $0x420] sm:$0xff] }
  0x35   : > { %228 = vst [vmem:[%s2664_s5 + $0x70] sm:$0xff] %v227_v14  ;;  %v289_v45 = vld [vmem:[%s2659_s29 + $0x428] sm:$0xff]  ;;  %v291_v46 = vld [vmem:[%s2659_s29 + $0x450] sm:$0xff]  ;;  %v293_v47 = vld [vmem:[%s2659_s29 + $0x458] sm:$0xff] }
  0x36   : > { %230 = vst [vmem:[%s2664_s5 + $0x78] sm:$0xff] %v229_v15  ;;  %v295_v48 = vld [vmem:[%s2659_s29 + $0x480] sm:$0xff]  ;;  %v297_v49 = vld [vmem:[%s2659_s29 + $0x488] sm:$0xff]  ;;  %v299_v50 = vld [vmem:[%s2659_s29 + $0x4b0] sm:$0xff] }
  0x37   : > { %232 = vst [vmem:[%s2664_s5 + $0x80] sm:$0xff] %v231_v16  ;;  %v301_v51 = vld [vmem:[%s2659_s29 + $0x4b8] sm:$0xff]  ;;  %v303_v52 = vld [vmem:[%s2659_s29 + $0x4e0] sm:$0xff]  ;;  %v305_v53 = vld [vmem:[%s2659_s29 + $0x4e8] sm:$0xff] }
  0x38   : > { %234 = vst [vmem:[%s2664_s5 + $0x88] sm:$0xff] %v233_v17  ;;  %v307_v54 = vld [vmem:[%s2659_s29 + $0x510] sm:$0xff]  ;;  %v309_v55 = vld [vmem:[%s2659_s29 + $0x518] sm:$0xff]  ;;  %v311_v56 = vld [vmem:[%s2659_s29 + $0x540] sm:$0xff] }
  0x39   : > { %236 = vst [vmem:[%s2664_s5 + $0x90] sm:$0xff] %v235_v18  ;;  %v313_v57 = vld [vmem:[%s2659_s29 + $0x548] sm:$0xff]  ;;  %v315_v58 = vld [vmem:[%s2659_s29 + $0x570] sm:$0xff]  ;;  %v317_v59 = vld [vmem:[%s2659_s29 + $0x578] sm:$0xff] }
  0x3a   : > { %238 = vst [vmem:[%s2664_s5 + $0x98] sm:$0xff] %v237_v19  ;;  %v319_v60 = vld [vmem:[%s2659_s29 + $0x5a0] sm:$0xff]  ;;  %v321_v61 = vld [vmem:[%s2659_s29 + $0x5a8] sm:$0xff]  ;;  %v323_v62 = vld [vmem:[%s2659_s29 + $0x5d0] sm:$0xff] }
  0x3b   : > { %240 = vst [vmem:[%s2664_s5 + $0xa0] sm:$0xff] %v239_v20  ;;  %v325_v63 = vld [vmem:[%s2659_s29 + $0x5d8] sm:$0xff] }
  0x3c   : > { %242 = vst [vmem:[%s2664_s5 + $0xa8] sm:$0xff] %v241_v21 }
  0x3d   : > { %244 = vst [vmem:[%s2664_s5 + $0xb0] sm:$0xff] %v243_v22 }
  0x3e   : > { %246 = vst [vmem:[%s2664_s5 + $0xb8] sm:$0xff] %v245_v23 }
  0x3f   : > { %248 = vst [vmem:[%s2664_s5 + $0xc0] sm:$0xff] %v247_v24 }
  0x40   : > { %250 = vst [vmem:[%s2664_s5 + $0xc8] sm:$0xff] %v249_v25 }
  0x41   : > { %252 = vst [vmem:[%s2664_s5 + $0xd0] sm:$0xff] %v251_v26 }
  0x42   : > { %254 = vst [vmem:[%s2664_s5 + $0xd8] sm:$0xff] %v253_v27 }
  0x43   : > { %256 = vst [vmem:[%s2664_s5 + $0xe0] sm:$0xff] %v255_v28 }
  0x44   : > { %258 = vst [vmem:[%s2664_s5 + $0xe8] sm:$0xff] %v257_v29 }
  0x45   : > { %260 = vst [vmem:[%s2664_s5 + $0xf0] sm:$0xff] %v259_v30 }
  0x46   : > { %262 = vst [vmem:[%s2664_s5 + $0xf8] sm:$0xff] %v261_v31 }
  0x47   : > { %264 = vst [vmem:[%s2664_s5 + $0x100] sm:$0xff] %v263_v32 }
  0x48   : > { %266 = vst [vmem:[%s2664_s5 + $0x108] sm:$0xff] %v265_v33 }
  0x49   : > { %268 = vst [vmem:[%s2664_s5 + $0x110] sm:$0xff] %v267_v34 }
  0x4a   : > { %270 = vst [vmem:[%s2664_s5 + $0x118] sm:$0xff] %v269_v35 }
  0x4b   : > { %272 = vst [vmem:[%s2664_s5 + $0x120] sm:$0xff] %v271_v36 }
  0x4c   : > { %274 = vst [vmem:[%s2664_s5 + $0x128] sm:$0xff] %v273_v37 }
  0x4d   : > { %276 = vst [vmem:[%s2664_s5 + $0x130] sm:$0xff] %v275_v38 }
  0x4e   : > { %278 = vst [vmem:[%s2664_s5 + $0x138] sm:$0xff] %v277_v39 }
  0x4f   : > { %280 = vst [vmem:[%s2664_s5 + $0x140] sm:$0xff] %v279_v40 }
  0x50   : > { %282 = vst [vmem:[%s2664_s5 + $0x148] sm:$0xff] %v281_v41 }
  0x51   : > { %284 = vst [vmem:[%s2664_s5 + $0x150] sm:$0xff] %v283_v42 }
  0x52   : > { %286 = vst [vmem:[%s2664_s5 + $0x158] sm:$0xff] %v285_v43 }
  0x53   : > { %288 = vst [vmem:[%s2664_s5 + $0x160] sm:$0xff] %v287_v44 }
  0x54   : > { %290 = vst [vmem:[%s2664_s5 + $0x168] sm:$0xff] %v289_v45 }
  0x55   : > { %292 = vst [vmem:[%s2664_s5 + $0x170] sm:$0xff] %v291_v46 }
  0x56   : > { %294 = vst [vmem:[%s2664_s5 + $0x178] sm:$0xff] %v293_v47 }
  0x57   : > { %296 = vst [vmem:[%s2664_s5 + $0x180] sm:$0xff] %v295_v48 }
  0x58   : > { %298 = vst [vmem:[%s2664_s5 + $0x188] sm:$0xff] %v297_v49 }
  0x59   : > { %300 = vst [vmem:[%s2664_s5 + $0x190] sm:$0xff] %v299_v50 }
  0x5a   : > { %302 = vst [vmem:[%s2664_s5 + $0x198] sm:$0xff] %v301_v51 }
  0x5b   : > { %304 = vst [vmem:[%s2664_s5 + $0x1a0] sm:$0xff] %v303_v52 }
  0x5c   : > { %306 = vst [vmem:[%s2664_s5 + $0x1a8] sm:$0xff] %v305_v53 }
  0x5d   : > { %308 = vst [vmem:[%s2664_s5 + $0x1b0] sm:$0xff] %v307_v54 }
  0x5e   : > { %310 = vst [vmem:[%s2664_s5 + $0x1b8] sm:$0xff] %v309_v55 }
  0x5f   : > { %312 = vst [vmem:[%s2664_s5 + $0x1c0] sm:$0xff] %v311_v56 }
  0x60   : > { %314 = vst [vmem:[%s2664_s5 + $0x1c8] sm:$0xff] %v313_v57 }
  0x61   : > { %316 = vst [vmem:[%s2664_s5 + $0x1d0] sm:$0xff] %v315_v58 }
  0x62   : > { %318 = vst [vmem:[%s2664_s5 + $0x1d8] sm:$0xff] %v317_v59 }
  0x63   : > { %320 = vst [vmem:[%s2664_s5 + $0x1e0] sm:$0xff] %v319_v60 }
  0x64   : > { %322 = vst [vmem:[%s2664_s5 + $0x1e8] sm:$0xff] %v321_v61 }
  0x65   : > { %324 = vst [vmem:[%s2664_s5 + $0x1f0] sm:$0xff] %v323_v62 }
  0x66   : > { %326 = vst [vmem:[%s2664_s5 + $0x1f8] sm:$0xff] %v325_v63 }
  0x67 PF: > { %p1833_p0 = scmp.ge.s32.totalorder %s2530_s24, 1  ;;  %p349_p1 = scmp.lt.s32.totalorder %s2530_s24, 7 }
  0x69   : > { %p350_p2 = pnand %p1833_p0, %p349_p1 }
  0x6a   : > { %s356_s13 = sand.u32 (!%p350_p2), 1, %s2506_s18   ;;  %s3134_s14 = sand.u32 (!%p350_p2), 1, %s2498_s16  }
  0x6b   : > { %353 = sbr.rel (%p350_p2) target bundleno = 627 (0x273), region = 55  ;;  %s1834_s25 = sshll.u32 (!%p350_p2), %s356_s13, 9 }
  0x6c   : > { %s1835_s26 = sshll.u32 (!%p350_p2), %s3134_s14, 8  ;;  %s1836_s30 = sshll.u32 (!%p350_p2), %s2514_s20, 6 }
  0x6d   : > { %s1838_s8 = sshll.u32 (!%p350_p2), %s2518_s21, 5  ;;  %p394_p3 = scmp.lt.s32.totalorder (!%p350_p2), %s1836_s30, 191 }
  0x6e   : > { %p400_p4 = scmp.lt.s32.totalorder (!%p350_p2), %s1838_s8, 63  ;;  %s2809_s13 = scalar_lea.vmem (!%p350_p2), [#allocation3], %s1834_s25 }
  0x6f   : > { %s2811_s14 = scalar_lea.vmem (!%p350_p2), [#allocation4], %s1835_s26  ;;  %p1840_p5 = scmp.ne.s32.totalorder (!%p350_p2), %s2514_s20, 0 }
  0x70   : > { %s3161_s30 = smov (!%p394_p3, %s1836_s30), 191  ;;  %s3163_s8 = smov (!%p400_p4, %s1838_s8), 63 }
  0x71   : > { %s1837_s9 = sshll.u32 %s3161_s30, 2  ;;  %s1839_s0 = sshll.u32 %s3163_s8, 3 }
  0x72   : > { %s2802_s5 = scalar_lea.vmem %s3128_s1, %s1837_s9  ;;  %s2807_s18 = scalar_lea.vmem %s3130_s3, %s1839_s0 }
  0x73   : > { %409 = sbr.rel (%p1840_p5) target bundleno = 153 (0x99), region = 63 }
  0x78   : > { %v2532_v0 = vmov 0.0  }
  0x79   : > { %410 = vst [vmem:[#allocation2 + $0xb0] sm:$0xff] %v2532_v0 }
  0x7a   : > { %411 = vst [vmem:[#allocation2] sm:$0xff] %v2532_v0 }
  0x7b   : > { %412 = vst [vmem:[#allocation2 + $0xd8] sm:$0xff] %v2532_v0 }
  0x7c   : > { %413 = vst [vmem:[#allocation2 + $0x18] sm:$0xff] %v2532_v0 }
  0x7d   : > { %414 = vst [vmem:[#allocation2 + $0x50] sm:$0xff] %v2532_v0 }
  0x7e   : > { %415 = vst [vmem:[#allocation2 + $0x68] sm:$0xff] %v2532_v0 }
  0x7f   : > { %416 = vst [vmem:[#allocation2 + $0x30] sm:$0xff] %v2532_v0 }
  0x80   : > { %417 = vst [vmem:[#allocation2 + $0x48] sm:$0xff] %v2532_v0 }
  0x81   : > { %418 = vst [vmem:[#allocation2 + $0x80] sm:$0xff] %v2532_v0 }
  0x82   : > { %419 = vst [vmem:[#allocation2 + $0x88] sm:$0xff] %v2532_v0 }
  0x83   : > { %420 = vst [vmem:[#allocation2 + $0xe8] sm:$0xff] %v2532_v0 }
  0x84   : > { %421 = vst [vmem:[#allocation2 + $0xb8] sm:$0xff] %v2532_v0 }
  0x85   : > { %422 = vst [vmem:[#allocation2 + $0x60] sm:$0xff] %v2532_v0 }
  0x86   : > { %423 = vst [vmem:[#allocation2 + $0xf0] sm:$0xff] %v2532_v0 }
  0x87   : > { %424 = vst [vmem:[#allocation2 + $0x8] sm:$0xff] %v2532_v0 }
  0x88   : > { %425 = vst [vmem:[#allocation2 + $0x78] sm:$0xff] %v2532_v0 }
  0x89   : > { %426 = vst [vmem:[#allocation2 + $0x38] sm:$0xff] %v2532_v0 }
  0x8a   : > { %427 = vst [vmem:[#allocation2 + $0x58] sm:$0xff] %v2532_v0 }
  0x8b   : > { %428 = vst [vmem:[#allocation2 + $0x40] sm:$0xff] %v2532_v0 }
  0x8c   : > { %429 = vst [vmem:[#allocation2 + $0xc8] sm:$0xff] %v2532_v0 }
  0x8d   : > { %430 = vst [vmem:[#allocation2 + $0xe0] sm:$0xff] %v2532_v0 }
  0x8e   : > { %431 = vst [vmem:[#allocation2 + $0x90] sm:$0xff] %v2532_v0 }
  0x8f   : > { %432 = vst [vmem:[#allocation2 + $0x70] sm:$0xff] %v2532_v0 }
  0x90   : > { %433 = vst [vmem:[#allocation2 + $0xc0] sm:$0xff] %v2532_v0 }
  0x91   : > { %434 = vst [vmem:[#allocation2 + $0xa8] sm:$0xff] %v2532_v0 }
  0x92   : > { %435 = vst [vmem:[#allocation2 + $0xd0] sm:$0xff] %v2532_v0 }
  0x93   : > { %436 = vst [vmem:[#allocation2 + $0x10] sm:$0xff] %v2532_v0 }
  0x94   : > { %437 = vst [vmem:[#allocation2 + $0x28] sm:$0xff] %v2532_v0 }
  0x95   : > { %438 = vst [vmem:[#allocation2 + $0xa0] sm:$0xff] %v2532_v0 }
  0x96   : > { %439 = vst [vmem:[#allocation2 + $0xf8] sm:$0xff] %v2532_v0 }
  0x97   : > { %440 = vst [vmem:[#allocation2 + $0x20] sm:$0xff] %v2532_v0 }
  0x98   : > { %441 = vst [vmem:[#allocation2 + $0x98] sm:$0xff] %v2532_v0 }
  0x99 PF: > { %v2302_v1 = vld [vmem:[%s2802_s5 + $0x38] sm:$0xff]  ;;  %v2301_v5 = vld [vmem:[%s2802_s5 + $0x30] sm:$0xff]  ;;  %v2300_v9 = vld [vmem:[%s2802_s5 + $0x28] sm:$0xff]  ;;  %p2225_p6 = scmp.ne.s32.totalorder %s2514_s20, 2 }
  0x9a   : > { %v2310_v2 = vld [vmem:[%s2802_s5 + $0x78] sm:$0xff]  ;;  %1114 = vmatpush.bf16.msra.mxu0 %v2302_v1  ;;  %v2309_v6 = vld [vmem:[%s2802_s5 + $0x70] sm:$0xff]  ;;  %v2308_v10 = vld [vmem:[%s2802_s5 + $0x68] sm:$0xff] }
  0x9b   : > { %v2318_v3 = vld [vmem:[%s2802_s5 + $0xb8] sm:$0xff]  ;;  %1203 = vmatpush.bf16.msra.mxu1 %v2310_v2  ;;  %v2317_v7 = vld [vmem:[%s2802_s5 + $0xb0] sm:$0xff]  ;;  %v2316_v11 = vld [vmem:[%s2802_s5 + $0xa8] sm:$0xff] }
  0x9c   : > { %v2326_v4 = vld [vmem:[%s2802_s5 + $0xf8] sm:$0xff]  ;;  %1292 = vmatpush.bf16.msra.mxu2 %v2318_v3  ;;  %v2325_v8 = vld [vmem:[%s2802_s5 + $0xf0] sm:$0xff]  ;;  %v2324_v12 = vld [vmem:[%s2802_s5 + $0xe8] sm:$0xff] }
  0x9d   : > { %1381 = vmatpush.bf16.msra.mxu3 %v2326_v4  ;;  %v2299_v13 = vld [vmem:[%s2802_s5 + $0x20] sm:$0xff]  ;;  %v2298_v17 = vld [vmem:[%s2802_s5 + $0x18] sm:$0xff]  ;;  %v2297_v21 = vld [vmem:[%s2802_s5 + $0x10] sm:$0xff] }
  0x9e   : > { %1115 = vmatpush.bf16.msra.mxu0 %v2301_v5  ;;  %v2307_v14 = vld [vmem:[%s2802_s5 + $0x60] sm:$0xff]  ;;  %v2306_v18 = vld [vmem:[%s2802_s5 + $0x58] sm:$0xff]  ;;  %v2305_v22 = vld [vmem:[%s2802_s5 + $0x50] sm:$0xff] }
  0x9f   : > { %1204 = vmatpush.bf16.msra.mxu1 %v2309_v6  ;;  %v2315_v15 = vld [vmem:[%s2802_s5 + $0xa0] sm:$0xff]  ;;  %v2314_v19 = vld [vmem:[%s2802_s5 + $0x98] sm:$0xff]  ;;  %v2313_v23 = vld [vmem:[%s2802_s5 + $0x90] sm:$0xff] }
  0xa0   : > { %1293 = vmatpush.bf16.msra.mxu2 %v2317_v7  ;;  %v2323_v16 = vld [vmem:[%s2802_s5 + $0xe0] sm:$0xff]  ;;  %v2322_v20 = vld [vmem:[%s2802_s5 + $0xd8] sm:$0xff]  ;;  %v2321_v24 = vld [vmem:[%s2802_s5 + $0xd0] sm:$0xff] }
  0xa1   : > { %1382 = vmatpush.bf16.msra.mxu3 %v2325_v8  ;;  %v2296_v25 = vld [vmem:[%s2802_s5 + $0x8] sm:$0xff]  ;;  %v2295_v29 = vld [vmem:[%s2802_s5] sm:$0xff]  ;;  %v2233_v34 = vld [vmem:[%s2809_s13 + $0xc] sm:$0xf0] }
  0xa2   : > { %1116 = vmatpush.bf16.msra.mxu0 %v2300_v9  ;;  %v2304_v26 = vld [vmem:[%s2802_s5 + $0x48] sm:$0xff]  ;;  %v2303_v30 = vld [vmem:[%s2802_s5 + $0x40] sm:$0xff]  ;;  %v1845_v36 = vld [vmem:[%s2809_s13 + $0x10] sm:$0xf0] }
  0xa3   : > { %1205 = vmatpush.bf16.msra.mxu1 %v2308_v10  ;;  %v2312_v27 = vld [vmem:[%s2802_s5 + $0x88] sm:$0xff]  ;;  %v2311_v31 = vld [vmem:[%s2802_s5 + $0x80] sm:$0xff]  ;;  %v2234_v38 = vld [vmem:[%s2809_s13 + $0x14] sm:$0xf0] }
  0xa4   : > { %1294 = vmatpush.bf16.msra.mxu2 %v2316_v11  ;;  %v2320_v28 = vld [vmem:[%s2802_s5 + $0xc8] sm:$0xff]  ;;  %v2319_v32 = vld [vmem:[%s2802_s5 + $0xc0] sm:$0xff]  ;;  %v1853_v40 = vld [vmem:[%s2809_s13 + $0x18] sm:$0xf0] }
  0xa5   : > { %1383 = vmatpush.bf16.msra.mxu3 %v2324_v12  ;;  %v1843_v33 = vld [vmem:[%s2809_s13] sm:$0xf]  ;;  %v2231_v35 = vld [vmem:[%s2809_s13 + $0x4] sm:$0xf]  ;;  %v1851_v37 = vld [vmem:[%s2809_s13 + $0x8] sm:$0xf] }
  0xa6   : > { %1117 = vmatpush.bf16.msra.mxu0 %v2299_v13  ;;  %v2232_v39 = vld [vmem:[%s2809_s13 + $0xc] sm:$0xf]  ;;  %v1844_v41 = vor.u32 %v2233_v34, %v1843_v33  ;;  %v1848_v42 = vor.u32 %v2231_v35, %v1845_v36  ;;  %v1852_v43 = vor.u32 %v2234_v38, %v1851_v37  ;;  %v1859_v45 = vld [vmem:[%s2809_s13 + $0x20] sm:$0xf]  ;;  %v2237_v46 = vld [vmem:[%s2809_s13 + $0x2c] sm:$0xf0] }
  0xa7   : > { %1206 = vmatpush.bf16.msra.mxu1 %v2307_v14  ;;  %v1856_v44 = vor.u32 %v2232_v39, %v1853_v40  ;;  %v2235_v47 = vld [vmem:[%s2809_s13 + $0x24] sm:$0xf]  ;;  %v1861_v48 = vld [vmem:[%s2809_s13 + $0x30] sm:$0xf0]  ;;  %v1867_v49 = vld [vmem:[%s2809_s13 + $0x28] sm:$0xf]  ;;  %v1860_v53 = vor.u32 %v2237_v46, %v1859_v45 }
  0xa8   : > { %1295 = vmatpush.bf16.msra.mxu2 %v2315_v15  ;;  %v2238_v50 = vld [vmem:[%s2809_s13 + $0x34] sm:$0xf0]  ;;  %v2236_v51 = vld [vmem:[%s2809_s13 + $0x2c] sm:$0xf]  ;;  %v1869_v52 = vld [vmem:[%s2809_s13 + $0x38] sm:$0xf0]  ;;  %v1864_v54 = vor.u32 %v2235_v47, %v1861_v48 }
  0xa9   : > { %1384 = vmatpush.bf16.msra.mxu3 %v2323_v16  ;;  %v1868_v55 = vor.u32 %v2238_v50, %v1867_v49  ;;  %v1872_v56 = vor.u32 %v2236_v51, %v1869_v52  ;;  %v1875_v57 = vld [vmem:[%s2809_s13 + $0x40] sm:$0xf]  ;;  %v2241_v58 = vld [vmem:[%s2809_s13 + $0x4c] sm:$0xf0]  ;;  %v2239_v59 = vld [vmem:[%s2809_s13 + $0x44] sm:$0xf] }
  0xaa   : > { %1118 = vmatpush.bf16.msra.mxu0 %v2298_v17  ;;  %v1877_v60 = vld [vmem:[%s2809_s13 + $0x50] sm:$0xf0]  ;;  %v1883_v61 = vld [vmem:[%s2809_s13 + $0x48] sm:$0xf]  ;;  %v2242_v62 = vld [vmem:[%s2809_s13 + $0x54] sm:$0xf0]  ;;  %v1876_v1 = vor.u32 %v2241_v58, %v1875_v57 }
  0xab   : > { %1207 = vmatpush.bf16.msra.mxu1 %v2306_v18  ;;  %v2240_v63 = vld [vmem:[%s2809_s13 + $0x4c] sm:$0xf]  ;;  %v1885_v0 = vld [vmem:[%s2809_s13 + $0x58] sm:$0xf0]  ;;  %v1880_v2 = vor.u32 %v2239_v59, %v1877_v60  ;;  %v1884_v3 = vor.u32 %v2242_v62, %v1883_v61  ;;  %v1891_v5 = vld [vmem:[%s2809_s13 + $0x60] sm:$0xf] }
  0xac   : > { %1296 = vmatpush.bf16.msra.mxu2 %v2314_v19  ;;  %v1888_v4 = vor.u32 %v2240_v63, %v1885_v0  ;;  %v2245_v6 = vld [vmem:[%s2809_s13 + $0x6c] sm:$0xf0]  ;;  %v2243_v7 = vld [vmem:[%s2809_s13 + $0x64] sm:$0xf]  ;;  %v1893_v8 = vld [vmem:[%s2809_s13 + $0x70] sm:$0xf0] }
  0xad   : > { %1385 = vmatpush.bf16.msra.mxu3 %v2322_v20  ;;  %v1899_v9 = vld [vmem:[%s2809_s13 + $0x68] sm:$0xf]  ;;  %v2246_v10 = vld [vmem:[%s2809_s13 + $0x74] sm:$0xf0]  ;;  %v2244_v11 = vld [vmem:[%s2809_s13 + $0x6c] sm:$0xf]  ;;  %v1892_v13 = vor.u32 %v2245_v6, %v1891_v5  ;;  %v1896_v14 = vor.u32 %v2243_v7, %v1893_v8 }
  0xae   : > { %1119 = vmatpush.bf16.msra.mxu0 %v2297_v21  ;;  %v1901_v12 = vld [vmem:[%s2809_s13 + $0x78] sm:$0xf0]  ;;  %v1900_v15 = vor.u32 %v2246_v10, %v1899_v9  ;;  %v1907_v17 = vld [vmem:[%s2809_s13 + $0x80] sm:$0xf]  ;;  %v2249_v18 = vld [vmem:[%s2809_s13 + $0x8c] sm:$0xf0] }
  0xaf   : > { %1208 = vmatpush.bf16.msra.mxu1 %v2305_v22  ;;  %v1904_v16 = vor.u32 %v2244_v11, %v1901_v12  ;;  %v2247_v19 = vld [vmem:[%s2809_s13 + $0x84] sm:$0xf]  ;;  %v1909_v20 = vld [vmem:[%s2809_s13 + $0x90] sm:$0xf0]  ;;  %v1915_v21 = vld [vmem:[%s2809_s13 + $0x88] sm:$0xf] }
  0xb0   : > { %1297 = vmatpush.bf16.msra.mxu2 %v2313_v23  ;;  %v2250_v22 = vld [vmem:[%s2809_s13 + $0x94] sm:$0xf0]  ;;  %v2248_v23 = vld [vmem:[%s2809_s13 + $0x8c] sm:$0xf]  ;;  %v1931_v33 = vld [vmem:[%s2809_s13 + $0xa8] sm:$0xf] }
  0xb1   : > { %1386 = vmatpush.bf16.msra.mxu3 %v2321_v24  ;;  %v1917_v24 = vld [vmem:[%s2809_s13 + $0x98] sm:$0xf0]  ;;  %v2254_v34 = vld [vmem:[%s2809_s13 + $0xb4] sm:$0xf0]  ;;  %v2252_v35 = vld [vmem:[%s2809_s13 + $0xac] sm:$0xf] }
  0xb2   : > { %1120 = vmatpush.bf16.msra.mxu0 %v2296_v25  ;;  %v1908_v25 = vor.u32 %v2249_v18, %v1907_v17  ;;  %v1933_v36 = vld [vmem:[%s2809_s13 + $0xb8] sm:$0xf0]  ;;  %v1932_v39 = vor.u32 %v2254_v34, %v1931_v33  ;;  %v1947_v45 = vld [vmem:[%s2809_s13 + $0xc8] sm:$0xf]  ;;  %v2258_v46 = vld [vmem:[%s2809_s13 + $0xd4] sm:$0xf0] }
  0xb3   : > { %1209 = vmatpush.bf16.msra.mxu1 %v2304_v26  ;;  %v1912_v26 = vor.u32 %v2247_v19, %v1909_v20  ;;  %v1936_v40 = vor.u32 %v2252_v35, %v1933_v36  ;;  %v2256_v47 = vld [vmem:[%s2809_s13 + $0xcc] sm:$0xf]  ;;  %v1949_v48 = vld [vmem:[%s2809_s13 + $0xd8] sm:$0xf0]  ;;  %v1948_v51 = vor.u32 %v2258_v46, %v1947_v45  ;;  %v1963_v57 = vld [vmem:[%s2809_s13 + $0xe8] sm:$0xf] }
  0xb4   : > { %1298 = vmatpush.bf16.msra.mxu2 %v2312_v27  ;;  %v1916_v27 = vor.u32 %v2250_v22, %v1915_v21  ;;  %v1952_v52 = vor.u32 %v2256_v47, %v1949_v48  ;;  %v2262_v58 = vld [vmem:[%s2809_s13 + $0xf4] sm:$0xf0]  ;;  %v2260_v59 = vld [vmem:[%s2809_s13 + $0xec] sm:$0xf]  ;;  %v1965_v60 = vld [vmem:[%s2809_s13 + $0xf8] sm:$0xf0] }
  0xb5   : > { %1387 = vmatpush.bf16.msra.mxu3 %v2320_v28  ;;  %v1920_v28 = vor.u32 %v2248_v23, %v1917_v24  ;;  %v1964_v63 = vor.u32 %v2262_v58, %v1963_v57  ;;  %v1968_v0 = vor.u32 %v2260_v59, %v1965_v60  ;;  %v1979_v5 = vld [vmem:[%s2809_s13 + $0x108] sm:$0xf]  ;;  %v2266_v6 = vld [vmem:[%s2809_s13 + $0x114] sm:$0xf0]  ;;  %v2264_v7 = vld [vmem:[%s2809_s13 + $0x10c] sm:$0xf] }
  0xb6   : > { %1121 = vmatpush.bf16.msra.mxu0 %v2295_v29  ;;  %v1923_v29 = vld [vmem:[%s2809_s13 + $0xa0] sm:$0xf]  ;;  %v1981_v8 = vld [vmem:[%s2809_s13 + $0x118] sm:$0xf0]  ;;  %v442_v21 = vld [vmem:[#allocation2 + $0xb0] sm:$0xff] }
  0xb7   : > { %1210 = vmatpush.bf16.msra.mxu1 %v2303_v30  ;;  %v2253_v30 = vld [vmem:[%s2809_s13 + $0xac] sm:$0xf0]  ;;  %v1987_v23 = vld [vmem:[%s2809_s13 + $0x120] sm:$0xf]  ;;  %v2005_v57 = vld [vmem:[%s2809_s13 + $0x150] sm:$0xf0] }
  0xb8   : > { %1299 = vmatpush.bf16.msra.mxu2 %v2311_v31  ;;  %v2251_v31 = vld [vmem:[%s2809_s13 + $0xa4] sm:$0xf]  ;;  %v1924_v37 = vor.u32 %v2253_v30, %v1923_v29  ;;  %v2269_v24 = vld [vmem:[%s2809_s13 + $0x12c] sm:$0xf0]  ;;  %v2270_v29 = vld [vmem:[%s2809_s13 + $0x134] sm:$0xf0] }
  0xb9   : > { %1388 = vmatpush.bf16.msra.mxu3 %v2319_v32  ;;  %1122 = vmatmul.bf16.vlgmr.msra.gmra.mxu0 %v1844_v41  ;;  %v1925_v32 = vld [vmem:[%s2809_s13 + $0xb0] sm:$0xf0]  ;;  %v1939_v41 = vld [vmem:[%s2809_s13 + $0xc0] sm:$0xf]  ;;  %v2268_v30 = vld [vmem:[%s2809_s13 + $0x12c] sm:$0xf]  ;;  %v1988_v35 = vor.u32 %v2269_v24, %v1987_v23 }
  0xba   : > { %1211 = vmatmul.bf16.vlgmr.msra.gmra.mxu1 %v1848_v42  ;;  %v1928_v38 = vor.u32 %v2251_v31, %v1925_v32  ;;  %v2257_v42 = vld [vmem:[%s2809_s13 + $0xcc] sm:$0xf0]  ;;  %v1997_v31 = vld [vmem:[%s2809_s13 + $0x138] sm:$0xf0]  ;;  %v2011_v58 = vld [vmem:[%s2809_s13 + $0x148] sm:$0xf] }
  0xbb   : > { %1300 = vmatmul.bf16.vlgmr.msra.gmra.mxu2 %v1852_v43  ;;  %v2255_v43 = vld [vmem:[%s2809_s13 + $0xc4] sm:$0xf]  ;;  %v1940_v49 = vor.u32 %v2257_v42, %v1939_v41  ;;  %v2000_v41 = vor.u32 %v2268_v30, %v1997_v31  ;;  %v2274_v59 = vld [vmem:[%s2809_s13 + $0x154] sm:$0xf0]  ;;  %v2272_v60 = vld [vmem:[%s2809_s13 + $0x14c] sm:$0xf] }
  0xbc   : > { %1389 = vmatmul.bf16.vlgmr.msra.gmra.mxu3 %v1856_v44  ;;  %v1941_v44 = vld [vmem:[%s2809_s13 + $0xd0] sm:$0xf0]  ;;  %v443_v42 = vld [vmem:[#allocation2] sm:$0xff]  ;;  %v2027_v24 = vld [vmem:[%s2809_s13 + $0x168] sm:$0xf] }
  0xbd   : > { %v1944_v50 = vor.u32 %v2255_v43, %v1941_v44  ;;  %v2021_v23 = vld [vmem:[%s2809_s13 + $0x170] sm:$0xf0] }
  0xc9   : > { %1127 = vmatmul.bf16.gmra.mxu0 %v1860_v53  ;;  %v1955_v53 = vld [vmem:[%s2809_s13 + $0xe0] sm:$0xf] }
  0xca   : > { %1216 = vmatmul.bf16.gmra.mxu1 %v1864_v54  ;;  %v2261_v54 = vld [vmem:[%s2809_s13 + $0xec] sm:$0xf0] }
  0xcb   : > { %1305 = vmatmul.bf16.gmra.mxu2 %v1868_v55  ;;  %v2259_v55 = vld [vmem:[%s2809_s13 + $0xe4] sm:$0xf]  ;;  %v1956_v61 = vor.u32 %v2261_v54, %v1955_v53  ;;  %v2003_v53 = vld [vmem:[%s2809_s13 + $0x140] sm:$0xf]  ;;  %v2273_v54 = vld [vmem:[%s2809_s13 + $0x14c] sm:$0xf0] }
  0xcc   : > { %1394 = vmatmul.bf16.gmra.mxu3 %v1872_v56  ;;  %v1957_v56 = vld [vmem:[%s2809_s13 + $0xf0] sm:$0xf0] }
  0xcd   : > { %v1960_v62 = vor.u32 %v2259_v55, %v1957_v56  ;;  %v2271_v56 = vld [vmem:[%s2809_s13 + $0x144] sm:$0xf] }
  0xd9   : > { %1132 = vmatmul.bf16.gmra.mxu0 %v1876_v1  ;;  %v1971_v1 = vld [vmem:[%s2809_s13 + $0x100] sm:$0xf] }
  0xda   : > { %1221 = vmatmul.bf16.gmra.mxu1 %v1880_v2  ;;  %v2265_v2 = vld [vmem:[%s2809_s13 + $0x10c] sm:$0xf0] }
  0xdb   : > { %1310 = vmatmul.bf16.gmra.mxu2 %v1884_v3  ;;  %v2263_v3 = vld [vmem:[%s2809_s13 + $0x104] sm:$0xf]  ;;  %v1972_v9 = vor.u32 %v2265_v2, %v1971_v1  ;;  %v2004_v1 = vor.u32 %v2273_v54, %v2003_v53  ;;  %v2008_v2 = vor.u32 %v2271_v56, %v2005_v57  ;;  %v2037_v53 = vld [vmem:[%s2809_s13 + $0x190] sm:$0xf0]  ;;  %v2043_v54 = vld [vmem:[%s2809_s13 + $0x188] sm:$0xf] }
  0xdc   : > { %1399 = vmatmul.bf16.gmra.mxu3 %v1888_v4  ;;  %v1973_v4 = vld [vmem:[%s2809_s13 + $0x110] sm:$0xf0]  ;;  %v2280_v56 = vld [vmem:[%s2809_s13 + $0x18c] sm:$0xf]  ;;  %v2045_v57 = vld [vmem:[%s2809_s13 + $0x198] sm:$0xf0] }
  0xdd   : > { %v1976_v10 = vor.u32 %v2263_v3, %v1973_v4 }
  0xe9   : > { %1137 = vmatmul.bf16.gmra.mxu0 %v1892_v13  ;;  %v1980_v13 = vor.u32 %v2266_v6, %v1979_v5  ;;  %v2012_v6 = vor.u32 %v2274_v59, %v2011_v58 }
  0xea   : > { %1226 = vmatmul.bf16.gmra.mxu1 %v1896_v14  ;;  %v1984_v14 = vor.u32 %v2264_v7, %v1981_v8  ;;  %v445_v8 = vld [vmem:[#allocation2 + $0x18] sm:$0xff] }
  0xeb   : > { %1315 = vmatmul.bf16.gmra.mxu2 %v1900_v15 }
  0xec   : > { %1404 = vmatmul.bf16.gmra.mxu3 %v1904_v16 }
  0xf9   : > { %1142 = vmatmul.bf16.gmra.mxu0 %v1908_v25 }
  0xfa   : > { %1231 = vmatmul.bf16.gmra.mxu1 %v1912_v26  ;;  %v2267_v26 = vld [vmem:[%s2809_s13 + $0x124] sm:$0xf] }
  0xfb   : > { %1320 = vmatmul.bf16.gmra.mxu2 %v1916_v27  ;;  %v1989_v27 = vld [vmem:[%s2809_s13 + $0x130] sm:$0xf0] }
  0xfc   : > { %1409 = vmatmul.bf16.gmra.mxu3 %v1920_v28  ;;  %v1995_v28 = vld [vmem:[%s2809_s13 + $0x128] sm:$0xf]  ;;  %v1992_v36 = vor.u32 %v2267_v26, %v1989_v27  ;;  %v2276_v26 = vld [vmem:[%s2809_s13 + $0x16c] sm:$0xf]  ;;  %v2029_v27 = vld [vmem:[%s2809_s13 + $0x178] sm:$0xf0] }
 0x109   : > { %1147 = vmatmul.bf16.gmra.mxu0 %v1924_v37 }
 0x10a   : > { %1236 = vmatmul.bf16.gmra.mxu1 %v1928_v38 }
 0x10b   : > { %1325 = vmatmul.bf16.gmra.mxu2 %v1932_v39 }
 0x10c   : > { %1414 = vmatmul.bf16.gmra.mxu3 %v1936_v40  ;;  %v1996_v40 = vor.u32 %v2270_v29, %v1995_v28 }
 0x119   : > { %1152 = vmatmul.bf16.gmra.mxu0 %v1940_v49 }
 0x11a   : > { %1241 = vmatmul.bf16.gmra.mxu1 %v1944_v50 }
 0x11b   : > { %1330 = vmatmul.bf16.gmra.mxu2 %v1948_v51  ;;  %v444_v51 = vld [vmem:[#allocation2 + $0xd8] sm:$0xff] }
 0x11c   : > { %1419 = vmatmul.bf16.gmra.mxu3 %v1952_v52 }
 0x129   : > { %1157 = vmatmul.bf16.gmra.mxu0 %v1956_v61  ;;  %v2013_v61 = vld [vmem:[%s2809_s13 + $0x158] sm:$0xf0] }
 0x12a   : > { %1246 = vmatmul.bf16.gmra.mxu1 %v1960_v62  ;;  %v2016_v7 = vor.u32 %v2272_v60, %v2013_v61 }
 0x12b   : > { %1335 = vmatmul.bf16.gmra.mxu2 %v1964_v63 }
 0x12c   : > { %1424 = vmatmul.bf16.gmra.mxu3 %v1968_v0 }
 0x136   : > { %v1123_v11 = vpop.f32.mrf.mxu0 }
 0x137   : > { %v1212_v12 = vpop.f32.mrf.mxu1 }
 0x138   : > { %v1213_v15 = vadd.f32 %v1212_v12, %v1123_v11 }
 0x139   : > { %1162 = vmatmul.bf16.gmra.mxu0 %v1972_v9 }
 0x13a   : > { %1251 = vmatmul.bf16.gmra.mxu1 %v1976_v10 }
 0x13b   : > { %1340 = vmatmul.bf16.gmra.mxu2 %v1980_v13 }
 0x13c   : > { %1429 = vmatmul.bf16.gmra.mxu3 %v1984_v14 }
 0x13e   : > { %v1301_v16 = vpop.f32.mrf.mxu2  ;;  %v1125_v19 = vpop.f32.mrf.mxu0 }
 0x13f   : > { %v1390_v17 = vpop.f32.mrf.mxu3  ;;  %v1302_v18 = vadd.f32 %v1301_v16, %v1213_v15  ;;  %v1214_v20 = vpop.f32.mrf.mxu1 }
 0x140   : > { %v1215_v32 = vadd.f32 %v1214_v20, %v1125_v19  ;;  %v2019_v19 = vld [vmem:[%s2809_s13 + $0x160] sm:$0xf]  ;;  %v2277_v20 = vld [vmem:[%s2809_s13 + $0x16c] sm:$0xf0] }
 0x141   : > { %v1391_v22 = vadd.f32 %v1390_v17, %v1302_v18  ;;  %v446_v17 = vld [vmem:[#allocation2 + $0x50] sm:$0xff]  ;;  %v2020_v31 = vor.u32 %v2277_v20, %v2019_v19  ;;  %v2059_v20 = vld [vmem:[%s2809_s13 + $0x1a8] sm:$0xf] }
 0x142   : > { %v2053_v19 = vld [vmem:[%s2809_s13 + $0x1b0] sm:$0xf0] }
 0x143   : > { %v1470_v25 = vadd.f32 %v1391_v22, %v442_v21  ;;  %v2275_v22 = vld [vmem:[%s2809_s13 + $0x164] sm:$0xf] }
 0x145   : > { %1502 = vst [vmem:[#allocation2 + $0xb0] sm:$0xff] %v1470_v25  ;;  %v2278_v25 = vld [vmem:[%s2809_s13 + $0x174] sm:$0xf0] }
 0x146   : > { %v1303_v33 = vpop.f32.mrf.mxu2  ;;  %v1128_v38 = vpop.f32.mrf.mxu0 }
 0x147   : > { %v1392_v34 = vpop.f32.mrf.mxu3  ;;  %v1304_v37 = vadd.f32 %v1303_v33, %v1215_v32  ;;  %v1217_v39 = vpop.f32.mrf.mxu1  ;;  %v2024_v32 = vor.u32 %v2275_v22, %v2021_v23  ;;  %v2284_v22 = vld [vmem:[%s2809_s13 + $0x1ac] sm:$0xf]  ;;  %v2061_v23 = vld [vmem:[%s2809_s13 + $0x1b8] sm:$0xf0] }
 0x148   : > { %v1218_v45 = vadd.f32 %v1217_v39, %v1128_v38  ;;  %v447_v38 = vld [vmem:[#allocation2 + $0x68] sm:$0xff] }
 0x149   : > { %v1393_v43 = vadd.f32 %v1392_v34, %v1304_v37  ;;  %1167 = vmatmul.bf16.gmra.mxu0 %v1988_v35  ;;  %v2032_v37 = vor.u32 %v2276_v26, %v2029_v27 }
 0x14a   : > { %1256 = vmatmul.bf16.gmra.mxu1 %v1992_v36  ;;  %v2028_v36 = vor.u32 %v2278_v25, %v2027_v24 }
 0x14b   : > { %v1471_v44 = vadd.f32 %v1393_v43, %v443_v42  ;;  %1345 = vmatmul.bf16.gmra.mxu2 %v1996_v40 }
 0x14c   : > { %1434 = vmatmul.bf16.gmra.mxu3 %v2000_v41 }
 0x14d   : > { %1503 = vst [vmem:[#allocation2] sm:$0xff] %v1471_v44 }
 0x14e   : > { %v1306_v46 = vpop.f32.mrf.mxu2  ;;  %v1130_v49 = vpop.f32.mrf.mxu0 }
 0x14f   : > { %v1395_v47 = vpop.f32.mrf.mxu3  ;;  %v1307_v48 = vadd.f32 %v1306_v46, %v1218_v45  ;;  %v1219_v50 = vpop.f32.mrf.mxu1 }
 0x150   : > { %v1220_v62 = vadd.f32 %v1219_v50, %v1130_v49  ;;  %v2035_v49 = vld [vmem:[%s2809_s13 + $0x180] sm:$0xf]  ;;  %v2281_v50 = vld [vmem:[%s2809_s13 + $0x18c] sm:$0xf0] }
 0x151   : > { %v1396_v52 = vadd.f32 %v1395_v47, %v1307_v48  ;;  %v448_v47 = vld [vmem:[#allocation2 + $0x30] sm:$0xff]  ;;  %v2036_v61 = vor.u32 %v2281_v50, %v2035_v49  ;;  %v2075_v50 = vld [vmem:[%s2809_s13 + $0x1c8] sm:$0xf] }
 0x152   : > { %v2069_v49 = vld [vmem:[%s2809_s13 + $0x1d0] sm:$0xf0] }
 0x153   : > { %v1472_v55 = vadd.f32 %v1396_v52, %v444_v51  ;;  %v2279_v52 = vld [vmem:[%s2809_s13 + $0x184] sm:$0xf] }
 0x155   : > { %1504 = vst [vmem:[#allocation2 + $0xd8] sm:$0xff] %v1472_v55  ;;  %v2282_v55 = vld [vmem:[%s2809_s13 + $0x194] sm:$0xf0] }
 0x156   : > { %v1308_v63 = vpop.f32.mrf.mxu2  ;;  %v1133_v4 = vpop.f32.mrf.mxu0 }
 0x157   : > { %v1397_v0 = vpop.f32.mrf.mxu3  ;;  %v1309_v3 = vadd.f32 %v1308_v63, %v1220_v62  ;;  %v1222_v5 = vpop.f32.mrf.mxu1  ;;  %v2040_v62 = vor.u32 %v2279_v52, %v2037_v53  ;;  %v2288_v52 = vld [vmem:[%s2809_s13 + $0x1cc] sm:$0xf]  ;;  %v2077_v53 = vld [vmem:[%s2809_s13 + $0x1d8] sm:$0xf0] }
 0x158   : > { %v1223_v11 = vadd.f32 %v1222_v5, %v1133_v4  ;;  %v449_v4 = vld [vmem:[#allocation2 + $0x48] sm:$0xff] }
 0x159   : > { %v1398_v9 = vadd.f32 %v1397_v0, %v1309_v3  ;;  %1172 = vmatmul.bf16.gmra.mxu0 %v2004_v1  ;;  %v2048_v3 = vor.u32 %v2280_v56, %v2045_v57 }
 0x15a   : > { %1261 = vmatmul.bf16.gmra.mxu1 %v2008_v2  ;;  %v2044_v2 = vor.u32 %v2282_v55, %v2043_v54 }
 0x15b   : > { %v1473_v10 = vadd.f32 %v1398_v9, %v445_v8  ;;  %1350 = vmatmul.bf16.gmra.mxu2 %v2012_v6 }
 0x15c   : > { %1439 = vmatmul.bf16.gmra.mxu3 %v2016_v7 }
 0x15d   : > { %1505 = vst [vmem:[#allocation2 + $0x18] sm:$0xff] %v1473_v10 }
 0x15e   : > { %v1311_v12 = vpop.f32.mrf.mxu2  ;;  %v1135_v15 = vpop.f32.mrf.mxu0 }
 0x15f   : > { %v1400_v13 = vpop.f32.mrf.mxu3  ;;  %v1312_v14 = vadd.f32 %v1311_v12, %v1223_v11  ;;  %v1224_v16 = vpop.f32.mrf.mxu1 }
 0x160   : > { %v1225_v28 = vadd.f32 %v1224_v16, %v1135_v15  ;;  %v2051_v15 = vld [vmem:[%s2809_s13 + $0x1a0] sm:$0xf]  ;;  %v2285_v16 = vld [vmem:[%s2809_s13 + $0x1ac] sm:$0xf0] }
 0x161   : > { %v1401_v18 = vadd.f32 %v1400_v13, %v1312_v14  ;;  %v450_v13 = vld [vmem:[#allocation2 + $0x80] sm:$0xff]  ;;  %v2052_v27 = vor.u32 %v2285_v16, %v2051_v15  ;;  %v2085_v15 = vld [vmem:[%s2809_s13 + $0x1f0] sm:$0xf0]  ;;  %v2091_v16 = vld [vmem:[%s2809_s13 + $0x1e8] sm:$0xf] }
 0x163   : > { %v1474_v21 = vadd.f32 %v1401_v18, %v446_v17  ;;  %v2283_v18 = vld [vmem:[%s2809_s13 + $0x1a4] sm:$0xf] }
 0x165   : > { %1506 = vst [vmem:[#allocation2 + $0x50] sm:$0xff] %v1474_v21  ;;  %v2286_v21 = vld [vmem:[%s2809_s13 + $0x1b4] sm:$0xf0] }
 0x166   : > { %v1313_v29 = vpop.f32.mrf.mxu2  ;;  %v1138_v34 = vpop.f32.mrf.mxu0 }
 0x167   : > { %v1402_v30 = vpop.f32.mrf.mxu3  ;;  %v1314_v33 = vadd.f32 %v1313_v29, %v1225_v28  ;;  %v1227_v35 = vpop.f32.mrf.mxu1  ;;  %v2056_v28 = vor.u32 %v2283_v18, %v2053_v19  ;;  %v2292_v18 = vld [vmem:[%s2809_s13 + $0x1ec] sm:$0xf]  ;;  %v2093_v19 = vld [vmem:[%s2809_s13 + $0x1f8] sm:$0xf0] }
 0x168   : > { %v1228_v41 = vadd.f32 %v1227_v35, %v1138_v34  ;;  %v451_v34 = vld [vmem:[#allocation2 + $0x88] sm:$0xff] }
 0x169   : > { %v1403_v39 = vadd.f32 %v1402_v30, %v1314_v33  ;;  %1177 = vmatmul.bf16.gmra.mxu0 %v2020_v31  ;;  %v2064_v33 = vor.u32 %v2284_v22, %v2061_v23 }
 0x16a   : > { %1266 = vmatmul.bf16.gmra.mxu1 %v2024_v32  ;;  %v2060_v32 = vor.u32 %v2286_v21, %v2059_v20 }
 0x16b   : > { %v1475_v40 = vadd.f32 %v1403_v39, %v447_v38  ;;  %1355 = vmatmul.bf16.gmra.mxu2 %v2028_v36 }
 0x16c   : > { %1444 = vmatmul.bf16.gmra.mxu3 %v2032_v37 }
 0x16d   : > { %1507 = vst [vmem:[#allocation2 + $0x68] sm:$0xff] %v1475_v40 }
 0x16e   : > { %v1316_v42 = vpop.f32.mrf.mxu2  ;;  %v1140_v45 = vpop.f32.mrf.mxu0 }
 0x16f   : > { %v1405_v43 = vpop.f32.mrf.mxu3  ;;  %v1317_v44 = vadd.f32 %v1316_v42, %v1228_v41  ;;  %v1229_v46 = vpop.f32.mrf.mxu1 }
 0x170   : > { %v1230_v58 = vadd.f32 %v1229_v46, %v1140_v45  ;;  %v2067_v45 = vld [vmem:[%s2809_s13 + $0x1c0] sm:$0xf]  ;;  %v2289_v46 = vld [vmem:[%s2809_s13 + $0x1cc] sm:$0xf0] }
 0x171   : > { %v1406_v48 = vadd.f32 %v1405_v43, %v1317_v44  ;;  %v452_v43 = vld [vmem:[#allocation2 + $0xe8] sm:$0xff]  ;;  %v2068_v57 = vor.u32 %v2289_v46, %v2067_v45 }
 0x173   : > { %v1476_v51 = vadd.f32 %v1406_v48, %v448_v47  ;;  %v2287_v48 = vld [vmem:[%s2809_s13 + $0x1c4] sm:$0xf] }
 0x175   : > { %1508 = vst [vmem:[#allocation2 + $0x30] sm:$0xff] %v1476_v51  ;;  %v2290_v51 = vld [vmem:[%s2809_s13 + $0x1d4] sm:$0xf0] }
 0x176   : > { %v1318_v59 = vpop.f32.mrf.mxu2  ;;  %v1143_v0 = vpop.f32.mrf.mxu0 }
 0x177   : > { %v1407_v60 = vpop.f32.mrf.mxu3  ;;  %v1319_v63 = vadd.f32 %v1318_v59, %v1230_v58  ;;  %v1232_v1 = vpop.f32.mrf.mxu1  ;;  %v2072_v58 = vor.u32 %v2287_v48, %v2069_v49  ;;  %v457_v48 = vld [vmem:[#allocation2 + $0x78] sm:$0xff] }
 0x178   : > { %v1233_v7 = vadd.f32 %v1232_v1, %v1143_v0  ;;  %v453_v0 = vld [vmem:[#allocation2 + $0xb8] sm:$0xff] }
 0x179   : > { %v1408_v5 = vadd.f32 %v1407_v60, %v1319_v63  ;;  %1182 = vmatmul.bf16.gmra.mxu0 %v2036_v61  ;;  %v2080_v63 = vor.u32 %v2288_v52, %v2077_v53 }
 0x17a   : > { %1271 = vmatmul.bf16.gmra.mxu1 %v2040_v62  ;;  %v2076_v62 = vor.u32 %v2290_v51, %v2075_v50 }
 0x17b   : > { %v1477_v6 = vadd.f32 %v1408_v5, %v449_v4  ;;  %1360 = vmatmul.bf16.gmra.mxu2 %v2044_v2 }
 0x17c   : > { %1449 = vmatmul.bf16.gmra.mxu3 %v2048_v3 }
 0x17d   : > { %1509 = vst [vmem:[#allocation2 + $0x48] sm:$0xff] %v1477_v6 }
 0x17e   : > { %v1321_v8 = vpop.f32.mrf.mxu2  ;;  %v1145_v11 = vpop.f32.mrf.mxu0 }
 0x17f   : > { %v1410_v9 = vpop.f32.mrf.mxu3  ;;  %v1322_v10 = vadd.f32 %v1321_v8, %v1233_v7  ;;  %v1234_v12 = vpop.f32.mrf.mxu1 }
 0x180   : > { %v1235_v24 = vadd.f32 %v1234_v12, %v1145_v11  ;;  %v2083_v11 = vld [vmem:[%s2809_s13 + $0x1e0] sm:$0xf]  ;;  %v2293_v12 = vld [vmem:[%s2809_s13 + $0x1ec] sm:$0xf0] }
 0x181   : > { %v1411_v14 = vadd.f32 %v1410_v9, %v1322_v10  ;;  %v454_v9 = vld [vmem:[#allocation2 + $0x60] sm:$0xff]  ;;  %v2084_v23 = vor.u32 %v2293_v12, %v2083_v11 }
 0x182   : > { %v460_v11 = vld [vmem:[#allocation2 + $0x40] sm:$0xff] }
 0x183   : > { %v1478_v17 = vadd.f32 %v1411_v14, %v450_v13  ;;  %v2291_v14 = vld [vmem:[%s2809_s13 + $0x1e4] sm:$0xf] }
 0x185   : > { %1510 = vst [vmem:[#allocation2 + $0x80] sm:$0xff] %v1478_v17  ;;  %v2294_v17 = vld [vmem:[%s2809_s13 + $0x1f4] sm:$0xf0] }
 0x186   : > { %v1323_v25 = vpop.f32.mrf.mxu2  ;;  %v1148_v30 = vpop.f32.mrf.mxu0 }
 0x187   : > { %v1412_v26 = vpop.f32.mrf.mxu3  ;;  %v1324_v29 = vadd.f32 %v1323_v25, %v1235_v24  ;;  %v1237_v31 = vpop.f32.mrf.mxu1  ;;  %v2088_v24 = vor.u32 %v2291_v14, %v2085_v15 }
 0x188   : > { %v1238_v37 = vadd.f32 %v1237_v31, %v1148_v30  ;;  %v455_v30 = vld [vmem:[#allocation2 + $0xf0] sm:$0xff] }
 0x189   : > { %v1413_v35 = vadd.f32 %v1412_v26, %v1324_v29  ;;  %1187 = vmatmul.bf16.gmra.mxu0 %v2052_v27  ;;  %v2096_v29 = vor.u32 %v2292_v18, %v2093_v19 }
 0x18a   : > { %1276 = vmatmul.bf16.gmra.mxu1 %v2056_v28  ;;  %v2092_v28 = vor.u32 %v2294_v17, %v2091_v16 }
 0x18b   : > { %v1479_v36 = vadd.f32 %v1413_v35, %v451_v34  ;;  %1365 = vmatmul.bf16.gmra.mxu2 %v2060_v32 }
 0x18c   : > { %1454 = vmatmul.bf16.gmra.mxu3 %v2064_v33 }
 0x18d   : > { %1511 = vst [vmem:[#allocation2 + $0x88] sm:$0xff] %v1479_v36 }
 0x18e   : > { %v1326_v38 = vpop.f32.mrf.mxu2  ;;  %v1150_v41 = vpop.f32.mrf.mxu0 }
 0x18f   : > { %v1415_v39 = vpop.f32.mrf.mxu3  ;;  %v1327_v40 = vadd.f32 %v1326_v38, %v1238_v37  ;;  %v1239_v42 = vpop.f32.mrf.mxu1 }
 0x190   : > { %v1240_v54 = vadd.f32 %v1239_v42, %v1150_v41 }
 0x191   : > { %v1416_v44 = vadd.f32 %v1415_v39, %v1327_v40  ;;  %v456_v39 = vld [vmem:[#allocation2 + $0x8] sm:$0xff] }
 0x193   : > { %v1480_v47 = vadd.f32 %v1416_v44, %v452_v43 }
 0x195   : > { %1512 = vst [vmem:[#allocation2 + $0xe8] sm:$0xff] %v1480_v47 }
 0x196   : > { %v1328_v55 = vpop.f32.mrf.mxu2  ;;  %v1153_v60 = vpop.f32.mrf.mxu0 }
 0x197   : > { %v1417_v56 = vpop.f32.mrf.mxu3  ;;  %v1329_v59 = vadd.f32 %v1328_v55, %v1240_v54  ;;  %v1242_v61 = vpop.f32.mrf.mxu1 }
 0x198   : > { %v1243_v3 = vadd.f32 %v1242_v61, %v1153_v60 }
 0x199   : > { %v1418_v1 = vadd.f32 %v1417_v56, %v1329_v59  ;;  %1192 = vmatmul.bf16.gmra.mxu0 %v2068_v57  ;;  %v458_v57 = vld [vmem:[#allocation2 + $0x38] sm:$0xff] }
 0x19a   : > { %1281 = vmatmul.bf16.gmra.mxu1 %v2072_v58 }
 0x19b   : > { %v1481_v2 = vadd.f32 %v1418_v1, %v453_v0  ;;  %1370 = vmatmul.bf16.gmra.mxu2 %v2076_v62 }
 0x19c   : > { %1459 = vmatmul.bf16.gmra.mxu3 %v2080_v63 }
 0x19d   : > { %1513 = vst [vmem:[#allocation2 + $0xb8] sm:$0xff] %v1481_v2  ;;  %v459_v2 = vld [vmem:[#allocation2 + $0x58] sm:$0xff] }
 0x19e   : > { %v1331_v4 = vpop.f32.mrf.mxu2  ;;  %v1155_v7 = vpop.f32.mrf.mxu0 }
 0x19f   : > { %v1420_v5 = vpop.f32.mrf.mxu3  ;;  %v1332_v6 = vadd.f32 %v1331_v4, %v1243_v3  ;;  %v1244_v8 = vpop.f32.mrf.mxu1 }
 0x1a0   : > { %v1245_v20 = vadd.f32 %v1244_v8, %v1155_v7 }
 0x1a1   : > { %v1421_v10 = vadd.f32 %v1420_v5, %v1332_v6 }
 0x1a3   : > { %v1482_v13 = vadd.f32 %v1421_v10, %v454_v9 }
 0x1a5   : > { %1514 = vst [vmem:[#allocation2 + $0x60] sm:$0xff] %v1482_v13 }
 0x1a6   : > { %v1333_v21 = vpop.f32.mrf.mxu2  ;;  %v1158_v26 = vpop.f32.mrf.mxu0 }
 0x1a7   : > { %v1422_v22 = vpop.f32.mrf.mxu3  ;;  %v1334_v25 = vadd.f32 %v1333_v21, %v1245_v20  ;;  %v1247_v27 = vpop.f32.mrf.mxu1  ;;  %v461_v20 = vld [vmem:[#allocation2 + $0xc8] sm:$0xff] }
 0x1a8   : > { %v1248_v33 = vadd.f32 %v1247_v27, %v1158_v26 }
 0x1a9   : > { %v1423_v31 = vadd.f32 %v1422_v22, %v1334_v25  ;;  %1197 = vmatmul.bf16.gmra.mxu0 %v2084_v23 }
 0x1aa   : > { %1286 = vmatmul.bf16.gmra.mxu1 %v2088_v24 }
 0x1ab   : > { %v1483_v32 = vadd.f32 %v1423_v31, %v455_v30  ;;  %1375 = vmatmul.bf16.gmra.mxu2 %v2092_v28 }
 0x1ac   : > { %1464 = vmatmul.bf16.gmra.mxu3 %v2096_v29  ;;  %v462_v29 = vld [vmem:[#allocation2 + $0xe0] sm:$0xff] }
 0x1ad   : > { %1515 = vst [vmem:[#allocation2 + $0xf0] sm:$0xff] %v1483_v32 }
 0x1ae   : > { %v1336_v34 = vpop.f32.mrf.mxu2  ;;  %v1160_v37 = vpop.f32.mrf.mxu0 }
 0x1af   : > { %v1425_v35 = vpop.f32.mrf.mxu3  ;;  %v1337_v36 = vadd.f32 %v1336_v34, %v1248_v33  ;;  %v1249_v38 = vpop.f32.mrf.mxu1 }
 0x1b0   : > { %v1250_v42 = vadd.f32 %v1249_v38, %v1160_v37  ;;  %v463_v38 = vld [vmem:[#allocation2 + $0x90] sm:$0xff] }
 0x1b1   : > { %v1426_v40 = vadd.f32 %v1425_v35, %v1337_v36 }
 0x1b3   : > { %v1484_v41 = vadd.f32 %v1426_v40, %v456_v39 }
 0x1b5   : > { %1516 = vst [vmem:[#allocation2 + $0x8] sm:$0xff] %v1484_v41 }
 0x1b6   : > { %v1338_v43 = vpop.f32.mrf.mxu2  ;;  %v1163_v46 = vpop.f32.mrf.mxu0 }
 0x1b7   : > { %v1427_v44 = vpop.f32.mrf.mxu3  ;;  %v1339_v45 = vadd.f32 %v1338_v43, %v1250_v42  ;;  %v1252_v47 = vpop.f32.mrf.mxu1 }
 0x1b8   : > { %v1253_v51 = vadd.f32 %v1252_v47, %v1163_v46  ;;  %v464_v47 = vld [vmem:[#allocation2 + $0x70] sm:$0xff] }
 0x1b9   : > { %v1428_v49 = vadd.f32 %v1427_v44, %v1339_v45 }
 0x1bb   : > { %v1485_v50 = vadd.f32 %v1428_v49, %v457_v48 }
 0x1bd   : > { %1517 = vst [vmem:[#allocation2 + $0x78] sm:$0xff] %v1485_v50 }
 0x1be   : > { %v1341_v52 = vpop.f32.mrf.mxu2  ;;  %v1165_v55 = vpop.f32.mrf.mxu0 }
 0x1bf   : > { %v1430_v53 = vpop.f32.mrf.mxu3  ;;  %v1342_v54 = vadd.f32 %v1341_v52, %v1253_v51  ;;  %v1254_v56 = vpop.f32.mrf.mxu1 }
 0x1c0   : > { %v1255_v60 = vadd.f32 %v1254_v56, %v1165_v55  ;;  %v465_v56 = vld [vmem:[#allocation2 + $0xc0] sm:$0xff] }
 0x1c1   : > { %v1431_v58 = vadd.f32 %v1430_v53, %v1342_v54 }
 0x1c3   : > { %v1486_v59 = vadd.f32 %v1431_v58, %v458_v57 }
 0x1c5   : > { %1518 = vst [vmem:[#allocation2 + $0x38] sm:$0xff] %v1486_v59 }
 0x1c6   : > { %v1343_v61 = vpop.f32.mrf.mxu2  ;;  %v1168_v0 = vpop.f32.mrf.mxu0 }
 0x1c7   : > { %v1432_v62 = vpop.f32.mrf.mxu3  ;;  %v1344_v63 = vadd.f32 %v1343_v61, %v1255_v60  ;;  %v1257_v1 = vpop.f32.mrf.mxu1 }
 0x1c8   : > { %v1258_v5 = vadd.f32 %v1257_v1, %v1168_v0  ;;  %v466_v1 = vld [vmem:[#allocation2 + $0xa8] sm:$0xff] }
 0x1c9   : > { %v1433_v3 = vadd.f32 %v1432_v62, %v1344_v63 }
 0x1cb   : > { %v1487_v4 = vadd.f32 %v1433_v3, %v459_v2 }
 0x1cd   : > { %1519 = vst [vmem:[#allocation2 + $0x58] sm:$0xff] %v1487_v4 }
 0x1ce   : > { %v1346_v6 = vpop.f32.mrf.mxu2  ;;  %v1170_v9 = vpop.f32.mrf.mxu0 }
 0x1cf   : > { %v1435_v7 = vpop.f32.mrf.mxu3  ;;  %v1347_v8 = vadd.f32 %v1346_v6, %v1258_v5  ;;  %v1259_v10 = vpop.f32.mrf.mxu1 }
 0x1d0   : > { %v1260_v14 = vadd.f32 %v1259_v10, %v1170_v9  ;;  %v467_v10 = vld [vmem:[#allocation2 + $0xd0] sm:$0xff] }
 0x1d1   : > { %v1436_v12 = vadd.f32 %v1435_v7, %v1347_v8 }
 0x1d3   : > { %v1488_v13 = vadd.f32 %v1436_v12, %v460_v11 }
 0x1d5   : > { %1520 = vst [vmem:[#allocation2 + $0x40] sm:$0xff] %v1488_v13 }
 0x1d6   : > { %v1348_v15 = vpop.f32.mrf.mxu2  ;;  %v1173_v18 = vpop.f32.mrf.mxu0 }
 0x1d7   : > { %v1437_v16 = vpop.f32.mrf.mxu3  ;;  %v1349_v17 = vadd.f32 %v1348_v15, %v1260_v14  ;;  %v1262_v19 = vpop.f32.mrf.mxu1 }
 0x1d8   : > { %v1263_v23 = vadd.f32 %v1262_v19, %v1173_v18  ;;  %v468_v19 = vld [vmem:[#allocation2 + $0x10] sm:$0xff] }
 0x1d9   : > { %v1438_v21 = vadd.f32 %v1437_v16, %v1349_v17 }
 0x1db   : > { %v1489_v22 = vadd.f32 %v1438_v21, %v461_v20 }
 0x1dd   : > { %1521 = vst [vmem:[#allocation2 + $0xc8] sm:$0xff] %v1489_v22 }
 0x1de   : > { %v1351_v24 = vpop.f32.mrf.mxu2  ;;  %v1175_v27 = vpop.f32.mrf.mxu0 }
 0x1df   : > { %v1440_v25 = vpop.f32.mrf.mxu3  ;;  %v1352_v26 = vadd.f32 %v1351_v24, %v1263_v23  ;;  %v1264_v28 = vpop.f32.mrf.mxu1 }
 0x1e0   : > { %v1265_v32 = vadd.f32 %v1264_v28, %v1175_v27  ;;  %v469_v28 = vld [vmem:[#allocation2 + $0x28] sm:$0xff] }
 0x1e1   : > { %v1441_v30 = vadd.f32 %v1440_v25, %v1352_v26 }
 0x1e3   : > { %v1490_v31 = vadd.f32 %v1441_v30, %v462_v29 }
 0x1e5   : > { %1522 = vst [vmem:[#allocation2 + $0xe0] sm:$0xff] %v1490_v31 }
 0x1e6   : > { %v1353_v33 = vpop.f32.mrf.mxu2  ;;  %v1178_v36 = vpop.f32.mrf.mxu0 }
 0x1e7   : > { %v1442_v34 = vpop.f32.mrf.mxu3  ;;  %v1354_v35 = vadd.f32 %v1353_v33, %v1265_v32  ;;  %v1267_v37 = vpop.f32.mrf.mxu1 }
 0x1e8   : > { %v1268_v41 = vadd.f32 %v1267_v37, %v1178_v36  ;;  %v470_v37 = vld [vmem:[#allocation2 + $0xa0] sm:$0xff] }
 0x1e9   : > { %v1443_v39 = vadd.f32 %v1442_v34, %v1354_v35 }
 0x1eb   : > { %v1491_v40 = vadd.f32 %v1443_v39, %v463_v38 }
 0x1ed   : > { %1523 = vst [vmem:[#allocation2 + $0x90] sm:$0xff] %v1491_v40 }
 0x1ee   : > { %v1356_v42 = vpop.f32.mrf.mxu2  ;;  %v1180_v45 = vpop.f32.mrf.mxu0 }
 0x1ef   : > { %v1445_v43 = vpop.f32.mrf.mxu3  ;;  %v1357_v44 = vadd.f32 %v1356_v42, %v1268_v41  ;;  %v1269_v46 = vpop.f32.mrf.mxu1 }
 0x1f0   : > { %v1270_v50 = vadd.f32 %v1269_v46, %v1180_v45 }
 0x1f1   : > { %v1446_v48 = vadd.f32 %v1445_v43, %v1357_v44  ;;  %v471_v44 = vld [vmem:[#allocation2 + $0xf8] sm:$0xff] }
 0x1f3   : > { %v1492_v49 = vadd.f32 %v1446_v48, %v464_v47 }
 0x1f5   : > { %1524 = vst [vmem:[#allocation2 + $0x70] sm:$0xff] %v1492_v49 }
 0x1f6   : > { %v1358_v51 = vpop.f32.mrf.mxu2  ;;  %v1183_v54 = vpop.f32.mrf.mxu0 }
 0x1f7   : > { %v1447_v52 = vpop.f32.mrf.mxu3  ;;  %v1359_v53 = vadd.f32 %v1358_v51, %v1270_v50  ;;  %v1272_v55 = vpop.f32.mrf.mxu1 }
 0x1f8   : > { %v1273_v59 = vadd.f32 %v1272_v55, %v1183_v54 }
 0x1f9   : > { %v1448_v57 = vadd.f32 %v1447_v52, %v1359_v53  ;;  %v472_v53 = vld [vmem:[#allocation2 + $0x20] sm:$0xff] }
 0x1fb   : > { %v1493_v58 = vadd.f32 %v1448_v57, %v465_v56 }
 0x1fd   : > { %1525 = vst [vmem:[#allocation2 + $0xc0] sm:$0xff] %v1493_v58 }
 0x1fe   : > { %v1361_v60 = vpop.f32.mrf.mxu2  ;;  %v1185_v63 = vpop.f32.mrf.mxu0 }
 0x1ff   : > { %v1450_v61 = vpop.f32.mrf.mxu3  ;;  %v1362_v62 = vadd.f32 %v1361_v60, %v1273_v59  ;;  %v1274_v0 = vpop.f32.mrf.mxu1 }
 0x200   : > { %v1275_v4 = vadd.f32 %v1274_v0, %v1185_v63 }
 0x201   : > { %v1451_v2 = vadd.f32 %v1450_v61, %v1362_v62  ;;  %v473_v61 = vld [vmem:[#allocation2 + $0x98] sm:$0xff] }
 0x203   : > { %v1494_v3 = vadd.f32 %v1451_v2, %v466_v1 }
 0x205   : > { %1526 = vst [vmem:[#allocation2 + $0xa8] sm:$0xff] %v1494_v3 }
 0x206   : > { %v1363_v5 = vpop.f32.mrf.mxu2  ;;  %v1188_v8 = vpop.f32.mrf.mxu0 }
 0x207   : > { %v1452_v6 = vpop.f32.mrf.mxu3  ;;  %v1364_v7 = vadd.f32 %v1363_v5, %v1275_v4  ;;  %v1277_v9 = vpop.f32.mrf.mxu1 }
 0x208   : > { %v1278_v13 = vadd.f32 %v1277_v9, %v1188_v8 }
 0x209   : > { %v1453_v11 = vadd.f32 %v1452_v6, %v1364_v7 }
 0x20b   : > { %v1495_v12 = vadd.f32 %v1453_v11, %v467_v10 }
 0x20d   : > { %1527 = vst [vmem:[#allocation2 + $0xd0] sm:$0xff] %v1495_v12 }
 0x20e   : > { %v1366_v14 = vpop.f32.mrf.mxu2  ;;  %v1190_v17 = vpop.f32.mrf.mxu0 }
 0x20f   : > { %v1455_v15 = vpop.f32.mrf.mxu3  ;;  %v1367_v16 = vadd.f32 %v1366_v14, %v1278_v13  ;;  %v1279_v18 = vpop.f32.mrf.mxu1 }
 0x210   : > { %v1280_v22 = vadd.f32 %v1279_v18, %v1190_v17 }
 0x211   : > { %v1456_v20 = vadd.f32 %v1455_v15, %v1367_v16 }
 0x213   : > { %v1496_v21 = vadd.f32 %v1456_v20, %v468_v19 }
 0x215   : > { %1528 = vst [vmem:[#allocation2 + $0x10] sm:$0xff] %v1496_v21 }
 0x216   : > { %v1368_v23 = vpop.f32.mrf.mxu2  ;;  %v1193_v26 = vpop.f32.mrf.mxu0 }
 0x217   : > { %v1457_v24 = vpop.f32.mrf.mxu3  ;;  %v1369_v25 = vadd.f32 %v1368_v23, %v1280_v22  ;;  %v1282_v27 = vpop.f32.mrf.mxu1 }
 0x218   : > { %v1283_v31 = vadd.f32 %v1282_v27, %v1193_v26 }
 0x219   : > { %v1458_v29 = vadd.f32 %v1457_v24, %v1369_v25 }
 0x21b   : > { %v1497_v30 = vadd.f32 %v1458_v29, %v469_v28 }
 0x21d   : > { %1529 = vst [vmem:[#allocation2 + $0x28] sm:$0xff] %v1497_v30 }
 0x21e   : > { %v1371_v32 = vpop.f32.mrf.mxu2  ;;  %v1195_v35 = vpop.f32.mrf.mxu0 }
 0x21f   : > { %v1460_v33 = vpop.f32.mrf.mxu3  ;;  %v1372_v34 = vadd.f32 %v1371_v32, %v1283_v31  ;;  %v1284_v36 = vpop.f32.mrf.mxu1 }
 0x220   : > { %v1285_v40 = vadd.f32 %v1284_v36, %v1195_v35 }
 0x221   : > { %v1461_v38 = vadd.f32 %v1460_v33, %v1372_v34 }
 0x223   : > { %v1498_v39 = vadd.f32 %v1461_v38, %v470_v37 }
 0x225   : > { %1530 = vst [vmem:[#allocation2 + $0xa0] sm:$0xff] %v1498_v39 }
 0x226   : > { %v1373_v41 = vpop.f32.mrf.mxu2  ;;  %v1198_v45 = vpop.f32.mrf.mxu0 }
 0x227   : > { %v1462_v42 = vpop.f32.mrf.mxu3  ;;  %v1374_v43 = vadd.f32 %v1373_v41, %v1285_v40  ;;  %v1287_v46 = vpop.f32.mrf.mxu1 }
 0x228   : > { %v1288_v49 = vadd.f32 %v1287_v46, %v1198_v45 }
 0x229   : > { %v1463_v47 = vadd.f32 %v1462_v42, %v1374_v43 }
 0x22b   : > { %v1499_v48 = vadd.f32 %v1463_v47, %v471_v44 }
 0x22d   : > { %1531 = vst [vmem:[#allocation2 + $0xf8] sm:$0xff] %v1499_v48 }
 0x22e   : > { %v1376_v50 = vpop.f32.mrf.mxu2  ;;  %v1200_v55 = vpop.f32.mrf.mxu0 }
 0x22f   : > { %v1465_v51 = vpop.f32.mrf.mxu3  ;;  %v1377_v52 = vadd.f32 %v1376_v50, %v1288_v49  ;;  %v1289_v56 = vpop.f32.mrf.mxu1 }
 0x230   : > { %v1290_v58 = vadd.f32 %v1289_v56, %v1200_v55 }
 0x231   : > { %v1466_v54 = vadd.f32 %v1465_v51, %v1377_v52 }
 0x233   : > { %v1500_v57 = vadd.f32 %v1466_v54, %v472_v53 }
 0x235   : > { %1532 = vst [vmem:[#allocation2 + $0x20] sm:$0xff] %v1500_v57 }
 0x236   : > { %v1378_v59 = vpop.f32.mrf.mxu2 }
 0x237   : > { %v1379_v60 = vadd.f32 %v1378_v59, %v1290_v58  ;;  %v1467_v62 = vpop.f32.mrf.mxu3 }
 0x239   : > { %v1468_v63 = vadd.f32 %v1467_v62, %v1379_v60  ;;  %1537 = sbr.rel (%p2225_p6) target bundleno = 611 (0x263), region = 67 }
 0x23b   : > { %v1501_v0 = vadd.f32 %v1468_v63, %v473_v61 }
 0x23d   : > { %1533 = vst [vmem:[#allocation2 + $0x98] sm:$0xff] %v1501_v0 }
 0x23e   : > { %v1538_v1 = vld [vmem:[#allocation2 + $0xb0] sm:$0xff]  ;;  %v2978_v2 = vld [vmem:[%s3129_s2] ss:$0 sm:$0xff]  ;;  %v1607_v5 = vld [vmem:[%s2807_s18 + $0x8] sm:$0xff] }
 0x23f   : > { %v1606_v3 = vld [vmem:[%s2807_s18] sm:$0xff]  ;;  %v1574_v6 = vadd.f32 %v2978_v2, %v1538_v1  ;;  %v1540_v8 = vld [vmem:[#allocation2 + $0xd8] sm:$0xff]  ;;  %v1608_v9 = vld [vmem:[%s2807_s18 + $0x10] sm:$0xff] }
 0x240   : > { %v1539_v4 = vld [vmem:[#allocation2] sm:$0xff]  ;;  %v1541_v10 = vld [vmem:[#allocation2 + $0x18] sm:$0xff]  ;;  %v1576_v11 = vadd.f32 %v2978_v2, %v1540_v8  ;;  %v1542_v14 = vld [vmem:[#allocation2 + $0x50] sm:$0xff] }
 0x241   : > { %v1575_v7 = vadd.f32 %v2978_v2, %v1539_v4  ;;  %v1577_v12 = vadd.f32 %v2978_v2, %v1541_v10  ;;  %v1609_v13 = vld [vmem:[%s2807_s18 + $0x18] sm:$0xff]  ;;  %v1610_v15 = vld [vmem:[%s2807_s18 + $0x20] sm:$0xff]  ;;  %v1638_v16 = vadd.f32 %v1606_v3, %v1574_v6  ;;  %v1578_v18 = vadd.f32 %v2978_v2, %v1542_v14  ;;  %v1543_v19 = vld [vmem:[#allocation2 + $0x68] sm:$0xff] }
 0x242   : > { %v1611_v20 = vld [vmem:[%s2807_s18 + $0x28] sm:$0xff]  ;;  %v1544_v21 = vld [vmem:[#allocation2 + $0x30] sm:$0xff]  ;;  %v1640_v22 = vadd.f32 %v1608_v9, %v1576_v11  ;;  %v1579_v24 = vadd.f32 %v2978_v2, %v1543_v19  ;;  %v1613_v30 = vld [vmem:[%s2807_s18 + $0x38] sm:$0xff] }
 0x243   : > { %v1639_v17 = vadd.f32 %v1607_v5, %v1575_v7  ;;  %v1641_v23 = vadd.f32 %v1609_v13, %v1577_v12  ;;  %v1580_v25 = vadd.f32 %v2978_v2, %v1544_v21  ;;  %v1612_v26 = vld [vmem:[%s2807_s18 + $0x30] sm:$0xff]  ;;  %v1545_v27 = vld [vmem:[#allocation2 + $0x48] sm:$0xff]  ;;  %1670 = vst [vmem:[%s2811_s14] sm:$0xff] %v1638_v16  ;;  %v1642_v28 = vadd.f32 %v1610_v15, %v1578_v18  ;;  %v1546_v31 = vld [vmem:[#allocation2 + $0x80] sm:$0xff] }
 0x244   : > { %v1581_v29 = vadd.f32 %v2978_v2, %v1545_v27  ;;  %v1547_v32 = vld [vmem:[#allocation2 + $0x88] sm:$0xff]  ;;  %v1643_v33 = vadd.f32 %v1611_v20, %v1579_v24  ;;  %v1582_v34 = vadd.f32 %v2978_v2, %v1546_v31  ;;  %v1614_v35 = vld [vmem:[%s2807_s18 + $0x40] sm:$0xff]  ;;  %1672 = vst [vmem:[%s2811_s14 + $0x10] sm:$0xff] %v1640_v22  ;;  %v1549_v41 = vld [vmem:[#allocation2 + $0xb8] sm:$0xff] }
 0x245   : > { %1671 = vst [vmem:[%s2811_s14 + $0x8] sm:$0xff] %v1639_v17  ;;  %v1583_v36 = vadd.f32 %v2978_v2, %v1547_v32  ;;  %v1548_v37 = vld [vmem:[#allocation2 + $0xe8] sm:$0xff]  ;;  %v1644_v38 = vadd.f32 %v1612_v26, %v1580_v25  ;;  %v1550_v42 = vld [vmem:[#allocation2 + $0x60] sm:$0xff]  ;;  %v1616_v44 = vld [vmem:[%s2807_s18 + $0x50] sm:$0xff]  ;;  %v1585_v45 = vadd.f32 %v2978_v2, %v1549_v41 }
 0x246   : > { %v1615_v39 = vld [vmem:[%s2807_s18 + $0x48] sm:$0xff]  ;;  %v1584_v40 = vadd.f32 %v2978_v2, %v1548_v37  ;;  %1673 = vst [vmem:[%s2811_s14 + $0x18] sm:$0xff] %v1641_v23  ;;  %v1645_v43 = vadd.f32 %v1613_v30, %v1581_v29  ;;  %v1551_v46 = vld [vmem:[#allocation2 + $0xf0] sm:$0xff]  ;;  %v1646_v47 = vadd.f32 %v1614_v35, %v1582_v34  ;;  %v1617_v48 = vld [vmem:[%s2807_s18 + $0x58] sm:$0xff]  ;;  %v1586_v49 = vadd.f32 %v2978_v2, %v1550_v42 }
 0x247   : > { %1674 = vst [vmem:[%s2811_s14 + $0x20] sm:$0xff] %v1642_v28  ;;  %v1552_v50 = vld [vmem:[#allocation2 + $0x8] sm:$0xff]  ;;  %v1553_v51 = vld [vmem:[#allocation2 + $0x78] sm:$0xff]  ;;  %v1647_v52 = vadd.f32 %v1615_v39, %v1583_v36  ;;  %v1618_v53 = vld [vmem:[%s2807_s18 + $0x60] sm:$0xff]  ;;  %v1587_v54 = vadd.f32 %v2978_v2, %v1551_v46  ;;  %v1649_v60 = vadd.f32 %v1617_v48, %v1585_v45 }
 0x248   : > { %1675 = vst [vmem:[%s2811_s14 + $0x28] sm:$0xff] %v1643_v33  ;;  %v1554_v55 = vld [vmem:[#allocation2 + $0x38] sm:$0xff]  ;;  %v1648_v56 = vadd.f32 %v1616_v44, %v1584_v40  ;;  %v1619_v57 = vld [vmem:[%s2807_s18 + $0x68] sm:$0xff]  ;;  %v1588_v58 = vadd.f32 %v2978_v2, %v1552_v50  ;;  %v1620_v61 = vld [vmem:[%s2807_s18 + $0x70] sm:$0xff]  ;;  %v1589_v62 = vadd.f32 %v2978_v2, %v1553_v51  ;;  %v1650_v0 = vadd.f32 %v1618_v53, %v1586_v49 }
 0x249   : > { %1676 = vst [vmem:[%s2811_s14 + $0x30] sm:$0xff] %v1644_v38  ;;  %v1555_v59 = vld [vmem:[#allocation2 + $0x58] sm:$0xff]  ;;  %v1556_v63 = vld [vmem:[#allocation2 + $0x40] sm:$0xff]  ;;  %v1590_v3 = vadd.f32 %v2978_v2, %v1554_v55  ;;  %v1557_v4 = vld [vmem:[#allocation2 + $0xc8] sm:$0xff]  ;;  %v1651_v5 = vadd.f32 %v1619_v57, %v1587_v54 }
 0x24a   : > { %1677 = vst [vmem:[%s2811_s14 + $0x38] sm:$0xff] %v1645_v43  ;;  %v1621_v1 = vld [vmem:[%s2807_s18 + $0x78] sm:$0xff]  ;;  %v1622_v6 = vld [vmem:[%s2807_s18 + $0x80] sm:$0xff]  ;;  %v1591_v7 = vadd.f32 %v2978_v2, %v1555_v59  ;;  %v1652_v9 = vadd.f32 %v1620_v61, %v1588_v58  ;;  %v1623_v10 = vld [vmem:[%s2807_s18 + $0x88] sm:$0xff]  ;;  %v1592_v11 = vadd.f32 %v2978_v2, %v1556_v63  ;;  %v1593_v15 = vadd.f32 %v2978_v2, %v1557_v4 }
 0x24b   : > { %1678 = vst [vmem:[%s2811_s14 + $0x40] sm:$0xff] %v1646_v47  ;;  %v1558_v8 = vld [vmem:[#allocation2 + $0xe0] sm:$0xff]  ;;  %v1559_v12 = vld [vmem:[#allocation2 + $0x90] sm:$0xff]  ;;  %v1653_v13 = vadd.f32 %v1621_v1, %v1589_v62  ;;  %v1654_v17 = vadd.f32 %v1622_v6, %v1590_v3  ;;  %v1625_v18 = vld [vmem:[%s2807_s18 + $0x98] sm:$0xff] }
 0x24c   : > { %1679 = vst [vmem:[%s2811_s14 + $0x48] sm:$0xff] %v1647_v52  ;;  %v1624_v14 = vld [vmem:[%s2807_s18 + $0x90] sm:$0xff]  ;;  %v1594_v19 = vadd.f32 %v2978_v2, %v1558_v8  ;;  %v1561_v20 = vld [vmem:[#allocation2 + $0xc0] sm:$0xff]  ;;  %v1655_v21 = vadd.f32 %v1623_v10, %v1591_v7  ;;  %v1595_v23 = vadd.f32 %v2978_v2, %v1559_v12  ;;  %v1562_v24 = vld [vmem:[#allocation2 + $0xa8] sm:$0xff]  ;;  %v1657_v29 = vadd.f32 %v1625_v18, %v1593_v15 }
 0x24d   : > { %1680 = vst [vmem:[%s2811_s14 + $0x50] sm:$0xff] %v1648_v56  ;;  %v1560_v16 = vld [vmem:[#allocation2 + $0x70] sm:$0xff]  ;;  %v1626_v22 = vld [vmem:[%s2807_s18 + $0xa0] sm:$0xff]  ;;  %v1656_v25 = vadd.f32 %v1624_v14, %v1592_v11  ;;  %v1627_v26 = vld [vmem:[%s2807_s18 + $0xa8] sm:$0xff]  ;;  %v1597_v31 = vadd.f32 %v2978_v2, %v1561_v20  ;;  %v1598_v35 = vadd.f32 %v2978_v2, %v1562_v24 }
 0x24e   : > { %1681 = vst [vmem:[%s2811_s14 + $0x58] sm:$0xff] %v1649_v60  ;;  %v1596_v27 = vadd.f32 %v2978_v2, %v1560_v16  ;;  %v1563_v28 = vld [vmem:[#allocation2 + $0xd0] sm:$0xff]  ;;  %v1658_v33 = vadd.f32 %v1626_v22, %v1594_v19  ;;  %v1629_v34 = vld [vmem:[%s2807_s18 + $0xb8] sm:$0xff]  ;;  %v1565_v36 = vld [vmem:[#allocation2 + $0x28] sm:$0xff]  ;;  %v1659_v37 = vadd.f32 %v1627_v26, %v1595_v23 }
 0x24f   : > { %1682 = vst [vmem:[%s2811_s14 + $0x60] sm:$0xff] %v1650_v0  ;;  %v1628_v30 = vld [vmem:[%s2807_s18 + $0xb0] sm:$0xff]  ;;  %v1630_v38 = vld [vmem:[%s2807_s18 + $0xc0] sm:$0xff]  ;;  %v1599_v39 = vadd.f32 %v2978_v2, %v1563_v28  ;;  %v1631_v42 = vld [vmem:[%s2807_s18 + $0xc8] sm:$0xff]  ;;  %v1661_v45 = vadd.f32 %v1629_v34, %v1597_v31  ;;  %v1601_v47 = vadd.f32 %v2978_v2, %v1565_v36 }
 0x250   : > { %1683 = vst [vmem:[%s2811_s14 + $0x68] sm:$0xff] %v1651_v5  ;;  %v1564_v32 = vld [vmem:[#allocation2 + $0x10] sm:$0xff]  ;;  %v1566_v40 = vld [vmem:[#allocation2 + $0xa0] sm:$0xff]  ;;  %v1660_v41 = vadd.f32 %v1628_v30, %v1596_v27  ;;  %v1567_v44 = vld [vmem:[#allocation2 + $0xf8] sm:$0xff]  ;;  %v1662_v49 = vadd.f32 %v1630_v38, %v1598_v35 }
 0x251   : > { %1684 = vst [vmem:[%s2811_s14 + $0x70] sm:$0xff] %v1652_v9  ;;  %v1600_v43 = vadd.f32 %v2978_v2, %v1564_v32  ;;  %v1632_v46 = vld [vmem:[%s2807_s18 + $0xd0] sm:$0xff]  ;;  %v1568_v48 = vld [vmem:[#allocation2 + $0x20] sm:$0xff]  ;;  %v1633_v50 = vld [vmem:[%s2807_s18 + $0xd8] sm:$0xff]  ;;  %v1602_v51 = vadd.f32 %v2978_v2, %v1566_v40  ;;  %v1663_v53 = vadd.f32 %v1631_v42, %v1599_v39  ;;  %v1603_v55 = vadd.f32 %v2978_v2, %v1567_v44 }
 0x252   : > { %1685 = vst [vmem:[%s2811_s14 + $0x78] sm:$0xff] %v1653_v13  ;;  %v1569_v52 = vld [vmem:[#allocation2 + $0x98] sm:$0xff]  ;;  %v1634_v54 = vld [vmem:[%s2807_s18 + $0xe0] sm:$0xff]  ;;  %v1635_v57 = vld [vmem:[%s2807_s18 + $0xe8] sm:$0xff]  ;;  %v1604_v58 = vadd.f32 %v2978_v2, %v1568_v48  ;;  %v1665_v59 = vadd.f32 %v1633_v50, %v1601_v47 }
 0x253   : > { %1686 = vst [vmem:[%s2811_s14 + $0x80] sm:$0xff] %v1654_v17  ;;  %v1664_v56 = vadd.f32 %v1632_v46, %v1600_v43  ;;  %v1636_v60 = vld [vmem:[%s2807_s18 + $0xf0] sm:$0xff]  ;;  %v1605_v61 = vadd.f32 %v2978_v2, %v1569_v52  ;;  %v1666_v62 = vadd.f32 %v1634_v54, %v1602_v51  ;;  %v1637_v63 = vld [vmem:[%s2807_s18 + $0xf8] sm:$0xff]  ;;  %v1667_v0 = vadd.f32 %v1635_v57, %v1603_v55 }
 0x254   : > { %1687 = vst [vmem:[%s2811_s14 + $0x88] sm:$0xff] %v1655_v21  ;;  %v1668_v1 = vadd.f32 %v1636_v60, %v1604_v58 }
 0x255   : > { %1688 = vst [vmem:[%s2811_s14 + $0x90] sm:$0xff] %v1656_v25  ;;  %v1669_v3 = vadd.f32 %v1637_v63, %v1605_v61 }
 0x256   : > { %1689 = vst [vmem:[%s2811_s14 + $0x98] sm:$0xff] %v1657_v29 }
 0x257   : > { %1690 = vst [vmem:[%s2811_s14 + $0xa0] sm:$0xff] %v1658_v33 }
 0x258   : > { %1691 = vst [vmem:[%s2811_s14 + $0xa8] sm:$0xff] %v1659_v37 }
 0x259   : > { %1692 = vst [vmem:[%s2811_s14 + $0xb0] sm:$0xff] %v1660_v41 }
 0x25a   : > { %1693 = vst [vmem:[%s2811_s14 + $0xb8] sm:$0xff] %v1661_v45 }
 0x25b   : > { %1694 = vst [vmem:[%s2811_s14 + $0xc0] sm:$0xff] %v1662_v49 }
 0x25c   : > { %1695 = vst [vmem:[%s2811_s14 + $0xc8] sm:$0xff] %v1663_v53 }
 0x25d   : > { %1696 = vst [vmem:[%s2811_s14 + $0xd0] sm:$0xff] %v1664_v56 }
 0x25e   : > { %1697 = vst [vmem:[%s2811_s14 + $0xd8] sm:$0xff] %v1665_v59 }
 0x25f   : > { %1698 = vst [vmem:[%s2811_s14 + $0xe0] sm:$0xff] %v1666_v62 }
 0x260   : > { %1699 = vst [vmem:[%s2811_s14 + $0xe8] sm:$0xff] %v1667_v0 }
 0x261   : > { %1700 = vst [vmem:[%s2811_s14 + $0xf0] sm:$0xff] %v1668_v1 }
 0x262   : > { %1701 = vst [vmem:[%s2811_s14 + $0xf8] sm:$0xff] %v1669_v3 }
 0x263 PF: > { %s2327_s20 = sshll.u32 %s2518_s21, 8  ;;  %s1715_s30 = sshll.u32 %s2811_s14, 4  ;;  %s1716_s30 = int_to_ptr.vmem [resolvable:$true] %s1715_s30 }
 0x264   : > { %s1714_s26 = scalar_lea.hbm %s3131_s4, %s2327_s20  ;;  %s3142_s9 = sand.u32 1, %s2498_s16  }
 0x265   : > { %s1717_s8 = sshll.u32 %s1714_s26, 4  ;;  %s1703_s6 = scalar_lea.sflag [#allocation5], %s3142_s9  ;;  %s1718_s8 = int_to_ptr.hbm [resolvable:$true] %s1717_s8 }
 0x266   : > { %s2434_s29 = sshra.s32 %s1718_s8, 4  ;;  %s2440_s21 = scalar_lea.hbm %s3131_s4, 512  ;;  %s2435_s29 = int_to_ptr.hbm [resolvable:$true] %s2434_s29 }
 0x267   : > { %s2436_s5 = scalar_lea.hbm %s2435_s29, 256  ;;  %p2441_p11 = scmp.lt.s32.totalorder %s2435_s29, %s3131_s4 }
 0x268   : > { %p2437_p8 = scmp.ne.s32.totalorder %s2435_s29, %s2436_s5  ;;  %p2442_p13 = scmp.lt.s32.totalorder %s2440_s21, %s2436_s5 }
 0x26a   : > { %p2438_p9 = pnand %p2437_p8, %p2632_p7  ;;  %p2443_p0 = por %p2442_p13, %p2441_p11 }
 0x26c   : > { %p2439_p10 = pneg %p2438_p9 }
 0x26e   : > { %p2444_p1 = pnand %p2443_p0, %p2439_p10 }
 0x270   : > { %2447 = shalt.err (!%p2444_p1)
}
 0x271   : > { %s2533_s14 = smov 128   ;;  %s2534_s20 = smov 8  }
 0x272   : > { %2329 = dma.vmem_to_hbm [thread:$0]  (%p2632_p7), %s1716_s30, 4096, %s1718_s8, %s1703_s6, %s2533_s14, %s2533_s14, %s2534_s20  }
 0x273 PF: > { %p2335_p2 = scmp.ge.s32.totalorder %s2530_s24, 2  ;;  %s1732_s28 = sand.u32 1, %s2494_s15  }
 0x274   : > { %s1733_s25 = scalar_lea.sflag [#allocation5], %s1732_s28 }
 0x275   : > { %p2332_p3 = pnand %p2335_p2, %p2640_p12 }
 0x277   : > { %p2333_p4 = pneg %p2332_p3 }
 0x279   : > { %2489 = dma.done.wait (%p2333_p4), %s1733_s25, 4096  }
 0x27a   : > { %2491 = vsyncadd (%p2333_p4), %s1733_s25, 4294963200  ;;  %s17_s24 = sadd.s32 1, %s2530_s24   ;;  %s3143_s7 = sld [smem:[#allocation7_spill]] }
 0x27b   : > { %p14_p5 = scmp.ge.s32.totalorder %s17_s24, 8   ;;  %s3144_s26 = sld [smem:[#allocation8_spill]] }
 0x27c   : > { %s3145_s15 = smov %s2498_s16  ;;  %s3146_s16 = smov %s2502_s17 }
 0x27d   : > { %s3147_s17 = smov %s2645_s11  ;;  %s3148_s18 = smov %s2510_s19 }
 0x27e   : > { %s3149_s19 = smov %s2648_s12  ;;  %s3150_s20 = smov %s2522_s22 }
 0x27f   : > { %s3151_s21 = smov %s2526_s23  ;;  %16 = sbr.rel (!%p14_p5) target bundleno = 8 (0x8), region = 113 }
 0x280   : > { %s3152_s22 = smov %s3143_s7 }
 0x281   : > { %s3153_s23 = smov %s3144_s26 }
 0x284   :  { %1739 = vsyncpa [#allocation5], 1 }
 0x285   :  { %1741 = vsyncpa [#allocation5 + $0x1], 1 }

</bundles_post_ra>
